<compile_context>
chip_gen: v6e
topology: v6e:2x2x1
jax: 0.10.0
libtpu: 0.0.40
codegen_flags: <defaults>
</compile_context>

<pallas_src>
import functools

import jax
import jax.numpy as jnp
import numpy as np
from jax import lax
from jax.experimental import pallas as pl
from jax.experimental.pallas import tpu as pltpu

LEAKY_SLOPE = 0.01   # F.leaky_relu default negative_slope
BN_EPS = 1e-5        # nn.BatchNorm2d default eps


# ----------------------------------------------------------------------------
# Fused whole-network Pallas kernel
# ----------------------------------------------------------------------------
def _center_speed_kernel(p1_ref, w1_ref, b1_ref, w2_ref, b2_ref,
                         w3_ref, b3_ref, w4_ref, b4_ref,
                         o_ref, s2_ref, s3_ref, s4_ref,
                         *, N, H, W, C1, C2, COUT):
    H1, W1 = H // 2, W // 2          # conv1 / deconv1 output spatial
    H2, W2 = H // 4, W // 4          # conv2 output spatial
    RB = W2 * N                      # row-block (one parity-plane output row)

    def lrelu(v):
        return jnp.maximum(v, LEAKY_SLOPE * v)

    # Zero the padded scratch inputs (only the 1-px borders strictly need it,
    # full zeroing is a handful of stores at these sizes).
    s2_ref[...] = jnp.zeros_like(s2_ref)
    s3_ref[...] = jnp.zeros_like(s3_ref)
    s4_ref[...] = jnp.zeros_like(s4_ref)

    # ---------------- layer 1: conv1 (3x3, stride 2, pad 1) -----------------
    # Patches of the (tiny) network input are pre-gathered by the wrapper with
    # rows ordered (p1, w-parity, j, n) so every (p1, parity) block below is a
    # single contiguous, 8-row-aligned slice.
    a1 = jnp.dot(p1_ref[...], w1_ref[...], preferred_element_type=jnp.float32)
    a1 = lrelu(a1 + b1_ref[...])
    # Scatter into conv2's padded, parity-split input scratch:
    #   s2[(h1p%2)*(H2+1) + h1p//2, w1p%2, (w1p//2)*N + n, :]
    # with h1p = p1 + 1, w1p = q1 + 1  (pad = 1).
    for p1 in range(H1):
        h1p = p1 + 1
        d0 = (h1p % 2) * (H2 + 1) + h1p // 2
        for par in range(2):              # par == (q1+1) % 2 of this row block
            src = a1[(p1 * 2 + par) * RB:(p1 * 2 + par + 1) * RB, :]
            s2_ref[d0, par, pl.ds((1 - par) * N, RB), :] = src

    # ---------------- layer 2: conv2 (3x3, stride 2, pad 1) -----------------
    acc2 = jnp.zeros((H2 * RB, C2), jnp.float32)
    for kh in range(3):
        for kw in range(3):
            g = s2_ref[pl.ds((kh % 2) * (H2 + 1) + kh // 2, H2),
                       kw % 2,
                       pl.ds((kw // 2) * N, RB), :]
            g = g.reshape(H2 * RB, C1).astype(jnp.bfloat16)
            acc2 = acc2 + jnp.dot(g, w2_ref[kh * 3 + kw],
                                  preferred_element_type=jnp.float32)
    a2 = lrelu(acc2 + b2_ref[...])
    # Scatter into deconv1's padded input scratch (interleaved (w2, n) rows).
    for p2 in range(H2):
        s3_ref[p2 + 1, pl.ds(N, RB), :] = a2[p2 * RB:(p2 + 1) * RB, :]

    # -------- layer 3: deconv1 (4x4, stride 2, pad 1) - sub-pixel form ------
    # out3[2p3+r, 2q3+s] = sum_{dh,dw in {0,1}}
    #     out2_pad[p3+dh+r, q3+dw+s] @ W3[:, :, 3-r-2dh, 3-s-2dw]
    for r in range(2):
        for s in range(2):
            acc3 = jnp.zeros((H2 * RB, C1), jnp.float32)
            for dh in range(2):
                for dw in range(2):
                    g = s3_ref[pl.ds(dh + r, H2), pl.ds((dw + s) * N, RB), :]
                    g = g.reshape(H2 * RB, C2).astype(jnp.bfloat16)
                    widx = ((r * 2 + s) * 2 + dh) * 2 + dw
                    acc3 = acc3 + jnp.dot(g, w3_ref[widx],
                                          preferred_element_type=jnp.float32)
            a3 = lrelu(acc3 + b3_ref[...])
            # Interleave parity plane (r, s) into deconv2's padded,
            # W-parity-split input scratch: h3p = 2p3+r+1, w3p = 2q3+s+1.
            for p3 in range(H2):
                s4_ref[2 * p3 + r + 1, (s + 1) % 2,
                       pl.ds(((s + 1) // 2) * N, RB), :] = \
                    a3[p3 * RB:(p3 + 1) * RB, :]

    # -------- layer 4: deconv2 (4x4, stride 2, pad 1) -----------------------
    # Sub-pixel form folded into channels: a stride-1 3x3 conv whose 4*COUT
    # output channels are (r', s', co).  Splitting the output columns by
    # t = q4 % 2 keeps every tap a single contiguous read of the parity-split
    # scratch, and the packed channels make the final stores lane-denser.
    for t in range(2):
        acc4 = jnp.zeros((H1 * RB, 4 * COUT), jnp.float32)
        for u in range(3):
            for v in range(3):
                g = s4_ref[pl.ds(u, H1), (t + v) % 2,
                           pl.ds(((t + v) // 2) * N, RB), :]
                g = g.reshape(H1 * RB, C1).astype(jnp.bfloat16)
                acc4 = acc4 + jnp.dot(g, w4_ref[u * 3 + v],
                                      preferred_element_type=jnp.float32)
        y = acc4 + b4_ref[...]
        col = lax.broadcasted_iota(jnp.int32, y.shape, 1)
        y = jnp.where(col % COUT == 0, jax.nn.sigmoid(y), y)  # sigmoid, ch 0
        o_ref[t, :, :] = y.astype(o_ref.dtype)


# ----------------------------------------------------------------------------
# Wrapper: BN folding, weight repacking, input patching, output unpacking
# ----------------------------------------------------------------------------
def _fold_bn(conv_b, bn):
    gamma, beta, mean, var = bn
    sc = gamma / jnp.sqrt(var + BN_EPS)
    return sc, beta - mean * sc + conv_b * sc


def center_speed_forward(x_nchw, params):
    N, Cin, H, W = x_nchw.shape
    C1 = params["conv1_w"].shape[-1]
    C2 = params["conv2_w"].shape[-1]
    COUT = params["deconv2_w"].shape[1]
    assert H % 4 == 0 and W % 4 == 0
    H1, W1, H2, W2 = H // 2, W // 2, H // 4, W // 4
    RB = W2 * N
    assert RB % 8 == 0, "need N*(W//4) % 8 == 0 for tile-aligned row blocks"

    # ---- fold inference-mode BN into the weights (scale) and a bias ----
    sc1, b1 = _fold_bn(params["conv1_b"], params["bn1"])
    sc2, b2 = _fold_bn(params["conv2_b"], params["bn2"])
    sc3, b3 = _fold_bn(params["deconv1_b"], params["bn3"])
    sc4, b4 = _fold_bn(params["deconv2_b"], params["bn4"])

    w1 = (params["conv1_w"] * sc1).reshape(9 * Cin, C1).astype(jnp.bfloat16)
    w2 = (params["conv2_w"] * sc2).reshape(9, C1, C2).astype(jnp.bfloat16)

    # deconv1 sub-pixel taps, index ((r*2+s)*2+dh)*2+dw -> W3[:, :, 3-r-2dh, 3-s-2dw]
    w3_pt = params["deconv1_w"] * sc3[None, :, None, None]       # (C2, C1, 4, 4)
    w3 = jnp.stack([w3_pt[:, :, 3 - r - 2 * dh, 3 - s - 2 * dw]
                    for r in range(2) for s in range(2)
                    for dh in range(2) for dw in range(2)], axis=0)
    w3 = w3.astype(jnp.bfloat16)                                 # (16, C2, C1)

    # deconv2 as a dense 3x3 sub-pixel kernel with packed (r', s', co) channels
    w4_pt = params["deconv2_w"]                                  # (C1, COUT, 4, 4)
    blocks = []
    for u in range(3):
        for v in range(3):
            cols = []
            for rp in range(2):
                for sp in range(2):
                    if 0 <= u - rp <= 1 and 0 <= v - sp <= 1:
                        cols.append(w4_pt[:, :, 3 + rp - 2 * u, 3 + sp - 2 * v]
                                    * sc4[None, :])
                    else:
                        cols.append(jnp.zeros((C1, COUT), w4_pt.dtype))
            blocks.append(jnp.concatenate(cols, axis=1))          # (C1, 4*COUT)
    w4 = jnp.stack(blocks, axis=0).astype(jnp.bfloat16)           # (9, C1, 16)
    b4p = jnp.tile(b4, 4)                                         # bias per (r',s',co)

    # ---- conv1 im2col patches: the *network input* only (~14 KiB, read once;
    #      it replaces x entirely, so no HBM amplification of activations) ----
    x = jnp.transpose(x_nchw, (0, 2, 3, 1))                       # NHWC
    xp = jnp.pad(x, ((0, 0), (1, 1), (1, 1), (0, 0)))
    taps = [xp[:, kh:kh + 2 * H1:2, kw:kw + 2 * W1:2, :]
            for kh in range(3) for kw in range(3)]
    pat = jnp.stack(taps, axis=3).reshape(N, H1, W1, 9 * Cin)
    # reorder q1 so rows come out grouped by the parity conv2 consumes
    # (w1p = q1+1 even first, i.e. odd q1 first), rows ordered (p1, q, n).
    qperm = np.array([q for q in range(W1) if q % 2 == 1] +
                     [q for q in range(W1) if q % 2 == 0])
    pat = pat[:, :, qperm, :]
    p1m = jnp.transpose(pat, (1, 2, 0, 3)).reshape(H1 * W1 * N, 9 * Cin)
    p1m = p1m.astype(jnp.bfloat16)

    kernel = functools.partial(_center_speed_kernel,
                               N=N, H=H, W=W, C1=C1, C2=C2, COUT=COUT)

    def full(shape):
        return pl.BlockSpec(shape, lambda i, _s=shape: (0,) * len(_s))

    out = pl.pallas_call(
        kernel,
        out_shape=jax.ShapeDtypeStruct((2, H1 * RB, 4 * COUT), jnp.float32),
        grid=(1,),
        in_specs=[full(p1m.shape), full(w1.shape), full((1, C1)),
                  full(w2.shape), full((1, C2)),
                  full(w3.shape), full((1, C1)),
                  full(w4.shape), full((1, 4 * COUT))],
        out_specs=full((2, H1 * RB, 4 * COUT)),
        scratch_shapes=[
            # conv2 input: padded conv1 output, H and W parity-split
            pltpu.VMEM((2 * (H2 + 1), 2, (W2 + 1) * N, C1), jnp.float32),
            # deconv1 input: padded conv2 output, (w2, n) interleaved rows
            pltpu.VMEM((H2 + 2, (W2 + 2) * N, C2), jnp.float32),
            # deconv2 input: padded deconv1 output, W parity-split
            pltpu.VMEM((H1 + 2, 2, (W2 + 1) * N, C1), jnp.float32),
        ],
        compiler_params=pltpu.CompilerParams(
            dimension_semantics=("arbitrary",),
            vmem_limit_bytes=32 * 1024 * 1024),
    )(p1m, w1, b1.reshape(1, C1), w2, b2.reshape(1, C2),
      w3, b3.reshape(1, C1), w4, b4p.reshape(1, 4 * COUT))

    # unpack: out[t, (p4, j4, n), (r', s', co)] -> NCHW
    o = out.reshape(2, H1, W2, N, 2, 2, COUT)
    o = jnp.transpose(o, (3, 6, 1, 4, 2, 0, 5))   # (n, co, p4, r', j4, t, s')
    return o.reshape(N, COUT, H, W)


# ----------------------------------------------------------------------------
# Deterministic parameter construction (synthetic; no checkpoint load)
# ----------------------------------------------------------------------------
def init_params(key, input_channels=6, c1=64, c2=128):
    ks = jax.random.split(key, 12)

    def conv_w(k, K, cin, cout):          # HWIO
        return jax.random.normal(k, (K, K, cin, cout), jnp.float32) / np.sqrt(K * K * cin)

    def convT_w(k, K, cin, cout):         # PyTorch ConvTranspose layout [Cin, Cout, K, K]
        return jax.random.normal(k, (cin, cout, K, K), jnp.float32) / np.sqrt(K * K * cin)

    def bn(k, c):
        k1, k2, k3, k4 = jax.random.split(k, 4)
        gamma = 1.0 + 0.1 * jax.random.normal(k1, (c,), jnp.float32)
        beta = 0.1 * jax.random.normal(k2, (c,), jnp.float32)
        mean = 0.1 * jax.random.normal(k3, (c,), jnp.float32)
        var = 1.0 + 0.1 * jax.random.uniform(k4, (c,), jnp.float32)
        return gamma, beta, mean, var

    return {
        "conv1_w": conv_w(ks[0], 3, input_channels, c1),
        "conv1_b": 0.05 * jax.random.normal(ks[1], (c1,), jnp.float32),
        "bn1": bn(ks[2], c1),
        "conv2_w": conv_w(ks[3], 3, c1, c2),
        "conv2_b": 0.05 * jax.random.normal(ks[4], (c2,), jnp.float32),
        "bn2": bn(ks[5], c2),
        "deconv1_w": convT_w(ks[6], 4, c2, c1),
        "deconv1_b": 0.05 * jax.random.normal(ks[7], (c1,), jnp.float32),
        "bn3": bn(ks[8], c1),
        "deconv2_w": convT_w(ks[9], 4, c1, 4),
        "deconv2_b": 0.05 * jax.random.normal(ks[10], (4,), jnp.float32),
        "bn4": bn(ks[11], 4),
    }


# ----------------------------------------------------------------------------
# Pure-JAX f32 reference (numeric sanity check of the Pallas path)
# ----------------------------------------------------------------------------
def reference_forward(x_nchw, params):
    dn = ("NHWC", "HWIO", "NHWC")
    hi = lax.Precision.HIGHEST

    def bn_act(y, conv_b, bn, act):
        gamma, beta, mean, var = bn
        y = y + conv_b
        y = gamma * (y - mean) / jnp.sqrt(var + BN_EPS) + beta
        if act == "leaky":
            y = jnp.where(y >= 0, y, LEAKY_SLOPE * y)
        return y

    x = jnp.transpose(x_nchw, (0, 2, 3, 1))
    y = lax.conv_general_dilated(x, params["conv1_w"], (2, 2), [(1, 1), (1, 1)],
                                 dimension_numbers=dn, precision=hi)
    y = bn_act(y, params["conv1_b"], params["bn1"], "leaky")
    y = lax.conv_general_dilated(y, params["conv2_w"], (2, 2), [(1, 1), (1, 1)],
                                 dimension_numbers=dn, precision=hi)
    y = bn_act(y, params["conv2_b"], params["bn2"], "leaky")
    w3 = jnp.transpose(params["deconv1_w"][:, :, ::-1, ::-1], (2, 3, 0, 1))
    y = lax.conv_general_dilated(y, w3, (1, 1), [(2, 2), (2, 2)],
                                 lhs_dilation=(2, 2), dimension_numbers=dn,
                                 precision=hi)
    y = bn_act(y, params["deconv1_b"], params["bn3"], "leaky")
    w4 = jnp.transpose(params["deconv2_w"][:, :, ::-1, ::-1], (2, 3, 0, 1))
    y = lax.conv_general_dilated(y, w4, (1, 1), [(2, 2), (2, 2)],
                                 lhs_dilation=(2, 2), dimension_numbers=dn,
                                 precision=hi)
    y = bn_act(y, params["deconv2_b"], params["bn4"], None)
    y = y.at[:, :, :, 0].set(jax.nn.sigmoid(y[:, :, :, 0]))
    return jnp.transpose(y, (0, 3, 1, 2))


if __name__ == "__main__":
    key = jax.random.PRNGKey(0)
    kx, kp = jax.random.split(key)

    # Small shapes consistent with the module: N=2, Cin=6, H=W=16 (NCHW).
    x = jax.random.normal(kx, (2, 6, 16, 16), jnp.float32)
    params = init_params(kp)

    out = jax.jit(center_speed_forward)(x, params)
    out = jax.block_until_ready(out)
    assert out.shape == (2, 4, 16, 16), out.shape

    ref = reference_forward(x, params)
    # bf16 MXU inputs (f32 accumulation) vs. an f32 HIGHEST-precision
    # reference: ~1% numerical noise is expected, far below bug-sized errors.
    np.testing.assert_allclose(np.asarray(out), np.asarray(ref),
                               rtol=3e-2, atol=3e-2)
    print("KERNEL_OK")
</pallas_src>

<mosaic_0001>
module attributes {stable_mosaic.version = 11 : i64} {
  func.func @_center_speed_kernel(%arg0: i32, %arg1: memref<128x54xbf16, #tpu.memory_space<vmem>>, %arg2: memref<54x64xbf16, #tpu.memory_space<vmem>>, %arg3: memref<1x64xf32, #tpu.memory_space<vmem>>, %arg4: memref<9x64x128xbf16, #tpu.memory_space<vmem>>, %arg5: memref<1x128xf32, #tpu.memory_space<vmem>>, %arg6: memref<16x128x64xbf16, #tpu.memory_space<vmem>>, %arg7: memref<1x64xf32, #tpu.memory_space<vmem>>, %arg8: memref<9x64x16xbf16, #tpu.memory_space<vmem>>, %arg9: memref<1x16xf32, #tpu.memory_space<vmem>>, %arg10: memref<2x64x16xf32, #tpu.memory_space<vmem>>, %arg11: memref<10x2x10x64xf32, #tpu.memory_space<vmem>>, %arg12: memref<6x12x128xf32, #tpu.memory_space<vmem>>, %arg13: memref<10x2x10x64xf32, #tpu.memory_space<vmem>>) attributes {dimension_semantics = [#tpu.dimension_semantics<arbitrary>], iteration_bounds = array<i64: 1>, scalar_prefetch = 0 : i64, scratch_operands = 3 : i64, tpu.core_type = #tpu.core_type<tc>, window_params = [{pipeline_mode = #tpu.pipeline_mode<synchronous>, transform_indices = @transform_0, window_bounds = array<i64: 128, 54>}, {pipeline_mode = #tpu.pipeline_mode<synchronous>, transform_indices = @transform_1, window_bounds = array<i64: 54, 64>}, {pipeline_mode = #tpu.pipeline_mode<synchronous>, transform_indices = @transform_2, window_bounds = array<i64: 1, 64>}, {pipeline_mode = #tpu.pipeline_mode<synchronous>, transform_indices = @transform_3, window_bounds = array<i64: 9, 64, 128>}, {pipeline_mode = #tpu.pipeline_mode<synchronous>, transform_indices = @transform_4, window_bounds = array<i64: 1, 128>}, {pipeline_mode = #tpu.pipeline_mode<synchronous>, transform_indices = @transform_5, window_bounds = array<i64: 16, 128, 64>}, {pipeline_mode = #tpu.pipeline_mode<synchronous>, transform_indices = @transform_6, window_bounds = array<i64: 1, 64>}, {pipeline_mode = #tpu.pipeline_mode<synchronous>, transform_indices = @transform_7, window_bounds = array<i64: 9, 64, 16>}, {pipeline_mode = #tpu.pipeline_mode<synchronous>, transform_indices = @transform_8, window_bounds = array<i64: 1, 16>}, {pipeline_mode = #tpu.pipeline_mode<synchronous>, transform_indices = @transform_9, window_bounds = array<i64: 2, 64, 16>}]} {
    %cst = arith.constant 0.000000e+00 : f32
    %0 = vector.broadcast %cst : f32 to vector<10x2x10x64xf32>
    %c0 = arith.constant 0 : index
    %c0_0 = arith.constant 0 : index
    %c0_1 = arith.constant 0 : index
    %c0_2 = arith.constant 0 : index
    %1 = vector.load %arg11[%c0, %c0_0, %c0_1, %c0_2] : memref<10x2x10x64xf32, #tpu.memory_space<vmem>>, vector<10x2x10x64xf32>
    tpu.vector_store %arg11[%c0, %c0_0, %c0_1, %c0_2], %0 {strides = array<i32>} : memref<10x2x10x64xf32, #tpu.memory_space<vmem>>, vector<10x2x10x64xf32>,
    %cst_3 = arith.constant 0.000000e+00 : f32
    %2 = vector.broadcast %cst_3 : f32 to vector<6x12x128xf32>
    %c0_4 = arith.constant 0 : index
    %c0_5 = arith.constant 0 : index
    %c0_6 = arith.constant 0 : index
    %3 = vector.load %arg12[%c0_4, %c0_5, %c0_6] : memref<6x12x128xf32, #tpu.memory_space<vmem>>, vector<6x12x128xf32>
    tpu.vector_store %arg12[%c0_4, %c0_5, %c0_6], %2 {strides = array<i32>} : memref<6x12x128xf32, #tpu.memory_space<vmem>>, vector<6x12x128xf32>,
    %cst_7 = arith.constant 0.000000e+00 : f32
    %4 = vector.broadcast %cst_7 : f32 to vector<10x2x10x64xf32>
    %c0_8 = arith.constant 0 : index
    %c0_9 = arith.constant 0 : index
    %c0_10 = arith.constant 0 : index
    %c0_11 = arith.constant 0 : index
    %5 = vector.load %arg13[%c0_8, %c0_9, %c0_10, %c0_11] : memref<10x2x10x64xf32, #tpu.memory_space<vmem>>, vector<10x2x10x64xf32>
    tpu.vector_store %arg13[%c0_8, %c0_9, %c0_10, %c0_11], %4 {strides = array<i32>} : memref<10x2x10x64xf32, #tpu.memory_space<vmem>>, vector<10x2x10x64xf32>,
    %c0_12 = arith.constant 0 : index
    %c0_13 = arith.constant 0 : index
    %6 = vector.load %arg1[%c0_12, %c0_13] : memref<128x54xbf16, #tpu.memory_space<vmem>>, vector<128x54xbf16>
    %c0_14 = arith.constant 0 : index
    %c0_15 = arith.constant 0 : index
    %7 = vector.load %arg2[%c0_14, %c0_15] : memref<54x64xbf16, #tpu.memory_space<vmem>>, vector<54x64xbf16>
    %cst_16 = arith.constant dense<0.000000e+00> : vector<128x64xf32>
    %8 = tpu.matmul %6, %7, %cst_16 {dimension_numbers = #tpu.dot_dimension_numbers<[1], [0], [0], [1], [0, 0, 1, 1], [], []>} : vector<128x54xbf16>, vector<54x64xbf16>, vector<128x64xf32> -> vector<128x64xf32>
    %c0_17 = arith.constant 0 : index
    %c0_18 = arith.constant 0 : index
    %9 = vector.load %arg3[%c0_17, %c0_18] : memref<1x64xf32, #tpu.memory_space<vmem>>, vector<1x64xf32>
    %10 = vector.broadcast %9 : vector<1x64xf32> to vector<128x64xf32>
    %11 = arith.addf %8, %10 : vector<128x64xf32>
    %cst_19 = arith.constant 0.00999999977 : f32
    %12 = vector.broadcast %cst_19 : f32 to vector<128x64xf32>
    %13 = arith.mulf %12, %11 : vector<128x64xf32>
    %14 = arith.maximumf %11, %13 : vector<128x64xf32>
    %15 = vector.extract_strided_slice %14 {offsets = [0, 0], sizes = [8, 64], strides = [1, 1]} : vector<128x64xf32> to vector<8x64xf32>
    %c5 = arith.constant 5 : index
    %c0_20 = arith.constant 0 : index
    %c2 = arith.constant 2 : index
    %c0_21 = arith.constant 0 : index
    %16 = vector.load %arg11[%c5, %c0_20, %c2, %c0_21] : memref<10x2x10x64xf32, #tpu.memory_space<vmem>>, vector<1x1x8x64xf32>
    %17 = vector.shape_cast %16 : vector<1x1x8x64xf32> to vector<8x64xf32>
    %18 = vector.shape_cast %15 : vector<8x64xf32> to vector<1x1x8x64xf32>
    tpu.vector_store %arg11[%c5, %c0_20, %c2, %c0_21], %18 {strides = array<i32>} : memref<10x2x10x64xf32, #tpu.memory_space<vmem>>, vector<1x1x8x64xf32>,
    %19 = vector.extract_strided_slice %14 {offsets = [8, 0], sizes = [8, 64], strides = [1, 1]} : vector<128x64xf32> to vector<8x64xf32>
    %c5_22 = arith.constant 5 : index
    %c1 = arith.constant 1 : index
    %c0_23 = arith.constant 0 : index
    %c0_24 = arith.constant 0 : index
    %20 = vector.load %arg11[%c5_22, %c1, %c0_23, %c0_24] : memref<10x2x10x64xf32, #tpu.memory_space<vmem>>, vector<1x1x8x64xf32>
    %21 = vector.shape_cast %20 : vector<1x1x8x64xf32> to vector<8x64xf32>
    %22 = vector.shape_cast %19 : vector<8x64xf32> to vector<1x1x8x64xf32>
    tpu.vector_store %arg11[%c5_22, %c1, %c0_23, %c0_24], %22 {strides = array<i32>} : memref<10x2x10x64xf32, #tpu.memory_space<vmem>>, vector<1x1x8x64xf32>,
    %23 = vector.extract_strided_slice %14 {offsets = [16, 0], sizes = [8, 64], strides = [1, 1]} : vector<128x64xf32> to vector<8x64xf32>
    %c1_25 = arith.constant 1 : index
    %c0_26 = arith.constant 0 : index
    %c2_27 = arith.constant 2 : index
    %c0_28 = arith.constant 0 : index
    %24 = vector.load %arg11[%c1_25, %c0_26, %c2_27, %c0_28] : memref<10x2x10x64xf32, #tpu.memory_space<vmem>>, vector<1x1x8x64xf32>
    %25 = vector.shape_cast %24 : vector<1x1x8x64xf32> to vector<8x64xf32>
    %26 = vector.shape_cast %23 : vector<8x64xf32> to vector<1x1x8x64xf32>
    tpu.vector_store %arg11[%c1_25, %c0_26, %c2_27, %c0_28], %26 {strides = array<i32>} : memref<10x2x10x64xf32, #tpu.memory_space<vmem>>, vector<1x1x8x64xf32>,
    %27 = vector.extract_strided_slice %14 {offsets = [24, 0], sizes = [8, 64], strides = [1, 1]} : vector<128x64xf32> to vector<8x64xf32>
    %c1_29 = arith.constant 1 : index
    %c1_30 = arith.constant 1 : index
    %c0_31 = arith.constant 0 : index
    %c0_32 = arith.constant 0 : index
    %28 = vector.load %arg11[%c1_29, %c1_30, %c0_31, %c0_32] : memref<10x2x10x64xf32, #tpu.memory_space<vmem>>, vector<1x1x8x64xf32>
    %29 = vector.shape_cast %28 : vector<1x1x8x64xf32> to vector<8x64xf32>
    %30 = vector.shape_cast %27 : vector<8x64xf32> to vector<1x1x8x64xf32>
    tpu.vector_store %arg11[%c1_29, %c1_30, %c0_31, %c0_32], %30 {strides = array<i32>} : memref<10x2x10x64xf32, #tpu.memory_space<vmem>>, vector<1x1x8x64xf32>,
    %31 = vector.extract_strided_slice %14 {offsets = [32, 0], sizes = [8, 64], strides = [1, 1]} : vector<128x64xf32> to vector<8x64xf32>
    %c6 = arith.constant 6 : index
    %c0_33 = arith.constant 0 : index
    %c2_34 = arith.constant 2 : index
    %c0_35 = arith.constant 0 : index
    %32 = vector.load %arg11[%c6, %c0_33, %c2_34, %c0_35] : memref<10x2x10x64xf32, #tpu.memory_space<vmem>>, vector<1x1x8x64xf32>
    %33 = vector.shape_cast %32 : vector<1x1x8x64xf32> to vector<8x64xf32>
    %34 = vector.shape_cast %31 : vector<8x64xf32> to vector<1x1x8x64xf32>
    tpu.vector_store %arg11[%c6, %c0_33, %c2_34, %c0_35], %34 {strides = array<i32>} : memref<10x2x10x64xf32, #tpu.memory_space<vmem>>, vector<1x1x8x64xf32>,
    %35 = vector.extract_strided_slice %14 {offsets = [40, 0], sizes = [8, 64], strides = [1, 1]} : vector<128x64xf32> to vector<8x64xf32>
    %c6_36 = arith.constant 6 : index
    %c1_37 = arith.constant 1 : index
    %c0_38 = arith.constant 0 : index
    %c0_39 = arith.constant 0 : index
    %36 = vector.load %arg11[%c6_36, %c1_37, %c0_38, %c0_39] : memref<10x2x10x64xf32, #tpu.memory_space<vmem>>, vector<1x1x8x64xf32>
    %37 = vector.shape_cast %36 : vector<1x1x8x64xf32> to vector<8x64xf32>
    %38 = vector.shape_cast %35 : vector<8x64xf32> to vector<1x1x8x64xf32>
    tpu.vector_store %arg11[%c6_36, %c1_37, %c0_38, %c0_39], %38 {strides = array<i32>} : memref<10x2x10x64xf32, #tpu.memory_space<vmem>>, vector<1x1x8x64xf32>,
    %39 = vector.extract_strided_slice %14 {offsets = [48, 0], sizes = [8, 64], strides = [1, 1]} : vector<128x64xf32> to vector<8x64xf32>
    %c2_40 = arith.constant 2 : index
    %c0_41 = arith.constant 0 : index
    %c2_42 = arith.constant 2 : index
    %c0_43 = arith.constant 0 : index
    %40 = vector.load %arg11[%c2_40, %c0_41, %c2_42, %c0_43] : memref<10x2x10x64xf32, #tpu.memory_space<vmem>>, vector<1x1x8x64xf32>
    %41 = vector.shape_cast %40 : vector<1x1x8x64xf32> to vector<8x64xf32>
    %42 = vector.shape_cast %39 : vector<8x64xf32> to vector<1x1x8x64xf32>
    tpu.vector_store %arg11[%c2_40, %c0_41, %c2_42, %c0_43], %42 {strides = array<i32>} : memref<10x2x10x64xf32, #tpu.memory_space<vmem>>, vector<1x1x8x64xf32>,
    %43 = vector.extract_strided_slice %14 {offsets = [56, 0], sizes = [8, 64], strides = [1, 1]} : vector<128x64xf32> to vector<8x64xf32>
    %c2_44 = arith.constant 2 : index
    %c1_45 = arith.constant 1 : index
    %c0_46 = arith.constant 0 : index
    %c0_47 = arith.constant 0 : index
    %44 = vector.load %arg11[%c2_44, %c1_45, %c0_46, %c0_47] : memref<10x2x10x64xf32, #tpu.memory_space<vmem>>, vector<1x1x8x64xf32>
    %45 = vector.shape_cast %44 : vector<1x1x8x64xf32> to vector<8x64xf32>
    %46 = vector.shape_cast %43 : vector<8x64xf32> to vector<1x1x8x64xf32>
    tpu.vector_store %arg11[%c2_44, %c1_45, %c0_46, %c0_47], %46 {strides = array<i32>} : memref<10x2x10x64xf32, #tpu.memory_space<vmem>>, vector<1x1x8x64xf32>,
    %47 = vector.extract_strided_slice %14 {offsets = [64, 0], sizes = [8, 64], strides = [1, 1]} : vector<128x64xf32> to vector<8x64xf32>
    %c7 = arith.constant 7 : index
    %c0_48 = arith.constant 0 : index
    %c2_49 = arith.constant 2 : index
    %c0_50 = arith.constant 0 : index
    %48 = vector.load %arg11[%c7, %c0_48, %c2_49, %c0_50] : memref<10x2x10x64xf32, #tpu.memory_space<vmem>>, vector<1x1x8x64xf32>
    %49 = vector.shape_cast %48 : vector<1x1x8x64xf32> to vector<8x64xf32>
    %50 = vector.shape_cast %47 : vector<8x64xf32> to vector<1x1x8x64xf32>
    tpu.vector_store %arg11[%c7, %c0_48, %c2_49, %c0_50], %50 {strides = array<i32>} : memref<10x2x10x64xf32, #tpu.memory_space<vmem>>, vector<1x1x8x64xf32>,
    %51 = vector.extract_strided_slice %14 {offsets = [72, 0], sizes = [8, 64], strides = [1, 1]} : vector<128x64xf32> to vector<8x64xf32>
    %c7_51 = arith.constant 7 : index
    %c1_52 = arith.constant 1 : index
    %c0_53 = arith.constant 0 : index
    %c0_54 = arith.constant 0 : index
    %52 = vector.load %arg11[%c7_51, %c1_52, %c0_53, %c0_54] : memref<10x2x10x64xf32, #tpu.memory_space<vmem>>, vector<1x1x8x64xf32>
    %53 = vector.shape_cast %52 : vector<1x1x8x64xf32> to vector<8x64xf32>
    %54 = vector.shape_cast %51 : vector<8x64xf32> to vector<1x1x8x64xf32>
    tpu.vector_store %arg11[%c7_51, %c1_52, %c0_53, %c0_54], %54 {strides = array<i32>} : memref<10x2x10x64xf32, #tpu.memory_space<vmem>>, vector<1x1x8x64xf32>,
    %55 = vector.extract_strided_slice %14 {offsets = [80, 0], sizes = [8, 64], strides = [1, 1]} : vector<128x64xf32> to vector<8x64xf32>
    %c3 = arith.constant 3 : index
    %c0_55 = arith.constant 0 : index
    %c2_56 = arith.constant 2 : index
    %c0_57 = arith.constant 0 : index
    %56 = vector.load %arg11[%c3, %c0_55, %c2_56, %c0_57] : memref<10x2x10x64xf32, #tpu.memory_space<vmem>>, vector<1x1x8x64xf32>
    %57 = vector.shape_cast %56 : vector<1x1x8x64xf32> to vector<8x64xf32>
    %58 = vector.shape_cast %55 : vector<8x64xf32> to vector<1x1x8x64xf32>
    tpu.vector_store %arg11[%c3, %c0_55, %c2_56, %c0_57], %58 {strides = array<i32>} : memref<10x2x10x64xf32, #tpu.memory_space<vmem>>, vector<1x1x8x64xf32>,
    %59 = vector.extract_strided_slice %14 {offsets = [88, 0], sizes = [8, 64], strides = [1, 1]} : vector<128x64xf32> to vector<8x64xf32>
    %c3_58 = arith.constant 3 : index
    %c1_59 = arith.constant 1 : index
    %c0_60 = arith.constant 0 : index
    %c0_61 = arith.constant 0 : index
    %60 = vector.load %arg11[%c3_58, %c1_59, %c0_60, %c0_61] : memref<10x2x10x64xf32, #tpu.memory_space<vmem>>, vector<1x1x8x64xf32>
    %61 = vector.shape_cast %60 : vector<1x1x8x64xf32> to vector<8x64xf32>
    %62 = vector.shape_cast %59 : vector<8x64xf32> to vector<1x1x8x64xf32>
    tpu.vector_store %arg11[%c3_58, %c1_59, %c0_60, %c0_61], %62 {strides = array<i32>} : memref<10x2x10x64xf32, #tpu.memory_space<vmem>>, vector<1x1x8x64xf32>,
    %63 = vector.extract_strided_slice %14 {offsets = [96, 0], sizes = [8, 64], strides = [1, 1]} : vector<128x64xf32> to vector<8x64xf32>
    %c8 = arith.constant 8 : index
    %c0_62 = arith.constant 0 : index
    %c2_63 = arith.constant 2 : index
    %c0_64 = arith.constant 0 : index
    %64 = vector.load %arg11[%c8, %c0_62, %c2_63, %c0_64] : memref<10x2x10x64xf32, #tpu.memory_space<vmem>>, vector<1x1x8x64xf32>
    %65 = vector.shape_cast %64 : vector<1x1x8x64xf32> to vector<8x64xf32>
    %66 = vector.shape_cast %63 : vector<8x64xf32> to vector<1x1x8x64xf32>
    tpu.vector_store %arg11[%c8, %c0_62, %c2_63, %c0_64], %66 {strides = array<i32>} : memref<10x2x10x64xf32, #tpu.memory_space<vmem>>, vector<1x1x8x64xf32>,
    %67 = vector.extract_strided_slice %14 {offsets = [104, 0], sizes = [8, 64], strides = [1, 1]} : vector<128x64xf32> to vector<8x64xf32>
    %c8_65 = arith.constant 8 : index
    %c1_66 = arith.constant 1 : index
    %c0_67 = arith.constant 0 : index
    %c0_68 = arith.constant 0 : index
    %68 = vector.load %arg11[%c8_65, %c1_66, %c0_67, %c0_68] : memref<10x2x10x64xf32, #tpu.memory_space<vmem>>, vector<1x1x8x64xf32>
    %69 = vector.shape_cast %68 : vector<1x1x8x64xf32> to vector<8x64xf32>
    %70 = vector.shape_cast %67 : vector<8x64xf32> to vector<1x1x8x64xf32>
    tpu.vector_store %arg11[%c8_65, %c1_66, %c0_67, %c0_68], %70 {strides = array<i32>} : memref<10x2x10x64xf32, #tpu.memory_space<vmem>>, vector<1x1x8x64xf32>,
    %71 = vector.extract_strided_slice %14 {offsets = [112, 0], sizes = [8, 64], strides = [1, 1]} : vector<128x64xf32> to vector<8x64xf32>
    %c4 = arith.constant 4 : index
    %c0_69 = arith.constant 0 : index
    %c2_70 = arith.constant 2 : index
    %c0_71 = arith.constant 0 : index
    %72 = vector.load %arg11[%c4, %c0_69, %c2_70, %c0_71] : memref<10x2x10x64xf32, #tpu.memory_space<vmem>>, vector<1x1x8x64xf32>
    %73 = vector.shape_cast %72 : vector<1x1x8x64xf32> to vector<8x64xf32>
    %74 = vector.shape_cast %71 : vector<8x64xf32> to vector<1x1x8x64xf32>
    tpu.vector_store %arg11[%c4, %c0_69, %c2_70, %c0_71], %74 {strides = array<i32>} : memref<10x2x10x64xf32, #tpu.memory_space<vmem>>, vector<1x1x8x64xf32>,
    %75 = vector.extract_strided_slice %14 {offsets = [120, 0], sizes = [8, 64], strides = [1, 1]} : vector<128x64xf32> to vector<8x64xf32>
    %c4_72 = arith.constant 4 : index
    %c1_73 = arith.constant 1 : index
    %c0_74 = arith.constant 0 : index
    %c0_75 = arith.constant 0 : index
    %76 = vector.load %arg11[%c4_72, %c1_73, %c0_74, %c0_75] : memref<10x2x10x64xf32, #tpu.memory_space<vmem>>, vector<1x1x8x64xf32>
    %77 = vector.shape_cast %76 : vector<1x1x8x64xf32> to vector<8x64xf32>
    %78 = vector.shape_cast %75 : vector<8x64xf32> to vector<1x1x8x64xf32>
    tpu.vector_store %arg11[%c4_72, %c1_73, %c0_74, %c0_75], %78 {strides = array<i32>} : memref<10x2x10x64xf32, #tpu.memory_space<vmem>>, vector<1x1x8x64xf32>,
    %cst_76 = arith.constant 0.000000e+00 : f32
    %79 = vector.broadcast %cst_76 : f32 to vector<32x128xf32>
    %c0_77 = arith.constant 0 : index
    %c0_78 = arith.constant 0 : index
    %c0_79 = arith.constant 0 : index
    %c0_80 = arith.constant 0 : index
    %80 = vector.load %arg11[%c0_77, %c0_78, %c0_79, %c0_80] : memref<10x2x10x64xf32, #tpu.memory_space<vmem>>, vector<4x1x8x64xf32>
    %81 = vector.shape_cast %80 : vector<4x1x8x64xf32> to vector<4x8x64xf32>
    %82 = vector.shape_cast %81 : vector<4x8x64xf32> to vector<32x64xf32>
    %83 = arith.truncf %82 : vector<32x64xf32> to vector<32x64xbf16>
    %c0_81 = arith.constant 0 : index
    %c0_82 = arith.constant 0 : index
    %c0_83 = arith.constant 0 : index
    %84 = vector.load %arg4[%c0_81, %c0_82, %c0_83] : memref<9x64x128xbf16, #tpu.memory_space<vmem>>, vector<1x64x128xbf16>
    %85 = vector.shape_cast %84 : vector<1x64x128xbf16> to vector<64x128xbf16>
    %cst_84 = arith.constant dense<0.000000e+00> : vector<32x128xf32>
    %86 = tpu.matmul %83, %85, %cst_84 {dimension_numbers = #tpu.dot_dimension_numbers<[1], [0], [0], [1], [0, 0, 1, 1], [], []>} : vector<32x64xbf16>, vector<64x128xbf16>, vector<32x128xf32> -> vector<32x128xf32>
    %87 = arith.addf %79, %86 : vector<32x128xf32>
    %c0_85 = arith.constant 0 : index
    %c1_86 = arith.constant 1 : index
    %c0_87 = arith.constant 0 : index
    %c0_88 = arith.constant 0 : index
    %88 = vector.load %arg11[%c0_85, %c1_86, %c0_87, %c0_88] : memref<10x2x10x64xf32, #tpu.memory_space<vmem>>, vector<4x1x8x64xf32>
    %89 = vector.shape_cast %88 : vector<4x1x8x64xf32> to vector<4x8x64xf32>
    %90 = vector.shape_cast %89 : vector<4x8x64xf32> to vector<32x64xf32>
    %91 = arith.truncf %90 : vector<32x64xf32> to vector<32x64xbf16>
    %c1_89 = arith.constant 1 : index
    %c0_90 = arith.constant 0 : index
    %c0_91 = arith.constant 0 : index
    %92 = vector.load %arg4[%c1_89, %c0_90, %c0_91] : memref<9x64x128xbf16, #tpu.memory_space<vmem>>, vector<1x64x128xbf16>
    %93 = vector.shape_cast %92 : vector<1x64x128xbf16> to vector<64x128xbf16>
    %cst_92 = arith.constant dense<0.000000e+00> : vector<32x128xf32>
    %94 = tpu.matmul %91, %93, %cst_92 {dimension_numbers = #tpu.dot_dimension_numbers<[1], [0], [0], [1], [0, 0, 1, 1], [], []>} : vector<32x64xbf16>, vector<64x128xbf16>, vector<32x128xf32> -> vector<32x128xf32>
    %95 = arith.addf %87, %94 : vector<32x128xf32>
    %c0_93 = arith.constant 0 : index
    %c0_94 = arith.constant 0 : index
    %c2_95 = arith.constant 2 : index
    %c0_96 = arith.constant 0 : index
    %96 = vector.load %arg11[%c0_93, %c0_94, %c2_95, %c0_96] : memref<10x2x10x64xf32, #tpu.memory_space<vmem>>, vector<4x1x8x64xf32>
    %97 = vector.shape_cast %96 : vector<4x1x8x64xf32> to vector<4x8x64xf32>
    %98 = vector.shape_cast %97 : vector<4x8x64xf32> to vector<32x64xf32>
    %99 = arith.truncf %98 : vector<32x64xf32> to vector<32x64xbf16>
    %c2_97 = arith.constant 2 : index
    %c0_98 = arith.constant 0 : index
    %c0_99 = arith.constant 0 : index
    %100 = vector.load %arg4[%c2_97, %c0_98, %c0_99] : memref<9x64x128xbf16, #tpu.memory_space<vmem>>, vector<1x64x128xbf16>
    %101 = vector.shape_cast %100 : vector<1x64x128xbf16> to vector<64x128xbf16>
    %cst_100 = arith.constant dense<0.000000e+00> : vector<32x128xf32>
    %102 = tpu.matmul %99, %101, %cst_100 {dimension_numbers = #tpu.dot_dimension_numbers<[1], [0], [0], [1], [0, 0, 1, 1], [], []>} : vector<32x64xbf16>, vector<64x128xbf16>, vector<32x128xf32> -> vector<32x128xf32>
    %103 = arith.addf %95, %102 : vector<32x128xf32>
    %c5_101 = arith.constant 5 : index
    %c0_102 = arith.constant 0 : index
    %c0_103 = arith.constant 0 : index
    %c0_104 = arith.constant 0 : index
    %104 = vector.load %arg11[%c5_101, %c0_102, %c0_103, %c0_104] : memref<10x2x10x64xf32, #tpu.memory_space<vmem>>, vector<4x1x8x64xf32>
    %105 = vector.shape_cast %104 : vector<4x1x8x64xf32> to vector<4x8x64xf32>
    %106 = vector.shape_cast %105 : vector<4x8x64xf32> to vector<32x64xf32>
    %107 = arith.truncf %106 : vector<32x64xf32> to vector<32x64xbf16>
    %c3_105 = arith.constant 3 : index
    %c0_106 = arith.constant 0 : index
    %c0_107 = arith.constant 0 : index
    %108 = vector.load %arg4[%c3_105, %c0_106, %c0_107] : memref<9x64x128xbf16, #tpu.memory_space<vmem>>, vector<1x64x128xbf16>
    %109 = vector.shape_cast %108 : vector<1x64x128xbf16> to vector<64x128xbf16>
    %cst_108 = arith.constant dense<0.000000e+00> : vector<32x128xf32>
    %110 = tpu.matmul %107, %109, %cst_108 {dimension_numbers = #tpu.dot_dimension_numbers<[1], [0], [0], [1], [0, 0, 1, 1], [], []>} : vector<32x64xbf16>, vector<64x128xbf16>, vector<32x128xf32> -> vector<32x128xf32>
    %111 = arith.addf %103, %110 : vector<32x128xf32>
    %c5_109 = arith.constant 5 : index
    %c1_110 = arith.constant 1 : index
    %c0_111 = arith.constant 0 : index
    %c0_112 = arith.constant 0 : index
    %112 = vector.load %arg11[%c5_109, %c1_110, %c0_111, %c0_112] : memref<10x2x10x64xf32, #tpu.memory_space<vmem>>, vector<4x1x8x64xf32>
    %113 = vector.shape_cast %112 : vector<4x1x8x64xf32> to vector<4x8x64xf32>
    %114 = vector.shape_cast %113 : vector<4x8x64xf32> to vector<32x64xf32>
    %115 = arith.truncf %114 : vector<32x64xf32> to vector<32x64xbf16>
    %c4_113 = arith.constant 4 : index
    %c0_114 = arith.constant 0 : index
    %c0_115 = arith.constant 0 : index
    %116 = vector.load %arg4[%c4_113, %c0_114, %c0_115] : memref<9x64x128xbf16, #tpu.memory_space<vmem>>, vector<1x64x128xbf16>
    %117 = vector.shape_cast %116 : vector<1x64x128xbf16> to vector<64x128xbf16>
    %cst_116 = arith.constant dense<0.000000e+00> : vector<32x128xf32>
    %118 = tpu.matmul %115, %117, %cst_116 {dimension_numbers = #tpu.dot_dimension_numbers<[1], [0], [0], [1], [0, 0, 1, 1], [], []>} : vector<32x64xbf16>, vector<64x128xbf16>, vector<32x128xf32> -> vector<32x128xf32>
    %119 = arith.addf %111, %118 : vector<32x128xf32>
    %c5_117 = arith.constant 5 : index
    %c0_118 = arith.constant 0 : index
    %c2_119 = arith.constant 2 : index
    %c0_120 = arith.constant 0 : index
    %120 = vector.load %arg11[%c5_117, %c0_118, %c2_119, %c0_120] : memref<10x2x10x64xf32, #tpu.memory_space<vmem>>, vector<4x1x8x64xf32>
    %121 = vector.shape_cast %120 : vector<4x1x8x64xf32> to vector<4x8x64xf32>
    %122 = vector.shape_cast %121 : vector<4x8x64xf32> to vector<32x64xf32>
    %123 = arith.truncf %122 : vector<32x64xf32> to vector<32x64xbf16>
    %c5_121 = arith.constant 5 : index
    %c0_122 = arith.constant 0 : index
    %c0_123 = arith.constant 0 : index
    %124 = vector.load %arg4[%c5_121, %c0_122, %c0_123] : memref<9x64x128xbf16, #tpu.memory_space<vmem>>, vector<1x64x128xbf16>
    %125 = vector.shape_cast %124 : vector<1x64x128xbf16> to vector<64x128xbf16>
    %cst_124 = arith.constant dense<0.000000e+00> : vector<32x128xf32>
    %126 = tpu.matmul %123, %125, %cst_124 {dimension_numbers = #tpu.dot_dimension_numbers<[1], [0], [0], [1], [0, 0, 1, 1], [], []>} : vector<32x64xbf16>, vector<64x128xbf16>, vector<32x128xf32> -> vector<32x128xf32>
    %127 = arith.addf %119, %126 : vector<32x128xf32>
    %c1_125 = arith.constant 1 : index
    %c0_126 = arith.constant 0 : index
    %c0_127 = arith.constant 0 : index
    %c0_128 = arith.constant 0 : index
    %128 = vector.load %arg11[%c1_125, %c0_126, %c0_127, %c0_128] : memref<10x2x10x64xf32, #tpu.memory_space<vmem>>, vector<4x1x8x64xf32>
    %129 = vector.shape_cast %128 : vector<4x1x8x64xf32> to vector<4x8x64xf32>
    %130 = vector.shape_cast %129 : vector<4x8x64xf32> to vector<32x64xf32>
    %131 = arith.truncf %130 : vector<32x64xf32> to vector<32x64xbf16>
    %c6_129 = arith.constant 6 : index
    %c0_130 = arith.constant 0 : index
    %c0_131 = arith.constant 0 : index
    %132 = vector.load %arg4[%c6_129, %c0_130, %c0_131] : memref<9x64x128xbf16, #tpu.memory_space<vmem>>, vector<1x64x128xbf16>
    %133 = vector.shape_cast %132 : vector<1x64x128xbf16> to vector<64x128xbf16>
    %cst_132 = arith.constant dense<0.000000e+00> : vector<32x128xf32>
    %134 = tpu.matmul %131, %133, %cst_132 {dimension_numbers = #tpu.dot_dimension_numbers<[1], [0], [0], [1], [0, 0, 1, 1], [], []>} : vector<32x64xbf16>, vector<64x128xbf16>, vector<32x128xf32> -> vector<32x128xf32>
    %135 = arith.addf %127, %134 : vector<32x128xf32>
    %c1_133 = arith.constant 1 : index
    %c1_134 = arith.constant 1 : index
    %c0_135 = arith.constant 0 : index
    %c0_136 = arith.constant 0 : index
    %136 = vector.load %arg11[%c1_133, %c1_134, %c0_135, %c0_136] : memref<10x2x10x64xf32, #tpu.memory_space<vmem>>, vector<4x1x8x64xf32>
    %137 = vector.shape_cast %136 : vector<4x1x8x64xf32> to vector<4x8x64xf32>
    %138 = vector.shape_cast %137 : vector<4x8x64xf32> to vector<32x64xf32>
    %139 = arith.truncf %138 : vector<32x64xf32> to vector<32x64xbf16>
    %c7_137 = arith.constant 7 : index
    %c0_138 = arith.constant 0 : index
    %c0_139 = arith.constant 0 : index
    %140 = vector.load %arg4[%c7_137, %c0_138, %c0_139] : memref<9x64x128xbf16, #tpu.memory_space<vmem>>, vector<1x64x128xbf16>
    %141 = vector.shape_cast %140 : vector<1x64x128xbf16> to vector<64x128xbf16>
    %cst_140 = arith.constant dense<0.000000e+00> : vector<32x128xf32>
    %142 = tpu.matmul %139, %141, %cst_140 {dimension_numbers = #tpu.dot_dimension_numbers<[1], [0], [0], [1], [0, 0, 1, 1], [], []>} : vector<32x64xbf16>, vector<64x128xbf16>, vector<32x128xf32> -> vector<32x128xf32>
    %143 = arith.addf %135, %142 : vector<32x128xf32>
    %c1_141 = arith.constant 1 : index
    %c0_142 = arith.constant 0 : index
    %c2_143 = arith.constant 2 : index
    %c0_144 = arith.constant 0 : index
    %144 = vector.load %arg11[%c1_141, %c0_142, %c2_143, %c0_144] : memref<10x2x10x64xf32, #tpu.memory_space<vmem>>, vector<4x1x8x64xf32>
    %145 = vector.shape_cast %144 : vector<4x1x8x64xf32> to vector<4x8x64xf32>
    %146 = vector.shape_cast %145 : vector<4x8x64xf32> to vector<32x64xf32>
    %147 = arith.truncf %146 : vector<32x64xf32> to vector<32x64xbf16>
    %c8_145 = arith.constant 8 : index
    %c0_146 = arith.constant 0 : index
    %c0_147 = arith.constant 0 : index
    %148 = vector.load %arg4[%c8_145, %c0_146, %c0_147] : memref<9x64x128xbf16, #tpu.memory_space<vmem>>, vector<1x64x128xbf16>
    %149 = vector.shape_cast %148 : vector<1x64x128xbf16> to vector<64x128xbf16>
    %cst_148 = arith.constant dense<0.000000e+00> : vector<32x128xf32>
    %150 = tpu.matmul %147, %149, %cst_148 {dimension_numbers = #tpu.dot_dimension_numbers<[1], [0], [0], [1], [0, 0, 1, 1], [], []>} : vector<32x64xbf16>, vector<64x128xbf16>, vector<32x128xf32> -> vector<32x128xf32>
    %151 = arith.addf %143, %150 : vector<32x128xf32>
    %c0_149 = arith.constant 0 : index
    %c0_150 = arith.constant 0 : index
    %152 = vector.load %arg5[%c0_149, %c0_150] : memref<1x128xf32, #tpu.memory_space<vmem>>, vector<1x128xf32>
    %153 = vector.broadcast %152 : vector<1x128xf32> to vector<32x128xf32>
    %154 = arith.addf %151, %153 : vector<32x128xf32>
    %cst_151 = arith.constant 0.00999999977 : f32
    %155 = vector.broadcast %cst_151 : f32 to vector<32x128xf32>
    %156 = arith.mulf %155, %154 : vector<32x128xf32>
    %157 = arith.maximumf %154, %156 : vector<32x128xf32>
    %158 = vector.extract_strided_slice %157 {offsets = [0, 0], sizes = [8, 128], strides = [1, 1]} : vector<32x128xf32> to vector<8x128xf32>
    %c1_152 = arith.constant 1 : index
    %c2_153 = arith.constant 2 : index
    %c0_154 = arith.constant 0 : index
    %159 = vector.load %arg12[%c1_152, %c2_153, %c0_154] : memref<6x12x128xf32, #tpu.memory_space<vmem>>, vector<1x8x128xf32>
    %160 = vector.shape_cast %159 : vector<1x8x128xf32> to vector<8x128xf32>
    %161 = vector.shape_cast %158 : vector<8x128xf32> to vector<1x8x128xf32>
    tpu.vector_store %arg12[%c1_152, %c2_153, %c0_154], %161 {strides = array<i32>} : memref<6x12x128xf32, #tpu.memory_space<vmem>>, vector<1x8x128xf32>,
    %162 = vector.extract_strided_slice %157 {offsets = [8, 0], sizes = [8, 128], strides = [1, 1]} : vector<32x128xf32> to vector<8x128xf32>
    %c2_155 = arith.constant 2 : index
    %c2_156 = arith.constant 2 : index
    %c0_157 = arith.constant 0 : index
    %163 = vector.load %arg12[%c2_155, %c2_156, %c0_157] : memref<6x12x128xf32, #tpu.memory_space<vmem>>, vector<1x8x128xf32>
    %164 = vector.shape_cast %163 : vector<1x8x128xf32> to vector<8x128xf32>
    %165 = vector.shape_cast %162 : vector<8x128xf32> to vector<1x8x128xf32>
    tpu.vector_store %arg12[%c2_155, %c2_156, %c0_157], %165 {strides = array<i32>} : memref<6x12x128xf32, #tpu.memory_space<vmem>>, vector<1x8x128xf32>,
    %166 = vector.extract_strided_slice %157 {offsets = [16, 0], sizes = [8, 128], strides = [1, 1]} : vector<32x128xf32> to vector<8x128xf32>
    %c3_158 = arith.constant 3 : index
    %c2_159 = arith.constant 2 : index
    %c0_160 = arith.constant 0 : index
    %167 = vector.load %arg12[%c3_158, %c2_159, %c0_160] : memref<6x12x128xf32, #tpu.memory_space<vmem>>, vector<1x8x128xf32>
    %168 = vector.shape_cast %167 : vector<1x8x128xf32> to vector<8x128xf32>
    %169 = vector.shape_cast %166 : vector<8x128xf32> to vector<1x8x128xf32>
    tpu.vector_store %arg12[%c3_158, %c2_159, %c0_160], %169 {strides = array<i32>} : memref<6x12x128xf32, #tpu.memory_space<vmem>>, vector<1x8x128xf32>,
    %170 = vector.extract_strided_slice %157 {offsets = [24, 0], sizes = [8, 128], strides = [1, 1]} : vector<32x128xf32> to vector<8x128xf32>
    %c4_161 = arith.constant 4 : index
    %c2_162 = arith.constant 2 : index
    %c0_163 = arith.constant 0 : index
    %171 = vector.load %arg12[%c4_161, %c2_162, %c0_163] : memref<6x12x128xf32, #tpu.memory_space<vmem>>, vector<1x8x128xf32>
    %172 = vector.shape_cast %171 : vector<1x8x128xf32> to vector<8x128xf32>
    %173 = vector.shape_cast %170 : vector<8x128xf32> to vector<1x8x128xf32>
    tpu.vector_store %arg12[%c4_161, %c2_162, %c0_163], %173 {strides = array<i32>} : memref<6x12x128xf32, #tpu.memory_space<vmem>>, vector<1x8x128xf32>,
    %cst_164 = arith.constant 0.000000e+00 : f32
    %174 = vector.broadcast %cst_164 : f32 to vector<32x64xf32>
    %c0_165 = arith.constant 0 : index
    %c0_166 = arith.constant 0 : index
    %c0_167 = arith.constant 0 : index
    %175 = vector.load %arg12[%c0_165, %c0_166, %c0_167] : memref<6x12x128xf32, #tpu.memory_space<vmem>>, vector<4x8x128xf32>
    %176 = vector.shape_cast %175 : vector<4x8x128xf32> to vector<32x128xf32>
    %177 = arith.truncf %176 : vector<32x128xf32> to vector<32x128xbf16>
    %c0_168 = arith.constant 0 : index
    %c0_169 = arith.constant 0 : index
    %c0_170 = arith.constant 0 : index
    %178 = vector.load %arg6[%c0_168, %c0_169, %c0_170] : memref<16x128x64xbf16, #tpu.memory_space<vmem>>, vector<1x128x64xbf16>
    %179 = vector.shape_cast %178 : vector<1x128x64xbf16> to vector<128x64xbf16>
    %cst_171 = arith.constant dense<0.000000e+00> : vector<32x64xf32>
    %180 = tpu.matmul %177, %179, %cst_171 {dimension_numbers = #tpu.dot_dimension_numbers<[1], [0], [0], [1], [0, 0, 1, 1], [], []>} : vector<32x128xbf16>, vector<128x64xbf16>, vector<32x64xf32> -> vector<32x64xf32>
    %181 = arith.addf %174, %180 : vector<32x64xf32>
    %c0_172 = arith.constant 0 : index
    %c2_173 = arith.constant 2 : index
    %c0_174 = arith.constant 0 : index
    %182 = vector.load %arg12[%c0_172, %c2_173, %c0_174] : memref<6x12x128xf32, #tpu.memory_space<vmem>>, vector<4x8x128xf32>
    %183 = vector.shape_cast %182 : vector<4x8x128xf32> to vector<32x128xf32>
    %184 = arith.truncf %183 : vector<32x128xf32> to vector<32x128xbf16>
    %c1_175 = arith.constant 1 : index
    %c0_176 = arith.constant 0 : index
    %c0_177 = arith.constant 0 : index
    %185 = vector.load %arg6[%c1_175, %c0_176, %c0_177] : memref<16x128x64xbf16, #tpu.memory_space<vmem>>, vector<1x128x64xbf16>
    %186 = vector.shape_cast %185 : vector<1x128x64xbf16> to vector<128x64xbf16>
    %cst_178 = arith.constant dense<0.000000e+00> : vector<32x64xf32>
    %187 = tpu.matmul %184, %186, %cst_178 {dimension_numbers = #tpu.dot_dimension_numbers<[1], [0], [0], [1], [0, 0, 1, 1], [], []>} : vector<32x128xbf16>, vector<128x64xbf16>, vector<32x64xf32> -> vector<32x64xf32>
    %188 = arith.addf %181, %187 : vector<32x64xf32>
    %c1_179 = arith.constant 1 : index
    %c0_180 = arith.constant 0 : index
    %c0_181 = arith.constant 0 : index
    %189 = vector.load %arg12[%c1_179, %c0_180, %c0_181] : memref<6x12x128xf32, #tpu.memory_space<vmem>>, vector<4x8x128xf32>
    %190 = vector.shape_cast %189 : vector<4x8x128xf32> to vector<32x128xf32>
    %191 = arith.truncf %190 : vector<32x128xf32> to vector<32x128xbf16>
    %c2_182 = arith.constant 2 : index
    %c0_183 = arith.constant 0 : index
    %c0_184 = arith.constant 0 : index
    %192 = vector.load %arg6[%c2_182, %c0_183, %c0_184] : memref<16x128x64xbf16, #tpu.memory_space<vmem>>, vector<1x128x64xbf16>
    %193 = vector.shape_cast %192 : vector<1x128x64xbf16> to vector<128x64xbf16>
    %cst_185 = arith.constant dense<0.000000e+00> : vector<32x64xf32>
    %194 = tpu.matmul %191, %193, %cst_185 {dimension_numbers = #tpu.dot_dimension_numbers<[1], [0], [0], [1], [0, 0, 1, 1], [], []>} : vector<32x128xbf16>, vector<128x64xbf16>, vector<32x64xf32> -> vector<32x64xf32>
    %195 = arith.addf %188, %194 : vector<32x64xf32>
    %c1_186 = arith.constant 1 : index
    %c2_187 = arith.constant 2 : index
    %c0_188 = arith.constant 0 : index
    %196 = vector.load %arg12[%c1_186, %c2_187, %c0_188] : memref<6x12x128xf32, #tpu.memory_space<vmem>>, vector<4x8x128xf32>
    %197 = vector.shape_cast %196 : vector<4x8x128xf32> to vector<32x128xf32>
    %198 = arith.truncf %197 : vector<32x128xf32> to vector<32x128xbf16>
    %c3_189 = arith.constant 3 : index
    %c0_190 = arith.constant 0 : index
    %c0_191 = arith.constant 0 : index
    %199 = vector.load %arg6[%c3_189, %c0_190, %c0_191] : memref<16x128x64xbf16, #tpu.memory_space<vmem>>, vector<1x128x64xbf16>
    %200 = vector.shape_cast %199 : vector<1x128x64xbf16> to vector<128x64xbf16>
    %cst_192 = arith.constant dense<0.000000e+00> : vector<32x64xf32>
    %201 = tpu.matmul %198, %200, %cst_192 {dimension_numbers = #tpu.dot_dimension_numbers<[1], [0], [0], [1], [0, 0, 1, 1], [], []>} : vector<32x128xbf16>, vector<128x64xbf16>, vector<32x64xf32> -> vector<32x64xf32>
    %202 = arith.addf %195, %201 : vector<32x64xf32>
    %c0_193 = arith.constant 0 : index
    %c0_194 = arith.constant 0 : index
    %203 = vector.load %arg7[%c0_193, %c0_194] : memref<1x64xf32, #tpu.memory_space<vmem>>, vector<1x64xf32>
    %204 = vector.broadcast %203 : vector<1x64xf32> to vector<32x64xf32>
    %205 = arith.addf %202, %204 : vector<32x64xf32>
    %cst_195 = arith.constant 0.00999999977 : f32
    %206 = vector.broadcast %cst_195 : f32 to vector<32x64xf32>
    %207 = arith.mulf %206, %205 : vector<32x64xf32>
    %208 = arith.maximumf %205, %207 : vector<32x64xf32>
    %209 = vector.extract_strided_slice %208 {offsets = [0, 0], sizes = [8, 64], strides = [1, 1]} : vector<32x64xf32> to vector<8x64xf32>
    %c1_196 = arith.constant 1 : index
    %c1_197 = arith.constant 1 : index
    %c0_198 = arith.constant 0 : index
    %c0_199 = arith.constant 0 : index
    %210 = vector.load %arg13[%c1_196, %c1_197, %c0_198, %c0_199] : memref<10x2x10x64xf32, #tpu.memory_space<vmem>>, vector<1x1x8x64xf32>
    %211 = vector.shape_cast %210 : vector<1x1x8x64xf32> to vector<8x64xf32>
    %212 = vector.shape_cast %209 : vector<8x64xf32> to vector<1x1x8x64xf32>
    tpu.vector_store %arg13[%c1_196, %c1_197, %c0_198, %c0_199], %212 {strides = array<i32>} : memref<10x2x10x64xf32, #tpu.memory_space<vmem>>, vector<1x1x8x64xf32>,
    %213 = vector.extract_strided_slice %208 {offsets = [8, 0], sizes = [8, 64], strides = [1, 1]} : vector<32x64xf32> to vector<8x64xf32>
    %c3_200 = arith.constant 3 : index
    %c1_201 = arith.constant 1 : index
    %c0_202 = arith.constant 0 : index
    %c0_203 = arith.constant 0 : index
    %214 = vector.load %arg13[%c3_200, %c1_201, %c0_202, %c0_203] : memref<10x2x10x64xf32, #tpu.memory_space<vmem>>, vector<1x1x8x64xf32>
    %215 = vector.shape_cast %214 : vector<1x1x8x64xf32> to vector<8x64xf32>
    %216 = vector.shape_cast %213 : vector<8x64xf32> to vector<1x1x8x64xf32>
    tpu.vector_store %arg13[%c3_200, %c1_201, %c0_202, %c0_203], %216 {strides = array<i32>} : memref<10x2x10x64xf32, #tpu.memory_space<vmem>>, vector<1x1x8x64xf32>,
    %217 = vector.extract_strided_slice %208 {offsets = [16, 0], sizes = [8, 64], strides = [1, 1]} : vector<32x64xf32> to vector<8x64xf32>
    %c5_204 = arith.constant 5 : index
    %c1_205 = arith.constant 1 : index
    %c0_206 = arith.constant 0 : index
    %c0_207 = arith.constant 0 : index
    %218 = vector.load %arg13[%c5_204, %c1_205, %c0_206, %c0_207] : memref<10x2x10x64xf32, #tpu.memory_space<vmem>>, vector<1x1x8x64xf32>
    %219 = vector.shape_cast %218 : vector<1x1x8x64xf32> to vector<8x64xf32>
    %220 = vector.shape_cast %217 : vector<8x64xf32> to vector<1x1x8x64xf32>
    tpu.vector_store %arg13[%c5_204, %c1_205, %c0_206, %c0_207], %220 {strides = array<i32>} : memref<10x2x10x64xf32, #tpu.memory_space<vmem>>, vector<1x1x8x64xf32>,
    %221 = vector.extract_strided_slice %208 {offsets = [24, 0], sizes = [8, 64], strides = [1, 1]} : vector<32x64xf32> to vector<8x64xf32>
    %c7_208 = arith.constant 7 : index
    %c1_209 = arith.constant 1 : index
    %c0_210 = arith.constant 0 : index
    %c0_211 = arith.constant 0 : index
    %222 = vector.load %arg13[%c7_208, %c1_209, %c0_210, %c0_211] : memref<10x2x10x64xf32, #tpu.memory_space<vmem>>, vector<1x1x8x64xf32>
    %223 = vector.shape_cast %222 : vector<1x1x8x64xf32> to vector<8x64xf32>
    %224 = vector.shape_cast %221 : vector<8x64xf32> to vector<1x1x8x64xf32>
    tpu.vector_store %arg13[%c7_208, %c1_209, %c0_210, %c0_211], %224 {strides = array<i32>} : memref<10x2x10x64xf32, #tpu.memory_space<vmem>>, vector<1x1x8x64xf32>,
    %cst_212 = arith.constant 0.000000e+00 : f32
    %225 = vector.broadcast %cst_212 : f32 to vector<32x64xf32>
    %c0_213 = arith.constant 0 : index
    %c2_214 = arith.constant 2 : index
    %c0_215 = arith.constant 0 : index
    %226 = vector.load %arg12[%c0_213, %c2_214, %c0_215] : memref<6x12x128xf32, #tpu.memory_space<vmem>>, vector<4x8x128xf32>
    %227 = vector.shape_cast %226 : vector<4x8x128xf32> to vector<32x128xf32>
    %228 = arith.truncf %227 : vector<32x128xf32> to vector<32x128xbf16>
    %c4_216 = arith.constant 4 : index
    %c0_217 = arith.constant 0 : index
    %c0_218 = arith.constant 0 : index
    %229 = vector.load %arg6[%c4_216, %c0_217, %c0_218] : memref<16x128x64xbf16, #tpu.memory_space<vmem>>, vector<1x128x64xbf16>
    %230 = vector.shape_cast %229 : vector<1x128x64xbf16> to vector<128x64xbf16>
    %cst_219 = arith.constant dense<0.000000e+00> : vector<32x64xf32>
    %231 = tpu.matmul %228, %230, %cst_219 {dimension_numbers = #tpu.dot_dimension_numbers<[1], [0], [0], [1], [0, 0, 1, 1], [], []>} : vector<32x128xbf16>, vector<128x64xbf16>, vector<32x64xf32> -> vector<32x64xf32>
    %232 = arith.addf %225, %231 : vector<32x64xf32>
    %c0_220 = arith.constant 0 : index
    %c4_221 = arith.constant 4 : index
    %c0_222 = arith.constant 0 : index
    %233 = vector.load %arg12[%c0_220, %c4_221, %c0_222] : memref<6x12x128xf32, #tpu.memory_space<vmem>>, vector<4x8x128xf32>
    %234 = vector.shape_cast %233 : vector<4x8x128xf32> to vector<32x128xf32>
    %235 = arith.truncf %234 : vector<32x128xf32> to vector<32x128xbf16>
    %c5_223 = arith.constant 5 : index
    %c0_224 = arith.constant 0 : index
    %c0_225 = arith.constant 0 : index
    %236 = vector.load %arg6[%c5_223, %c0_224, %c0_225] : memref<16x128x64xbf16, #tpu.memory_space<vmem>>, vector<1x128x64xbf16>
    %237 = vector.shape_cast %236 : vector<1x128x64xbf16> to vector<128x64xbf16>
    %cst_226 = arith.constant dense<0.000000e+00> : vector<32x64xf32>
    %238 = tpu.matmul %235, %237, %cst_226 {dimension_numbers = #tpu.dot_dimension_numbers<[1], [0], [0], [1], [0, 0, 1, 1], [], []>} : vector<32x128xbf16>, vector<128x64xbf16>, vector<32x64xf32> -> vector<32x64xf32>
    %239 = arith.addf %232, %238 : vector<32x64xf32>
    %c1_227 = arith.constant 1 : index
    %c2_228 = arith.constant 2 : index
    %c0_229 = arith.constant 0 : index
    %240 = vector.load %arg12[%c1_227, %c2_228, %c0_229] : memref<6x12x128xf32, #tpu.memory_space<vmem>>, vector<4x8x128xf32>
    %241 = vector.shape_cast %240 : vector<4x8x128xf32> to vector<32x128xf32>
    %242 = arith.truncf %241 : vector<32x128xf32> to vector<32x128xbf16>
    %c6_230 = arith.constant 6 : index
    %c0_231 = arith.constant 0 : index
    %c0_232 = arith.constant 0 : index
    %243 = vector.load %arg6[%c6_230, %c0_231, %c0_232] : memref<16x128x64xbf16, #tpu.memory_space<vmem>>, vector<1x128x64xbf16>
    %244 = vector.shape_cast %243 : vector<1x128x64xbf16> to vector<128x64xbf16>
    %cst_233 = arith.constant dense<0.000000e+00> : vector<32x64xf32>
    %245 = tpu.matmul %242, %244, %cst_233 {dimension_numbers = #tpu.dot_dimension_numbers<[1], [0], [0], [1], [0, 0, 1, 1], [], []>} : vector<32x128xbf16>, vector<128x64xbf16>, vector<32x64xf32> -> vector<32x64xf32>
    %246 = arith.addf %239, %245 : vector<32x64xf32>
    %c1_234 = arith.constant 1 : index
    %c4_235 = arith.constant 4 : index
    %c0_236 = arith.constant 0 : index
    %247 = vector.load %arg12[%c1_234, %c4_235, %c0_236] : memref<6x12x128xf32, #tpu.memory_space<vmem>>, vector<4x8x128xf32>
    %248 = vector.shape_cast %247 : vector<4x8x128xf32> to vector<32x128xf32>
    %249 = arith.truncf %248 : vector<32x128xf32> to vector<32x128xbf16>
    %c7_237 = arith.constant 7 : index
    %c0_238 = arith.constant 0 : index
    %c0_239 = arith.constant 0 : index
    %250 = vector.load %arg6[%c7_237, %c0_238, %c0_239] : memref<16x128x64xbf16, #tpu.memory_space<vmem>>, vector<1x128x64xbf16>
    %251 = vector.shape_cast %250 : vector<1x128x64xbf16> to vector<128x64xbf16>
    %cst_240 = arith.constant dense<0.000000e+00> : vector<32x64xf32>
    %252 = tpu.matmul %249, %251, %cst_240 {dimension_numbers = #tpu.dot_dimension_numbers<[1], [0], [0], [1], [0, 0, 1, 1], [], []>} : vector<32x128xbf16>, vector<128x64xbf16>, vector<32x64xf32> -> vector<32x64xf32>
    %253 = arith.addf %246, %252 : vector<32x64xf32>
    %c0_241 = arith.constant 0 : index
    %c0_242 = arith.constant 0 : index
    %254 = vector.load %arg7[%c0_241, %c0_242] : memref<1x64xf32, #tpu.memory_space<vmem>>, vector<1x64xf32>
    %255 = vector.broadcast %254 : vector<1x64xf32> to vector<32x64xf32>
    %256 = arith.addf %253, %255 : vector<32x64xf32>
    %cst_243 = arith.constant 0.00999999977 : f32
    %257 = vector.broadcast %cst_243 : f32 to vector<32x64xf32>
    %258 = arith.mulf %257, %256 : vector<32x64xf32>
    %259 = arith.maximumf %256, %258 : vector<32x64xf32>
    %260 = vector.extract_strided_slice %259 {offsets = [0, 0], sizes = [8, 64], strides = [1, 1]} : vector<32x64xf32> to vector<8x64xf32>
    %c1_244 = arith.constant 1 : index
    %c0_245 = arith.constant 0 : index
    %c2_246 = arith.constant 2 : index
    %c0_247 = arith.constant 0 : index
    %261 = vector.load %arg13[%c1_244, %c0_245, %c2_246, %c0_247] : memref<10x2x10x64xf32, #tpu.memory_space<vmem>>, vector<1x1x8x64xf32>
    %262 = vector.shape_cast %261 : vector<1x1x8x64xf32> to vector<8x64xf32>
    %263 = vector.shape_cast %260 : vector<8x64xf32> to vector<1x1x8x64xf32>
    tpu.vector_store %arg13[%c1_244, %c0_245, %c2_246, %c0_247], %263 {strides = array<i32>} : memref<10x2x10x64xf32, #tpu.memory_space<vmem>>, vector<1x1x8x64xf32>,
    %264 = vector.extract_strided_slice %259 {offsets = [8, 0], sizes = [8, 64], strides = [1, 1]} : vector<32x64xf32> to vector<8x64xf32>
    %c3_248 = arith.constant 3 : index
    %c0_249 = arith.constant 0 : index
    %c2_250 = arith.constant 2 : index
    %c0_251 = arith.constant 0 : index
    %265 = vector.load %arg13[%c3_248, %c0_249, %c2_250, %c0_251] : memref<10x2x10x64xf32, #tpu.memory_space<vmem>>, vector<1x1x8x64xf32>
    %266 = vector.shape_cast %265 : vector<1x1x8x64xf32> to vector<8x64xf32>
    %267 = vector.shape_cast %264 : vector<8x64xf32> to vector<1x1x8x64xf32>
    tpu.vector_store %arg13[%c3_248, %c0_249, %c2_250, %c0_251], %267 {strides = array<i32>} : memref<10x2x10x64xf32, #tpu.memory_space<vmem>>, vector<1x1x8x64xf32>,
    %268 = vector.extract_strided_slice %259 {offsets = [16, 0], sizes = [8, 64], strides = [1, 1]} : vector<32x64xf32> to vector<8x64xf32>
    %c5_252 = arith.constant 5 : index
    %c0_253 = arith.constant 0 : index
    %c2_254 = arith.constant 2 : index
    %c0_255 = arith.constant 0 : index
    %269 = vector.load %arg13[%c5_252, %c0_253, %c2_254, %c0_255] : memref<10x2x10x64xf32, #tpu.memory_space<vmem>>, vector<1x1x8x64xf32>
    %270 = vector.shape_cast %269 : vector<1x1x8x64xf32> to vector<8x64xf32>
    %271 = vector.shape_cast %268 : vector<8x64xf32> to vector<1x1x8x64xf32>
    tpu.vector_store %arg13[%c5_252, %c0_253, %c2_254, %c0_255], %271 {strides = array<i32>} : memref<10x2x10x64xf32, #tpu.memory_space<vmem>>, vector<1x1x8x64xf32>,
    %272 = vector.extract_strided_slice %259 {offsets = [24, 0], sizes = [8, 64], strides = [1, 1]} : vector<32x64xf32> to vector<8x64xf32>
    %c7_256 = arith.constant 7 : index
    %c0_257 = arith.constant 0 : index
    %c2_258 = arith.constant 2 : index
    %c0_259 = arith.constant 0 : index
    %273 = vector.load %arg13[%c7_256, %c0_257, %c2_258, %c0_259] : memref<10x2x10x64xf32, #tpu.memory_space<vmem>>, vector<1x1x8x64xf32>
    %274 = vector.shape_cast %273 : vector<1x1x8x64xf32> to vector<8x64xf32>
    %275 = vector.shape_cast %272 : vector<8x64xf32> to vector<1x1x8x64xf32>
    tpu.vector_store %arg13[%c7_256, %c0_257, %c2_258, %c0_259], %275 {strides = array<i32>} : memref<10x2x10x64xf32, #tpu.memory_space<vmem>>, vector<1x1x8x64xf32>,
    %cst_260 = arith.constant 0.000000e+00 : f32
    %276 = vector.broadcast %cst_260 : f32 to vector<32x64xf32>
    %c1_261 = arith.constant 1 : index
    %c0_262 = arith.constant 0 : index
    %c0_263 = arith.constant 0 : index
    %277 = vector.load %arg12[%c1_261, %c0_262, %c0_263] : memref<6x12x128xf32, #tpu.memory_space<vmem>>, vector<4x8x128xf32>
    %278 = vector.shape_cast %277 : vector<4x8x128xf32> to vector<32x128xf32>
    %279 = arith.truncf %278 : vector<32x128xf32> to vector<32x128xbf16>
    %c8_264 = arith.constant 8 : index
    %c0_265 = arith.constant 0 : index
    %c0_266 = arith.constant 0 : index
    %280 = vector.load %arg6[%c8_264, %c0_265, %c0_266] : memref<16x128x64xbf16, #tpu.memory_space<vmem>>, vector<1x128x64xbf16>
    %281 = vector.shape_cast %280 : vector<1x128x64xbf16> to vector<128x64xbf16>
    %cst_267 = arith.constant dense<0.000000e+00> : vector<32x64xf32>
    %282 = tpu.matmul %279, %281, %cst_267 {dimension_numbers = #tpu.dot_dimension_numbers<[1], [0], [0], [1], [0, 0, 1, 1], [], []>} : vector<32x128xbf16>, vector<128x64xbf16>, vector<32x64xf32> -> vector<32x64xf32>
    %283 = arith.addf %276, %282 : vector<32x64xf32>
    %c1_268 = arith.constant 1 : index
    %c2_269 = arith.constant 2 : index
    %c0_270 = arith.constant 0 : index
    %284 = vector.load %arg12[%c1_268, %c2_269, %c0_270] : memref<6x12x128xf32, #tpu.memory_space<vmem>>, vector<4x8x128xf32>
    %285 = vector.shape_cast %284 : vector<4x8x128xf32> to vector<32x128xf32>
    %286 = arith.truncf %285 : vector<32x128xf32> to vector<32x128xbf16>
    %c9 = arith.constant 9 : index
    %c0_271 = arith.constant 0 : index
    %c0_272 = arith.constant 0 : index
    %287 = vector.load %arg6[%c9, %c0_271, %c0_272] : memref<16x128x64xbf16, #tpu.memory_space<vmem>>, vector<1x128x64xbf16>
    %288 = vector.shape_cast %287 : vector<1x128x64xbf16> to vector<128x64xbf16>
    %cst_273 = arith.constant dense<0.000000e+00> : vector<32x64xf32>
    %289 = tpu.matmul %286, %288, %cst_273 {dimension_numbers = #tpu.dot_dimension_numbers<[1], [0], [0], [1], [0, 0, 1, 1], [], []>} : vector<32x128xbf16>, vector<128x64xbf16>, vector<32x64xf32> -> vector<32x64xf32>
    %290 = arith.addf %283, %289 : vector<32x64xf32>
    %c2_274 = arith.constant 2 : index
    %c0_275 = arith.constant 0 : index
    %c0_276 = arith.constant 0 : index
    %291 = vector.load %arg12[%c2_274, %c0_275, %c0_276] : memref<6x12x128xf32, #tpu.memory_space<vmem>>, vector<4x8x128xf32>
    %292 = vector.shape_cast %291 : vector<4x8x128xf32> to vector<32x128xf32>
    %293 = arith.truncf %292 : vector<32x128xf32> to vector<32x128xbf16>
    %c10 = arith.constant 10 : index
    %c0_277 = arith.constant 0 : index
    %c0_278 = arith.constant 0 : index
    %294 = vector.load %arg6[%c10, %c0_277, %c0_278] : memref<16x128x64xbf16, #tpu.memory_space<vmem>>, vector<1x128x64xbf16>
    %295 = vector.shape_cast %294 : vector<1x128x64xbf16> to vector<128x64xbf16>
    %cst_279 = arith.constant dense<0.000000e+00> : vector<32x64xf32>
    %296 = tpu.matmul %293, %295, %cst_279 {dimension_numbers = #tpu.dot_dimension_numbers<[1], [0], [0], [1], [0, 0, 1, 1], [], []>} : vector<32x128xbf16>, vector<128x64xbf16>, vector<32x64xf32> -> vector<32x64xf32>
    %297 = arith.addf %290, %296 : vector<32x64xf32>
    %c2_280 = arith.constant 2 : index
    %c2_281 = arith.constant 2 : index
    %c0_282 = arith.constant 0 : index
    %298 = vector.load %arg12[%c2_280, %c2_281, %c0_282] : memref<6x12x128xf32, #tpu.memory_space<vmem>>, vector<4x8x128xf32>
    %299 = vector.shape_cast %298 : vector<4x8x128xf32> to vector<32x128xf32>
    %300 = arith.truncf %299 : vector<32x128xf32> to vector<32x128xbf16>
    %c11 = arith.constant 11 : index
    %c0_283 = arith.constant 0 : index
    %c0_284 = arith.constant 0 : index
    %301 = vector.load %arg6[%c11, %c0_283, %c0_284] : memref<16x128x64xbf16, #tpu.memory_space<vmem>>, vector<1x128x64xbf16>
    %302 = vector.shape_cast %301 : vector<1x128x64xbf16> to vector<128x64xbf16>
    %cst_285 = arith.constant dense<0.000000e+00> : vector<32x64xf32>
    %303 = tpu.matmul %300, %302, %cst_285 {dimension_numbers = #tpu.dot_dimension_numbers<[1], [0], [0], [1], [0, 0, 1, 1], [], []>} : vector<32x128xbf16>, vector<128x64xbf16>, vector<32x64xf32> -> vector<32x64xf32>
    %304 = arith.addf %297, %303 : vector<32x64xf32>
    %c0_286 = arith.constant 0 : index
    %c0_287 = arith.constant 0 : index
    %305 = vector.load %arg7[%c0_286, %c0_287] : memref<1x64xf32, #tpu.memory_space<vmem>>, vector<1x64xf32>
    %306 = vector.broadcast %305 : vector<1x64xf32> to vector<32x64xf32>
    %307 = arith.addf %304, %306 : vector<32x64xf32>
    %cst_288 = arith.constant 0.00999999977 : f32
    %308 = vector.broadcast %cst_288 : f32 to vector<32x64xf32>
    %309 = arith.mulf %308, %307 : vector<32x64xf32>
    %310 = arith.maximumf %307, %309 : vector<32x64xf32>
    %311 = vector.extract_strided_slice %310 {offsets = [0, 0], sizes = [8, 64], strides = [1, 1]} : vector<32x64xf32> to vector<8x64xf32>
    %c2_289 = arith.constant 2 : index
    %c1_290 = arith.constant 1 : index
    %c0_291 = arith.constant 0 : index
    %c0_292 = arith.constant 0 : index
    %312 = vector.load %arg13[%c2_289, %c1_290, %c0_291, %c0_292] : memref<10x2x10x64xf32, #tpu.memory_space<vmem>>, vector<1x1x8x64xf32>
    %313 = vector.shape_cast %312 : vector<1x1x8x64xf32> to vector<8x64xf32>
    %314 = vector.shape_cast %311 : vector<8x64xf32> to vector<1x1x8x64xf32>
    tpu.vector_store %arg13[%c2_289, %c1_290, %c0_291, %c0_292], %314 {strides = array<i32>} : memref<10x2x10x64xf32, #tpu.memory_space<vmem>>, vector<1x1x8x64xf32>,
    %315 = vector.extract_strided_slice %310 {offsets = [8, 0], sizes = [8, 64], strides = [1, 1]} : vector<32x64xf32> to vector<8x64xf32>
    %c4_293 = arith.constant 4 : index
    %c1_294 = arith.constant 1 : index
    %c0_295 = arith.constant 0 : index
    %c0_296 = arith.constant 0 : index
    %316 = vector.load %arg13[%c4_293, %c1_294, %c0_295, %c0_296] : memref<10x2x10x64xf32, #tpu.memory_space<vmem>>, vector<1x1x8x64xf32>
    %317 = vector.shape_cast %316 : vector<1x1x8x64xf32> to vector<8x64xf32>
    %318 = vector.shape_cast %315 : vector<8x64xf32> to vector<1x1x8x64xf32>
    tpu.vector_store %arg13[%c4_293, %c1_294, %c0_295, %c0_296], %318 {strides = array<i32>} : memref<10x2x10x64xf32, #tpu.memory_space<vmem>>, vector<1x1x8x64xf32>,
    %319 = vector.extract_strided_slice %310 {offsets = [16, 0], sizes = [8, 64], strides = [1, 1]} : vector<32x64xf32> to vector<8x64xf32>
    %c6_297 = arith.constant 6 : index
    %c1_298 = arith.constant 1 : index
    %c0_299 = arith.constant 0 : index
    %c0_300 = arith.constant 0 : index
    %320 = vector.load %arg13[%c6_297, %c1_298, %c0_299, %c0_300] : memref<10x2x10x64xf32, #tpu.memory_space<vmem>>, vector<1x1x8x64xf32>
    %321 = vector.shape_cast %320 : vector<1x1x8x64xf32> to vector<8x64xf32>
    %322 = vector.shape_cast %319 : vector<8x64xf32> to vector<1x1x8x64xf32>
    tpu.vector_store %arg13[%c6_297, %c1_298, %c0_299, %c0_300], %322 {strides = array<i32>} : memref<10x2x10x64xf32, #tpu.memory_space<vmem>>, vector<1x1x8x64xf32>,
    %323 = vector.extract_strided_slice %310 {offsets = [24, 0], sizes = [8, 64], strides = [1, 1]} : vector<32x64xf32> to vector<8x64xf32>
    %c8_301 = arith.constant 8 : index
    %c1_302 = arith.constant 1 : index
    %c0_303 = arith.constant 0 : index
    %c0_304 = arith.constant 0 : index
    %324 = vector.load %arg13[%c8_301, %c1_302, %c0_303, %c0_304] : memref<10x2x10x64xf32, #tpu.memory_space<vmem>>, vector<1x1x8x64xf32>
    %325 = vector.shape_cast %324 : vector<1x1x8x64xf32> to vector<8x64xf32>
    %326 = vector.shape_cast %323 : vector<8x64xf32> to vector<1x1x8x64xf32>
    tpu.vector_store %arg13[%c8_301, %c1_302, %c0_303, %c0_304], %326 {strides = array<i32>} : memref<10x2x10x64xf32, #tpu.memory_space<vmem>>, vector<1x1x8x64xf32>,
    %cst_305 = arith.constant 0.000000e+00 : f32
    %327 = vector.broadcast %cst_305 : f32 to vector<32x64xf32>
    %c1_306 = arith.constant 1 : index
    %c2_307 = arith.constant 2 : index
    %c0_308 = arith.constant 0 : index
    %328 = vector.load %arg12[%c1_306, %c2_307, %c0_308] : memref<6x12x128xf32, #tpu.memory_space<vmem>>, vector<4x8x128xf32>
    %329 = vector.shape_cast %328 : vector<4x8x128xf32> to vector<32x128xf32>
    %330 = arith.truncf %329 : vector<32x128xf32> to vector<32x128xbf16>
    %c12 = arith.constant 12 : index
    %c0_309 = arith.constant 0 : index
    %c0_310 = arith.constant 0 : index
    %331 = vector.load %arg6[%c12, %c0_309, %c0_310] : memref<16x128x64xbf16, #tpu.memory_space<vmem>>, vector<1x128x64xbf16>
    %332 = vector.shape_cast %331 : vector<1x128x64xbf16> to vector<128x64xbf16>
    %cst_311 = arith.constant dense<0.000000e+00> : vector<32x64xf32>
    %333 = tpu.matmul %330, %332, %cst_311 {dimension_numbers = #tpu.dot_dimension_numbers<[1], [0], [0], [1], [0, 0, 1, 1], [], []>} : vector<32x128xbf16>, vector<128x64xbf16>, vector<32x64xf32> -> vector<32x64xf32>
    %334 = arith.addf %327, %333 : vector<32x64xf32>
    %c1_312 = arith.constant 1 : index
    %c4_313 = arith.constant 4 : index
    %c0_314 = arith.constant 0 : index
    %335 = vector.load %arg12[%c1_312, %c4_313, %c0_314] : memref<6x12x128xf32, #tpu.memory_space<vmem>>, vector<4x8x128xf32>
    %336 = vector.shape_cast %335 : vector<4x8x128xf32> to vector<32x128xf32>
    %337 = arith.truncf %336 : vector<32x128xf32> to vector<32x128xbf16>
    %c13 = arith.constant 13 : index
    %c0_315 = arith.constant 0 : index
    %c0_316 = arith.constant 0 : index
    %338 = vector.load %arg6[%c13, %c0_315, %c0_316] : memref<16x128x64xbf16, #tpu.memory_space<vmem>>, vector<1x128x64xbf16>
    %339 = vector.shape_cast %338 : vector<1x128x64xbf16> to vector<128x64xbf16>
    %cst_317 = arith.constant dense<0.000000e+00> : vector<32x64xf32>
    %340 = tpu.matmul %337, %339, %cst_317 {dimension_numbers = #tpu.dot_dimension_numbers<[1], [0], [0], [1], [0, 0, 1, 1], [], []>} : vector<32x128xbf16>, vector<128x64xbf16>, vector<32x64xf32> -> vector<32x64xf32>
    %341 = arith.addf %334, %340 : vector<32x64xf32>
    %c2_318 = arith.constant 2 : index
    %c2_319 = arith.constant 2 : index
    %c0_320 = arith.constant 0 : index
    %342 = vector.load %arg12[%c2_318, %c2_319, %c0_320] : memref<6x12x128xf32, #tpu.memory_space<vmem>>, vector<4x8x128xf32>
    %343 = vector.shape_cast %342 : vector<4x8x128xf32> to vector<32x128xf32>
    %344 = arith.truncf %343 : vector<32x128xf32> to vector<32x128xbf16>
    %c14 = arith.constant 14 : index
    %c0_321 = arith.constant 0 : index
    %c0_322 = arith.constant 0 : index
    %345 = vector.load %arg6[%c14, %c0_321, %c0_322] : memref<16x128x64xbf16, #tpu.memory_space<vmem>>, vector<1x128x64xbf16>
    %346 = vector.shape_cast %345 : vector<1x128x64xbf16> to vector<128x64xbf16>
    %cst_323 = arith.constant dense<0.000000e+00> : vector<32x64xf32>
    %347 = tpu.matmul %344, %346, %cst_323 {dimension_numbers = #tpu.dot_dimension_numbers<[1], [0], [0], [1], [0, 0, 1, 1], [], []>} : vector<32x128xbf16>, vector<128x64xbf16>, vector<32x64xf32> -> vector<32x64xf32>
    %348 = arith.addf %341, %347 : vector<32x64xf32>
    %c2_324 = arith.constant 2 : index
    %c4_325 = arith.constant 4 : index
    %c0_326 = arith.constant 0 : index
    %349 = vector.load %arg12[%c2_324, %c4_325, %c0_326] : memref<6x12x128xf32, #tpu.memory_space<vmem>>, vector<4x8x128xf32>
    %350 = vector.shape_cast %349 : vector<4x8x128xf32> to vector<32x128xf32>
    %351 = arith.truncf %350 : vector<32x128xf32> to vector<32x128xbf16>
    %c15 = arith.constant 15 : index
    %c0_327 = arith.constant 0 : index
    %c0_328 = arith.constant 0 : index
    %352 = vector.load %arg6[%c15, %c0_327, %c0_328] : memref<16x128x64xbf16, #tpu.memory_space<vmem>>, vector<1x128x64xbf16>
    %353 = vector.shape_cast %352 : vector<1x128x64xbf16> to vector<128x64xbf16>
    %cst_329 = arith.constant dense<0.000000e+00> : vector<32x64xf32>
    %354 = tpu.matmul %351, %353, %cst_329 {dimension_numbers = #tpu.dot_dimension_numbers<[1], [0], [0], [1], [0, 0, 1, 1], [], []>} : vector<32x128xbf16>, vector<128x64xbf16>, vector<32x64xf32> -> vector<32x64xf32>
    %355 = arith.addf %348, %354 : vector<32x64xf32>
    %c0_330 = arith.constant 0 : index
    %c0_331 = arith.constant 0 : index
    %356 = vector.load %arg7[%c0_330, %c0_331] : memref<1x64xf32, #tpu.memory_space<vmem>>, vector<1x64xf32>
    %357 = vector.broadcast %356 : vector<1x64xf32> to vector<32x64xf32>
    %358 = arith.addf %355, %357 : vector<32x64xf32>
    %cst_332 = arith.constant 0.00999999977 : f32
    %359 = vector.broadcast %cst_332 : f32 to vector<32x64xf32>
    %360 = arith.mulf %359, %358 : vector<32x64xf32>
    %361 = arith.maximumf %358, %360 : vector<32x64xf32>
    %362 = vector.extract_strided_slice %361 {offsets = [0, 0], sizes = [8, 64], strides = [1, 1]} : vector<32x64xf32> to vector<8x64xf32>
    %c2_333 = arith.constant 2 : index
    %c0_334 = arith.constant 0 : index
    %c2_335 = arith.constant 2 : index
    %c0_336 = arith.constant 0 : index
    %363 = vector.load %arg13[%c2_333, %c0_334, %c2_335, %c0_336] : memref<10x2x10x64xf32, #tpu.memory_space<vmem>>, vector<1x1x8x64xf32>
    %364 = vector.shape_cast %363 : vector<1x1x8x64xf32> to vector<8x64xf32>
    %365 = vector.shape_cast %362 : vector<8x64xf32> to vector<1x1x8x64xf32>
    tpu.vector_store %arg13[%c2_333, %c0_334, %c2_335, %c0_336], %365 {strides = array<i32>} : memref<10x2x10x64xf32, #tpu.memory_space<vmem>>, vector<1x1x8x64xf32>,
    %366 = vector.extract_strided_slice %361 {offsets = [8, 0], sizes = [8, 64], strides = [1, 1]} : vector<32x64xf32> to vector<8x64xf32>
    %c4_337 = arith.constant 4 : index
    %c0_338 = arith.constant 0 : index
    %c2_339 = arith.constant 2 : index
    %c0_340 = arith.constant 0 : index
    %367 = vector.load %arg13[%c4_337, %c0_338, %c2_339, %c0_340] : memref<10x2x10x64xf32, #tpu.memory_space<vmem>>, vector<1x1x8x64xf32>
    %368 = vector.shape_cast %367 : vector<1x1x8x64xf32> to vector<8x64xf32>
    %369 = vector.shape_cast %366 : vector<8x64xf32> to vector<1x1x8x64xf32>
    tpu.vector_store %arg13[%c4_337, %c0_338, %c2_339, %c0_340], %369 {strides = array<i32>} : memref<10x2x10x64xf32, #tpu.memory_space<vmem>>, vector<1x1x8x64xf32>,
    %370 = vector.extract_strided_slice %361 {offsets = [16, 0], sizes = [8, 64], strides = [1, 1]} : vector<32x64xf32> to vector<8x64xf32>
    %c6_341 = arith.constant 6 : index
    %c0_342 = arith.constant 0 : index
    %c2_343 = arith.constant 2 : index
    %c0_344 = arith.constant 0 : index
    %371 = vector.load %arg13[%c6_341, %c0_342, %c2_343, %c0_344] : memref<10x2x10x64xf32, #tpu.memory_space<vmem>>, vector<1x1x8x64xf32>
    %372 = vector.shape_cast %371 : vector<1x1x8x64xf32> to vector<8x64xf32>
    %373 = vector.shape_cast %370 : vector<8x64xf32> to vector<1x1x8x64xf32>
    tpu.vector_store %arg13[%c6_341, %c0_342, %c2_343, %c0_344], %373 {strides = array<i32>} : memref<10x2x10x64xf32, #tpu.memory_space<vmem>>, vector<1x1x8x64xf32>,
    %374 = vector.extract_strided_slice %361 {offsets = [24, 0], sizes = [8, 64], strides = [1, 1]} : vector<32x64xf32> to vector<8x64xf32>
    %c8_345 = arith.constant 8 : index
    %c0_346 = arith.constant 0 : index
    %c2_347 = arith.constant 2 : index
    %c0_348 = arith.constant 0 : index
    %375 = vector.load %arg13[%c8_345, %c0_346, %c2_347, %c0_348] : memref<10x2x10x64xf32, #tpu.memory_space<vmem>>, vector<1x1x8x64xf32>
    %376 = vector.shape_cast %375 : vector<1x1x8x64xf32> to vector<8x64xf32>
    %377 = vector.shape_cast %374 : vector<8x64xf32> to vector<1x1x8x64xf32>
    tpu.vector_store %arg13[%c8_345, %c0_346, %c2_347, %c0_348], %377 {strides = array<i32>} : memref<10x2x10x64xf32, #tpu.memory_space<vmem>>, vector<1x1x8x64xf32>,
    %cst_349 = arith.constant 0.000000e+00 : f32
    %378 = vector.broadcast %cst_349 : f32 to vector<64x16xf32>
    %c0_350 = arith.constant 0 : index
    %c0_351 = arith.constant 0 : index
    %c0_352 = arith.constant 0 : index
    %c0_353 = arith.constant 0 : index
    %379 = vector.load %arg13[%c0_350, %c0_351, %c0_352, %c0_353] : memref<10x2x10x64xf32, #tpu.memory_space<vmem>>, vector<8x1x8x64xf32>
    %380 = vector.shape_cast %379 : vector<8x1x8x64xf32> to vector<8x8x64xf32>
    %381 = vector.shape_cast %380 : vector<8x8x64xf32> to vector<64x64xf32>
    %382 = arith.truncf %381 : vector<64x64xf32> to vector<64x64xbf16>
    %c0_354 = arith.constant 0 : index
    %c0_355 = arith.constant 0 : index
    %c0_356 = arith.constant 0 : index
    %383 = vector.load %arg8[%c0_354, %c0_355, %c0_356] : memref<9x64x16xbf16, #tpu.memory_space<vmem>>, vector<1x64x16xbf16>
    %384 = vector.shape_cast %383 : vector<1x64x16xbf16> to vector<64x16xbf16>
    %cst_357 = arith.constant dense<0.000000e+00> : vector<64x16xf32>
    %385 = tpu.matmul %382, %384, %cst_357 {dimension_numbers = #tpu.dot_dimension_numbers<[1], [0], [0], [1], [0, 0, 1, 1], [], []>} : vector<64x64xbf16>, vector<64x16xbf16>, vector<64x16xf32> -> vector<64x16xf32>
    %386 = arith.addf %378, %385 : vector<64x16xf32>
    %c0_358 = arith.constant 0 : index
    %c1_359 = arith.constant 1 : index
    %c0_360 = arith.constant 0 : index
    %c0_361 = arith.constant 0 : index
    %387 = vector.load %arg13[%c0_358, %c1_359, %c0_360, %c0_361] : memref<10x2x10x64xf32, #tpu.memory_space<vmem>>, vector<8x1x8x64xf32>
    %388 = vector.shape_cast %387 : vector<8x1x8x64xf32> to vector<8x8x64xf32>
    %389 = vector.shape_cast %388 : vector<8x8x64xf32> to vector<64x64xf32>
    %390 = arith.truncf %389 : vector<64x64xf32> to vector<64x64xbf16>
    %c1_362 = arith.constant 1 : index
    %c0_363 = arith.constant 0 : index
    %c0_364 = arith.constant 0 : index
    %391 = vector.load %arg8[%c1_362, %c0_363, %c0_364] : memref<9x64x16xbf16, #tpu.memory_space<vmem>>, vector<1x64x16xbf16>
    %392 = vector.shape_cast %391 : vector<1x64x16xbf16> to vector<64x16xbf16>
    %cst_365 = arith.constant dense<0.000000e+00> : vector<64x16xf32>
    %393 = tpu.matmul %390, %392, %cst_365 {dimension_numbers = #tpu.dot_dimension_numbers<[1], [0], [0], [1], [0, 0, 1, 1], [], []>} : vector<64x64xbf16>, vector<64x16xbf16>, vector<64x16xf32> -> vector<64x16xf32>
    %394 = arith.addf %386, %393 : vector<64x16xf32>
    %c0_366 = arith.constant 0 : index
    %c0_367 = arith.constant 0 : index
    %c2_368 = arith.constant 2 : index
    %c0_369 = arith.constant 0 : index
    %395 = vector.load %arg13[%c0_366, %c0_367, %c2_368, %c0_369] : memref<10x2x10x64xf32, #tpu.memory_space<vmem>>, vector<8x1x8x64xf32>
    %396 = vector.shape_cast %395 : vector<8x1x8x64xf32> to vector<8x8x64xf32>
    %397 = vector.shape_cast %396 : vector<8x8x64xf32> to vector<64x64xf32>
    %398 = arith.truncf %397 : vector<64x64xf32> to vector<64x64xbf16>
    %c2_370 = arith.constant 2 : index
    %c0_371 = arith.constant 0 : index
    %c0_372 = arith.constant 0 : index
    %399 = vector.load %arg8[%c2_370, %c0_371, %c0_372] : memref<9x64x16xbf16, #tpu.memory_space<vmem>>, vector<1x64x16xbf16>
    %400 = vector.shape_cast %399 : vector<1x64x16xbf16> to vector<64x16xbf16>
    %cst_373 = arith.constant dense<0.000000e+00> : vector<64x16xf32>
    %401 = tpu.matmul %398, %400, %cst_373 {dimension_numbers = #tpu.dot_dimension_numbers<[1], [0], [0], [1], [0, 0, 1, 1], [], []>} : vector<64x64xbf16>, vector<64x16xbf16>, vector<64x16xf32> -> vector<64x16xf32>
    %402 = arith.addf %394, %401 : vector<64x16xf32>
    %c1_374 = arith.constant 1 : index
    %c0_375 = arith.constant 0 : index
    %c0_376 = arith.constant 0 : index
    %c0_377 = arith.constant 0 : index
    %403 = vector.load %arg13[%c1_374, %c0_375, %c0_376, %c0_377] : memref<10x2x10x64xf32, #tpu.memory_space<vmem>>, vector<8x1x8x64xf32>
    %404 = vector.shape_cast %403 : vector<8x1x8x64xf32> to vector<8x8x64xf32>
    %405 = vector.shape_cast %404 : vector<8x8x64xf32> to vector<64x64xf32>
    %406 = arith.truncf %405 : vector<64x64xf32> to vector<64x64xbf16>
    %c3_378 = arith.constant 3 : index
    %c0_379 = arith.constant 0 : index
    %c0_380 = arith.constant 0 : index
    %407 = vector.load %arg8[%c3_378, %c0_379, %c0_380] : memref<9x64x16xbf16, #tpu.memory_space<vmem>>, vector<1x64x16xbf16>
    %408 = vector.shape_cast %407 : vector<1x64x16xbf16> to vector<64x16xbf16>
    %cst_381 = arith.constant dense<0.000000e+00> : vector<64x16xf32>
    %409 = tpu.matmul %406, %408, %cst_381 {dimension_numbers = #tpu.dot_dimension_numbers<[1], [0], [0], [1], [0, 0, 1, 1], [], []>} : vector<64x64xbf16>, vector<64x16xbf16>, vector<64x16xf32> -> vector<64x16xf32>
    %410 = arith.addf %402, %409 : vector<64x16xf32>
    %c1_382 = arith.constant 1 : index
    %c1_383 = arith.constant 1 : index
    %c0_384 = arith.constant 0 : index
    %c0_385 = arith.constant 0 : index
    %411 = vector.load %arg13[%c1_382, %c1_383, %c0_384, %c0_385] : memref<10x2x10x64xf32, #tpu.memory_space<vmem>>, vector<8x1x8x64xf32>
    %412 = vector.shape_cast %411 : vector<8x1x8x64xf32> to vector<8x8x64xf32>
    %413 = vector.shape_cast %412 : vector<8x8x64xf32> to vector<64x64xf32>
    %414 = arith.truncf %413 : vector<64x64xf32> to vector<64x64xbf16>
    %c4_386 = arith.constant 4 : index
    %c0_387 = arith.constant 0 : index
    %c0_388 = arith.constant 0 : index
    %415 = vector.load %arg8[%c4_386, %c0_387, %c0_388] : memref<9x64x16xbf16, #tpu.memory_space<vmem>>, vector<1x64x16xbf16>
    %416 = vector.shape_cast %415 : vector<1x64x16xbf16> to vector<64x16xbf16>
    %cst_389 = arith.constant dense<0.000000e+00> : vector<64x16xf32>
    %417 = tpu.matmul %414, %416, %cst_389 {dimension_numbers = #tpu.dot_dimension_numbers<[1], [0], [0], [1], [0, 0, 1, 1], [], []>} : vector<64x64xbf16>, vector<64x16xbf16>, vector<64x16xf32> -> vector<64x16xf32>
    %418 = arith.addf %410, %417 : vector<64x16xf32>
    %c1_390 = arith.constant 1 : index
    %c0_391 = arith.constant 0 : index
    %c2_392 = arith.constant 2 : index
    %c0_393 = arith.constant 0 : index
    %419 = vector.load %arg13[%c1_390, %c0_391, %c2_392, %c0_393] : memref<10x2x10x64xf32, #tpu.memory_space<vmem>>, vector<8x1x8x64xf32>
    %420 = vector.shape_cast %419 : vector<8x1x8x64xf32> to vector<8x8x64xf32>
    %421 = vector.shape_cast %420 : vector<8x8x64xf32> to vector<64x64xf32>
    %422 = arith.truncf %421 : vector<64x64xf32> to vector<64x64xbf16>
    %c5_394 = arith.constant 5 : index
    %c0_395 = arith.constant 0 : index
    %c0_396 = arith.constant 0 : index
    %423 = vector.load %arg8[%c5_394, %c0_395, %c0_396] : memref<9x64x16xbf16, #tpu.memory_space<vmem>>, vector<1x64x16xbf16>
    %424 = vector.shape_cast %423 : vector<1x64x16xbf16> to vector<64x16xbf16>
    %cst_397 = arith.constant dense<0.000000e+00> : vector<64x16xf32>
    %425 = tpu.matmul %422, %424, %cst_397 {dimension_numbers = #tpu.dot_dimension_numbers<[1], [0], [0], [1], [0, 0, 1, 1], [], []>} : vector<64x64xbf16>, vector<64x16xbf16>, vector<64x16xf32> -> vector<64x16xf32>
    %426 = arith.addf %418, %425 : vector<64x16xf32>
    %c2_398 = arith.constant 2 : index
    %c0_399 = arith.constant 0 : index
    %c0_400 = arith.constant 0 : index
    %c0_401 = arith.constant 0 : index
    %427 = vector.load %arg13[%c2_398, %c0_399, %c0_400, %c0_401] : memref<10x2x10x64xf32, #tpu.memory_space<vmem>>, vector<8x1x8x64xf32>
    %428 = vector.shape_cast %427 : vector<8x1x8x64xf32> to vector<8x8x64xf32>
    %429 = vector.shape_cast %428 : vector<8x8x64xf32> to vector<64x64xf32>
    %430 = arith.truncf %429 : vector<64x64xf32> to vector<64x64xbf16>
    %c6_402 = arith.constant 6 : index
    %c0_403 = arith.constant 0 : index
    %c0_404 = arith.constant 0 : index
    %431 = vector.load %arg8[%c6_402, %c0_403, %c0_404] : memref<9x64x16xbf16, #tpu.memory_space<vmem>>, vector<1x64x16xbf16>
    %432 = vector.shape_cast %431 : vector<1x64x16xbf16> to vector<64x16xbf16>
    %cst_405 = arith.constant dense<0.000000e+00> : vector<64x16xf32>
    %433 = tpu.matmul %430, %432, %cst_405 {dimension_numbers = #tpu.dot_dimension_numbers<[1], [0], [0], [1], [0, 0, 1, 1], [], []>} : vector<64x64xbf16>, vector<64x16xbf16>, vector<64x16xf32> -> vector<64x16xf32>
    %434 = arith.addf %426, %433 : vector<64x16xf32>
    %c2_406 = arith.constant 2 : index
    %c1_407 = arith.constant 1 : index
    %c0_408 = arith.constant 0 : index
    %c0_409 = arith.constant 0 : index
    %435 = vector.load %arg13[%c2_406, %c1_407, %c0_408, %c0_409] : memref<10x2x10x64xf32, #tpu.memory_space<vmem>>, vector<8x1x8x64xf32>
    %436 = vector.shape_cast %435 : vector<8x1x8x64xf32> to vector<8x8x64xf32>
    %437 = vector.shape_cast %436 : vector<8x8x64xf32> to vector<64x64xf32>
    %438 = arith.truncf %437 : vector<64x64xf32> to vector<64x64xbf16>
    %c7_410 = arith.constant 7 : index
    %c0_411 = arith.constant 0 : index
    %c0_412 = arith.constant 0 : index
    %439 = vector.load %arg8[%c7_410, %c0_411, %c0_412] : memref<9x64x16xbf16, #tpu.memory_space<vmem>>, vector<1x64x16xbf16>
    %440 = vector.shape_cast %439 : vector<1x64x16xbf16> to vector<64x16xbf16>
    %cst_413 = arith.constant dense<0.000000e+00> : vector<64x16xf32>
    %441 = tpu.matmul %438, %440, %cst_413 {dimension_numbers = #tpu.dot_dimension_numbers<[1], [0], [0], [1], [0, 0, 1, 1], [], []>} : vector<64x64xbf16>, vector<64x16xbf16>, vector<64x16xf32> -> vector<64x16xf32>
    %442 = arith.addf %434, %441 : vector<64x16xf32>
    %c2_414 = arith.constant 2 : index
    %c0_415 = arith.constant 0 : index
    %c2_416 = arith.constant 2 : index
    %c0_417 = arith.constant 0 : index
    %443 = vector.load %arg13[%c2_414, %c0_415, %c2_416, %c0_417] : memref<10x2x10x64xf32, #tpu.memory_space<vmem>>, vector<8x1x8x64xf32>
    %444 = vector.shape_cast %443 : vector<8x1x8x64xf32> to vector<8x8x64xf32>
    %445 = vector.shape_cast %444 : vector<8x8x64xf32> to vector<64x64xf32>
    %446 = arith.truncf %445 : vector<64x64xf32> to vector<64x64xbf16>
    %c8_418 = arith.constant 8 : index
    %c0_419 = arith.constant 0 : index
    %c0_420 = arith.constant 0 : index
    %447 = vector.load %arg8[%c8_418, %c0_419, %c0_420] : memref<9x64x16xbf16, #tpu.memory_space<vmem>>, vector<1x64x16xbf16>
    %448 = vector.shape_cast %447 : vector<1x64x16xbf16> to vector<64x16xbf16>
    %cst_421 = arith.constant dense<0.000000e+00> : vector<64x16xf32>
    %449 = tpu.matmul %446, %448, %cst_421 {dimension_numbers = #tpu.dot_dimension_numbers<[1], [0], [0], [1], [0, 0, 1, 1], [], []>} : vector<64x64xbf16>, vector<64x16xbf16>, vector<64x16xf32> -> vector<64x16xf32>
    %450 = arith.addf %442, %449 : vector<64x16xf32>
    %c0_422 = arith.constant 0 : index
    %c0_423 = arith.constant 0 : index
    %451 = vector.load %arg9[%c0_422, %c0_423] : memref<1x16xf32, #tpu.memory_space<vmem>>, vector<1x16xf32>
    %452 = vector.broadcast %451 : vector<1x16xf32> to vector<64x16xf32>
    %453 = arith.addf %450, %452 : vector<64x16xf32>
    %454 = tpu.iota {dimensions = array<i32: 1>} : vector<64x16xi32>
    %c4_i32 = arith.constant 4 : i32
    %c0_i32 = arith.constant 0 : i32
    %455 = arith.cmpi eq, %c4_i32, %c0_i32 : i32
    %c1_i32 = arith.constant 1 : i32
    %456 = arith.select %455, %c1_i32, %c4_i32 : i32
    %457 = vector.broadcast %456 : i32 to vector<64x16xi32>
    %458 = arith.remsi %454, %457 : vector<64x16xi32>
    %c0_i32_424 = arith.constant 0 : i32
    %459 = vector.broadcast %c0_i32_424 : i32 to vector<64x16xi32>
    %460 = arith.cmpi ne, %458, %459 : vector<64x16xi32>
    %c0_i32_425 = arith.constant 0 : i32
    %461 = vector.broadcast %c0_i32_425 : i32 to vector<64x16xi32>
    %462 = arith.cmpi slt, %458, %461 : vector<64x16xi32>
    %c0_i32_426 = arith.constant 0 : i32
    %463 = arith.cmpi slt, %456, %c0_i32_426 : i32
    %464 = vector.broadcast %463 : i1 to vector<64x16xi1>
    %465 = vector.broadcast %464 : vector<64x16xi1> to vector<64x16xi1>
    %466 = arith.xori %462, %465 : vector<64x16xi1>
    %467 = arith.andi %466, %460 : vector<64x16xi1>
    %468 = vector.broadcast %456 : i32 to vector<64x16xi32>
    %469 = arith.addi %458, %468 : vector<64x16xi32>
    %470 = arith.select %467, %469, %458 : vector<64x16xi1>, vector<64x16xi32>
    %c0_i32_427 = arith.constant 0 : i32
    %471 = vector.broadcast %c0_i32_427 : i32 to vector<64x16xi32>
    %472 = arith.cmpi eq, %470, %471 : vector<64x16xi32>
    %473 = arith.negf %453 : vector<64x16xf32>
    %474 = math.exp %473 : vector<64x16xf32>
    %cst_428 = arith.constant 1.000000e+00 : f32
    %475 = vector.broadcast %cst_428 : f32 to vector<64x16xf32>
    %476 = arith.addf %475, %474 : vector<64x16xf32>
    %477 = arith.divf %475, %476 : vector<64x16xf32>
    %478 = arith.select %472, %477, %453 : vector<64x16xi1>, vector<64x16xf32>
    %c0_429 = arith.constant 0 : index
    %c0_430 = arith.constant 0 : index
    %c0_431 = arith.constant 0 : index
    %479 = vector.load %arg10[%c0_429, %c0_430, %c0_431] : memref<2x64x16xf32, #tpu.memory_space<vmem>>, vector<1x64x16xf32>
    %480 = vector.shape_cast %479 : vector<1x64x16xf32> to vector<64x16xf32>
    %481 = vector.shape_cast %478 : vector<64x16xf32> to vector<1x64x16xf32>
    tpu.vector_store %arg10[%c0_429, %c0_430, %c0_431], %481 {strides = array<i32>} : memref<2x64x16xf32, #tpu.memory_space<vmem>>, vector<1x64x16xf32>,
    %cst_432 = arith.constant 0.000000e+00 : f32
    %482 = vector.broadcast %cst_432 : f32 to vector<64x16xf32>
    %c0_433 = arith.constant 0 : index
    %c1_434 = arith.constant 1 : index
    %c0_435 = arith.constant 0 : index
    %c0_436 = arith.constant 0 : index
    %483 = vector.load %arg13[%c0_433, %c1_434, %c0_435, %c0_436] : memref<10x2x10x64xf32, #tpu.memory_space<vmem>>, vector<8x1x8x64xf32>
    %484 = vector.shape_cast %483 : vector<8x1x8x64xf32> to vector<8x8x64xf32>
    %485 = vector.shape_cast %484 : vector<8x8x64xf32> to vector<64x64xf32>
    %486 = arith.truncf %485 : vector<64x64xf32> to vector<64x64xbf16>
    %c0_437 = arith.constant 0 : index
    %c0_438 = arith.constant 0 : index
    %c0_439 = arith.constant 0 : index
    %487 = vector.load %arg8[%c0_437, %c0_438, %c0_439] : memref<9x64x16xbf16, #tpu.memory_space<vmem>>, vector<1x64x16xbf16>
    %488 = vector.shape_cast %487 : vector<1x64x16xbf16> to vector<64x16xbf16>
    %cst_440 = arith.constant dense<0.000000e+00> : vector<64x16xf32>
    %489 = tpu.matmul %486, %488, %cst_440 {dimension_numbers = #tpu.dot_dimension_numbers<[1], [0], [0], [1], [0, 0, 1, 1], [], []>} : vector<64x64xbf16>, vector<64x16xbf16>, vector<64x16xf32> -> vector<64x16xf32>
    %490 = arith.addf %482, %489 : vector<64x16xf32>
    %c0_441 = arith.constant 0 : index
    %c0_442 = arith.constant 0 : index
    %c2_443 = arith.constant 2 : index
    %c0_444 = arith.constant 0 : index
    %491 = vector.load %arg13[%c0_441, %c0_442, %c2_443, %c0_444] : memref<10x2x10x64xf32, #tpu.memory_space<vmem>>, vector<8x1x8x64xf32>
    %492 = vector.shape_cast %491 : vector<8x1x8x64xf32> to vector<8x8x64xf32>
    %493 = vector.shape_cast %492 : vector<8x8x64xf32> to vector<64x64xf32>
    %494 = arith.truncf %493 : vector<64x64xf32> to vector<64x64xbf16>
    %c1_445 = arith.constant 1 : index
    %c0_446 = arith.constant 0 : index
    %c0_447 = arith.constant 0 : index
    %495 = vector.load %arg8[%c1_445, %c0_446, %c0_447] : memref<9x64x16xbf16, #tpu.memory_space<vmem>>, vector<1x64x16xbf16>
    %496 = vector.shape_cast %495 : vector<1x64x16xbf16> to vector<64x16xbf16>
    %cst_448 = arith.constant dense<0.000000e+00> : vector<64x16xf32>
    %497 = tpu.matmul %494, %496, %cst_448 {dimension_numbers = #tpu.dot_dimension_numbers<[1], [0], [0], [1], [0, 0, 1, 1], [], []>} : vector<64x64xbf16>, vector<64x16xbf16>, vector<64x16xf32> -> vector<64x16xf32>
    %498 = arith.addf %490, %497 : vector<64x16xf32>
    %c0_449 = arith.constant 0 : index
    %c1_450 = arith.constant 1 : index
    %c2_451 = arith.constant 2 : index
    %c0_452 = arith.constant 0 : index
    %499 = vector.load %arg13[%c0_449, %c1_450, %c2_451, %c0_452] : memref<10x2x10x64xf32, #tpu.memory_space<vmem>>, vector<8x1x8x64xf32>
    %500 = vector.shape_cast %499 : vector<8x1x8x64xf32> to vector<8x8x64xf32>
    %501 = vector.shape_cast %500 : vector<8x8x64xf32> to vector<64x64xf32>
    %502 = arith.truncf %501 : vector<64x64xf32> to vector<64x64xbf16>
    %c2_453 = arith.constant 2 : index
    %c0_454 = arith.constant 0 : index
    %c0_455 = arith.constant 0 : index
    %503 = vector.load %arg8[%c2_453, %c0_454, %c0_455] : memref<9x64x16xbf16, #tpu.memory_space<vmem>>, vector<1x64x16xbf16>
    %504 = vector.shape_cast %503 : vector<1x64x16xbf16> to vector<64x16xbf16>
    %cst_456 = arith.constant dense<0.000000e+00> : vector<64x16xf32>
    %505 = tpu.matmul %502, %504, %cst_456 {dimension_numbers = #tpu.dot_dimension_numbers<[1], [0], [0], [1], [0, 0, 1, 1], [], []>} : vector<64x64xbf16>, vector<64x16xbf16>, vector<64x16xf32> -> vector<64x16xf32>
    %506 = arith.addf %498, %505 : vector<64x16xf32>
    %c1_457 = arith.constant 1 : index
    %c1_458 = arith.constant 1 : index
    %c0_459 = arith.constant 0 : index
    %c0_460 = arith.constant 0 : index
    %507 = vector.load %arg13[%c1_457, %c1_458, %c0_459, %c0_460] : memref<10x2x10x64xf32, #tpu.memory_space<vmem>>, vector<8x1x8x64xf32>
    %508 = vector.shape_cast %507 : vector<8x1x8x64xf32> to vector<8x8x64xf32>
    %509 = vector.shape_cast %508 : vector<8x8x64xf32> to vector<64x64xf32>
    %510 = arith.truncf %509 : vector<64x64xf32> to vector<64x64xbf16>
    %c3_461 = arith.constant 3 : index
    %c0_462 = arith.constant 0 : index
    %c0_463 = arith.constant 0 : index
    %511 = vector.load %arg8[%c3_461, %c0_462, %c0_463] : memref<9x64x16xbf16, #tpu.memory_space<vmem>>, vector<1x64x16xbf16>
    %512 = vector.shape_cast %511 : vector<1x64x16xbf16> to vector<64x16xbf16>
    %cst_464 = arith.constant dense<0.000000e+00> : vector<64x16xf32>
    %513 = tpu.matmul %510, %512, %cst_464 {dimension_numbers = #tpu.dot_dimension_numbers<[1], [0], [0], [1], [0, 0, 1, 1], [], []>} : vector<64x64xbf16>, vector<64x16xbf16>, vector<64x16xf32> -> vector<64x16xf32>
    %514 = arith.addf %506, %513 : vector<64x16xf32>
    %c1_465 = arith.constant 1 : index
    %c0_466 = arith.constant 0 : index
    %c2_467 = arith.constant 2 : index
    %c0_468 = arith.constant 0 : index
    %515 = vector.load %arg13[%c1_465, %c0_466, %c2_467, %c0_468] : memref<10x2x10x64xf32, #tpu.memory_space<vmem>>, vector<8x1x8x64xf32>
    %516 = vector.shape_cast %515 : vector<8x1x8x64xf32> to vector<8x8x64xf32>
    %517 = vector.shape_cast %516 : vector<8x8x64xf32> to vector<64x64xf32>
    %518 = arith.truncf %517 : vector<64x64xf32> to vector<64x64xbf16>
    %c4_469 = arith.constant 4 : index
    %c0_470 = arith.constant 0 : index
    %c0_471 = arith.constant 0 : index
    %519 = vector.load %arg8[%c4_469, %c0_470, %c0_471] : memref<9x64x16xbf16, #tpu.memory_space<vmem>>, vector<1x64x16xbf16>
    %520 = vector.shape_cast %519 : vector<1x64x16xbf16> to vector<64x16xbf16>
    %cst_472 = arith.constant dense<0.000000e+00> : vector<64x16xf32>
    %521 = tpu.matmul %518, %520, %cst_472 {dimension_numbers = #tpu.dot_dimension_numbers<[1], [0], [0], [1], [0, 0, 1, 1], [], []>} : vector<64x64xbf16>, vector<64x16xbf16>, vector<64x16xf32> -> vector<64x16xf32>
    %522 = arith.addf %514, %521 : vector<64x16xf32>
    %c1_473 = arith.constant 1 : index
    %c1_474 = arith.constant 1 : index
    %c2_475 = arith.constant 2 : index
    %c0_476 = arith.constant 0 : index
    %523 = vector.load %arg13[%c1_473, %c1_474, %c2_475, %c0_476] : memref<10x2x10x64xf32, #tpu.memory_space<vmem>>, vector<8x1x8x64xf32>
    %524 = vector.shape_cast %523 : vector<8x1x8x64xf32> to vector<8x8x64xf32>
    %525 = vector.shape_cast %524 : vector<8x8x64xf32> to vector<64x64xf32>
    %526 = arith.truncf %525 : vector<64x64xf32> to vector<64x64xbf16>
    %c5_477 = arith.constant 5 : index
    %c0_478 = arith.constant 0 : index
    %c0_479 = arith.constant 0 : index
    %527 = vector.load %arg8[%c5_477, %c0_478, %c0_479] : memref<9x64x16xbf16, #tpu.memory_space<vmem>>, vector<1x64x16xbf16>
    %528 = vector.shape_cast %527 : vector<1x64x16xbf16> to vector<64x16xbf16>
    %cst_480 = arith.constant dense<0.000000e+00> : vector<64x16xf32>
    %529 = tpu.matmul %526, %528, %cst_480 {dimension_numbers = #tpu.dot_dimension_numbers<[1], [0], [0], [1], [0, 0, 1, 1], [], []>} : vector<64x64xbf16>, vector<64x16xbf16>, vector<64x16xf32> -> vector<64x16xf32>
    %530 = arith.addf %522, %529 : vector<64x16xf32>
    %c2_481 = arith.constant 2 : index
    %c1_482 = arith.constant 1 : index
    %c0_483 = arith.constant 0 : index
    %c0_484 = arith.constant 0 : index
    %531 = vector.load %arg13[%c2_481, %c1_482, %c0_483, %c0_484] : memref<10x2x10x64xf32, #tpu.memory_space<vmem>>, vector<8x1x8x64xf32>
    %532 = vector.shape_cast %531 : vector<8x1x8x64xf32> to vector<8x8x64xf32>
    %533 = vector.shape_cast %532 : vector<8x8x64xf32> to vector<64x64xf32>
    %534 = arith.truncf %533 : vector<64x64xf32> to vector<64x64xbf16>
    %c6_485 = arith.constant 6 : index
    %c0_486 = arith.constant 0 : index
    %c0_487 = arith.constant 0 : index
    %535 = vector.load %arg8[%c6_485, %c0_486, %c0_487] : memref<9x64x16xbf16, #tpu.memory_space<vmem>>, vector<1x64x16xbf16>
    %536 = vector.shape_cast %535 : vector<1x64x16xbf16> to vector<64x16xbf16>
    %cst_488 = arith.constant dense<0.000000e+00> : vector<64x16xf32>
    %537 = tpu.matmul %534, %536, %cst_488 {dimension_numbers = #tpu.dot_dimension_numbers<[1], [0], [0], [1], [0, 0, 1, 1], [], []>} : vector<64x64xbf16>, vector<64x16xbf16>, vector<64x16xf32> -> vector<64x16xf32>
    %538 = arith.addf %530, %537 : vector<64x16xf32>
    %c2_489 = arith.constant 2 : index
    %c0_490 = arith.constant 0 : index
    %c2_491 = arith.constant 2 : index
    %c0_492 = arith.constant 0 : index
    %539 = vector.load %arg13[%c2_489, %c0_490, %c2_491, %c0_492] : memref<10x2x10x64xf32, #tpu.memory_space<vmem>>, vector<8x1x8x64xf32>
    %540 = vector.shape_cast %539 : vector<8x1x8x64xf32> to vector<8x8x64xf32>
    %541 = vector.shape_cast %540 : vector<8x8x64xf32> to vector<64x64xf32>
    %542 = arith.truncf %541 : vector<64x64xf32> to vector<64x64xbf16>
    %c7_493 = arith.constant 7 : index
    %c0_494 = arith.constant 0 : index
    %c0_495 = arith.constant 0 : index
    %543 = vector.load %arg8[%c7_493, %c0_494, %c0_495] : memref<9x64x16xbf16, #tpu.memory_space<vmem>>, vector<1x64x16xbf16>
    %544 = vector.shape_cast %543 : vector<1x64x16xbf16> to vector<64x16xbf16>
    %cst_496 = arith.constant dense<0.000000e+00> : vector<64x16xf32>
    %545 = tpu.matmul %542, %544, %cst_496 {dimension_numbers = #tpu.dot_dimension_numbers<[1], [0], [0], [1], [0, 0, 1, 1], [], []>} : vector<64x64xbf16>, vector<64x16xbf16>, vector<64x16xf32> -> vector<64x16xf32>
    %546 = arith.addf %538, %545 : vector<64x16xf32>
    %c2_497 = arith.constant 2 : index
    %c1_498 = arith.constant 1 : index
    %c2_499 = arith.constant 2 : index
    %c0_500 = arith.constant 0 : index
    %547 = vector.load %arg13[%c2_497, %c1_498, %c2_499, %c0_500] : memref<10x2x10x64xf32, #tpu.memory_space<vmem>>, vector<8x1x8x64xf32>
    %548 = vector.shape_cast %547 : vector<8x1x8x64xf32> to vector<8x8x64xf32>
    %549 = vector.shape_cast %548 : vector<8x8x64xf32> to vector<64x64xf32>
    %550 = arith.truncf %549 : vector<64x64xf32> to vector<64x64xbf16>
    %c8_501 = arith.constant 8 : index
    %c0_502 = arith.constant 0 : index
    %c0_503 = arith.constant 0 : index
    %551 = vector.load %arg8[%c8_501, %c0_502, %c0_503] : memref<9x64x16xbf16, #tpu.memory_space<vmem>>, vector<1x64x16xbf16>
    %552 = vector.shape_cast %551 : vector<1x64x16xbf16> to vector<64x16xbf16>
    %cst_504 = arith.constant dense<0.000000e+00> : vector<64x16xf32>
    %553 = tpu.matmul %550, %552, %cst_504 {dimension_numbers = #tpu.dot_dimension_numbers<[1], [0], [0], [1], [0, 0, 1, 1], [], []>} : vector<64x64xbf16>, vector<64x16xbf16>, vector<64x16xf32> -> vector<64x16xf32>
    %554 = arith.addf %546, %553 : vector<64x16xf32>
    %c0_505 = arith.constant 0 : index
    %c0_506 = arith.constant 0 : index
    %555 = vector.load %arg9[%c0_505, %c0_506] : memref<1x16xf32, #tpu.memory_space<vmem>>, vector<1x16xf32>
    %556 = vector.broadcast %555 : vector<1x16xf32> to vector<64x16xf32>
    %557 = arith.addf %554, %556 : vector<64x16xf32>
    %558 = tpu.iota {dimensions = array<i32: 1>} : vector<64x16xi32>
    %c4_i32_507 = arith.constant 4 : i32
    %c0_i32_508 = arith.constant 0 : i32
    %559 = arith.cmpi eq, %c4_i32_507, %c0_i32_508 : i32
    %c1_i32_509 = arith.constant 1 : i32
    %560 = arith.select %559, %c1_i32_509, %c4_i32_507 : i32
    %561 = vector.broadcast %560 : i32 to vector<64x16xi32>
    %562 = arith.remsi %558, %561 : vector<64x16xi32>
    %c0_i32_510 = arith.constant 0 : i32
    %563 = vector.broadcast %c0_i32_510 : i32 to vector<64x16xi32>
    %564 = arith.cmpi ne, %562, %563 : vector<64x16xi32>
    %c0_i32_511 = arith.constant 0 : i32
    %565 = vector.broadcast %c0_i32_511 : i32 to vector<64x16xi32>
    %566 = arith.cmpi slt, %562, %565 : vector<64x16xi32>
    %c0_i32_512 = arith.constant 0 : i32
    %567 = arith.cmpi slt, %560, %c0_i32_512 : i32
    %568 = vector.broadcast %567 : i1 to vector<64x16xi1>
    %569 = vector.broadcast %568 : vector<64x16xi1> to vector<64x16xi1>
    %570 = arith.xori %566, %569 : vector<64x16xi1>
    %571 = arith.andi %570, %564 : vector<64x16xi1>
    %572 = vector.broadcast %560 : i32 to vector<64x16xi32>
    %573 = arith.addi %562, %572 : vector<64x16xi32>
    %574 = arith.select %571, %573, %562 : vector<64x16xi1>, vector<64x16xi32>
    %c0_i32_513 = arith.constant 0 : i32
    %575 = vector.broadcast %c0_i32_513 : i32 to vector<64x16xi32>
    %576 = arith.cmpi eq, %574, %575 : vector<64x16xi32>
    %577 = arith.negf %557 : vector<64x16xf32>
    %578 = math.exp %577 : vector<64x16xf32>
    %cst_514 = arith.constant 1.000000e+00 : f32
    %579 = vector.broadcast %cst_514 : f32 to vector<64x16xf32>
    %580 = arith.addf %579, %578 : vector<64x16xf32>
    %581 = arith.divf %579, %580 : vector<64x16xf32>
    %582 = arith.select %576, %581, %557 : vector<64x16xi1>, vector<64x16xf32>
    %c1_515 = arith.constant 1 : index
    %c0_516 = arith.constant 0 : index
    %c0_517 = arith.constant 0 : index
    %583 = vector.load %arg10[%c1_515, %c0_516, %c0_517] : memref<2x64x16xf32, #tpu.memory_space<vmem>>, vector<1x64x16xf32>
    %584 = vector.shape_cast %583 : vector<1x64x16xf32> to vector<64x16xf32>
    %585 = vector.shape_cast %582 : vector<64x16xf32> to vector<1x64x16xf32>
    tpu.vector_store %arg10[%c1_515, %c0_516, %c0_517], %585 {strides = array<i32>} : memref<2x64x16xf32, #tpu.memory_space<vmem>>, vector<1x64x16xf32>,
    return
  }
  func.func @transform_0(%arg0: i32) -> (i32, i32) {
    %c0_i32 = arith.constant 0 : i32
    %c0_i32_0 = arith.constant 0 : i32
    %c0_i32_1 = arith.constant 0 : i32
    return %c0_i32, %c0_i32_0 : i32, i32
  }
  func.func @transform_1(%arg0: i32) -> (i32, i32) {
    %c0_i32 = arith.constant 0 : i32
    %c0_i32_0 = arith.constant 0 : i32
    %c0_i32_1 = arith.constant 0 : i32
    return %c0_i32, %c0_i32_0 : i32, i32
  }
  func.func @transform_2(%arg0: i32) -> (i32, i32) {
    %c0_i32 = arith.constant 0 : i32
    %c0_i32_0 = arith.constant 0 : i32
    %c0_i32_1 = arith.constant 0 : i32
    return %c0_i32, %c0_i32_0 : i32, i32
  }
  func.func @transform_3(%arg0: i32) -> (i32, i32, i32) {
    %c0_i32 = arith.constant 0 : i32
    %c0_i32_0 = arith.constant 0 : i32
    %c0_i32_1 = arith.constant 0 : i32
    %c0_i32_2 = arith.constant 0 : i32
    return %c0_i32, %c0_i32_0, %c0_i32_1 : i32, i32, i32
  }
  func.func @transform_4(%arg0: i32) -> (i32, i32) {
    %c0_i32 = arith.constant 0 : i32
    %c0_i32_0 = arith.constant 0 : i32
    %c0_i32_1 = arith.constant 0 : i32
    return %c0_i32, %c0_i32_0 : i32, i32
  }
  func.func @transform_5(%arg0: i32) -> (i32, i32, i32) {
    %c0_i32 = arith.constant 0 : i32
    %c0_i32_0 = arith.constant 0 : i32
    %c0_i32_1 = arith.constant 0 : i32
    %c0_i32_2 = arith.constant 0 : i32
    return %c0_i32, %c0_i32_0, %c0_i32_1 : i32, i32, i32
  }
  func.func @transform_6(%arg0: i32) -> (i32, i32) {
    %c0_i32 = arith.constant 0 : i32
    %c0_i32_0 = arith.constant 0 : i32
    %c0_i32_1 = arith.constant 0 : i32
    return %c0_i32, %c0_i32_0 : i32, i32
  }
  func.func @transform_7(%arg0: i32) -> (i32, i32, i32) {
    %c0_i32 = arith.constant 0 : i32
    %c0_i32_0 = arith.constant 0 : i32
    %c0_i32_1 = arith.constant 0 : i32
    %c0_i32_2 = arith.constant 0 : i32
    return %c0_i32, %c0_i32_0, %c0_i32_1 : i32, i32, i32
  }
  func.func @transform_8(%arg0: i32) -> (i32, i32) {
    %c0_i32 = arith.constant 0 : i32
    %c0_i32_0 = arith.constant 0 : i32
    %c0_i32_1 = arith.constant 0 : i32
    return %c0_i32, %c0_i32_0 : i32, i32
  }
  func.func @transform_9(%arg0: i32) -> (i32, i32, i32) {
    %c0_i32 = arith.constant 0 : i32
    %c0_i32_0 = arith.constant 0 : i32
    %c0_i32_1 = arith.constant 0 : i32
    %c0_i32_2 = arith.constant 0 : i32
    return %c0_i32, %c0_i32_0, %c0_i32_1 : i32, i32, i32
  }
}

</mosaic_0001>

<bundles_post_ra>
// kernel: tile.8
= control target key start
LH: loop header
LB: loop body
LE: loop exit
PB: predicated region body
PF: predicated region fallthrough
CT: control target
= control target key end

     0   :  { %s22_s0 = inlined_call_operand.vmem [shape: f32[4], index: 0, kind: input, shape index: {}]   ;;  %s23_s1 = inlined_call_operand.vmem [shape: f32[4,4], index: 1, kind: output, shape index: {}]  }
   0x1   :  { %v4_v0 = vld [vmem:[%s22_s0] ss:$0 sm:$0xff] }
   0x2   :  { %5 = vst [vmem:[%s23_s1] sm:$0xf] %v4_v0 }

// kernel: tile.9
= control target key start
LH: loop header
LB: loop body
LE: loop exit
PB: predicated region body
PF: predicated region fallthrough
CT: control target
= control target key end

     0   :  { %vm8_vm0 = vcmask 31744   ;;  %s40_s8 = smov 4   ;;  %s41_s9 = smov 8   ;;  %vm14_vm1 = vcmask 130144   ;;  %vm20_vm2 = vcmask 97344   ;;  %vm26_vm3 = vcmask 64544   ;;  %s58_s0 = inlined_call_operand.vmem [shape: f32[4,4], index: 0, kind: input, shape index: {}]   ;;  %s59_s1 = inlined_call_operand.vmem [shape: f32[1,16], index: 1, kind: output, shape index: {}]  }
   0x1   :  { %v5_v0 = vld [vmem:[%s58_s0] sm:$0xf]  ;;  %s39_s0 = smov 12  }
   0x2   :  { %6 = vst [vmem:[#allocation1] sm:$0xf] %v5_v0 }
   0x9   :  { %v11_v1 = vld [vmem:[#allocation1 + $0x3] sm:$0x1]   ;;  %v23_v2 = vld [vmem:[#allocation1 + $0x1] sm:$0x1]   ;;  %v7_v3 = vld [vmem:[#allocation1] sm:$0x1]  }
   0xa   :  { %12 = vrot.lane.b32.xlu0 %v11_v1, %s39_s0  ;;  %24 = vrot.lane.b32.xlu1 %v23_v2, %s40_s8  ;;  %v17_v4 = vld [vmem:[#allocation1 + $0x2] sm:$0x1]   ;;  %9 = vst.msk [vmem:[#allocation0] sm:$0x1] %vm8_vm0, %v7_v3  }
   0xe   :  { %18 = vrot.lane.b32.xlu0 %v17_v4, %s41_s9 }
  0x7c   :  { %v13_v5 = vpop.permute.xlu0 %12   ;;  %v25_v6 = vpop.permute.xlu1 %24  }
  0x7d   :  { %15 = vst.msk [vmem:[#allocation0] sm:$0x1] %vm14_vm1, %v13_v5  }
  0x80   :  { %v19_v7 = vpop.permute.xlu0 %18  }
  0x81   :  { %21 = vst.msk [vmem:[#allocation0] sm:$0x1] %vm20_vm2, %v19_v7  }
  0x82   :  { %27 = vst.msk [vmem:[#allocation0] sm:$0x1] %vm26_vm3, %v25_v6  }
  0x89   :  { %v32_v8 = vld [vmem:[#allocation0] sm:$0x1] }
  0x8a   :  { %35 = vst [vmem:[%s59_s1] sm:$0x1] %v32_v8 }

// kernel: center_speed_forward.1
= control target key start
LH: loop header
LB: loop body
LE: loop exit
PB: predicated region body
PF: predicated region fallthrough
CT: control target
= control target key end

     0   :  { %vm243_vm0 = vcmask 1042432   ;;  %vm33_vm1 = vcmask 523264   ;;  %v8089_v2 = vmov 0.0   ;;  %vm218_vm2 = vcmask 441344   ;;  %s9753_s1 = inlined_call_operand.vmem [shape: bf16[54,64], index: 1, kind: input, shape index: {}]   ;;  %s9754_s0 = inlined_call_operand.vmem [shape: bf16[128,54], index: 0, kind: input, shape index: {}]   ;;  %s9755_s3 = inlined_call_operand.vmem [shape: bf16[9,64,128], index: 3, kind: input, shape index: {}]   ;;  %s9756_s2 = inlined_call_operand.vmem [shape: f32[1,64], index: 2, kind: input, shape index: {}]   ;;  %s9757_s5 = inlined_call_operand.vmem [shape: bf16[16,128,64], index: 5, kind: input, shape index: {}]   ;;  %s9758_s4 = inlined_call_operand.vmem [shape: f32[1,128], index: 4, kind: input, shape index: {}]   ;;  %s9759_s6 = inlined_call_operand.vmem [shape: f32[1,64], index: 6, kind: input, shape index: {}]   ;;  %s9760_s7 = inlined_call_operand.vmem [shape: bf16[9,64,16], index: 7, kind: input, shape index: {}]   ;;  %s9761_s8 = inlined_call_operand.vmem [shape: f32[1,16], index: 8, kind: input, shape index: {}]   ;;  %s9762_s9 = inlined_call_operand.vmem [shape: f32[2,64,16], index: 9, kind: output, shape index: {}]  }
   0x1   :  { %v7776_v0 = vld [vmem:[%s9753_s1 + $0x18] ss:$0 sps:$4 sm:$0x77]   ;;  %v8146_v1 = vld [vmem:[%s9753_s1 + $0x10] sm:$0xff]   ;;  %39 = vst.msk [vmem:[#allocation2 + $0x20] sm:$0xff] %vm33_vm1, %v8089_v2  ;;  %34 = vst.msk [vmem:[#allocation2] sm:$0xff] %vm33_vm1, %v8089_v2 }
   0x2   :  { %37 = vst.msk [vmem:[#allocation2 + $0x10] sm:$0xff] %vm33_vm1, %v8089_v2  ;;  %41 = vst.msk [vmem:[#allocation2 + $0x30] sm:$0xff] %vm33_vm1, %v8089_v2  ;;  %7774 = vmatprep.subr.msk.bf16.mxu0 %vm243_vm0, %v7776_v0  ;;  %v245_v3 = vsel %vm243_vm0, %v7776_v0, 0  ;;  %v7778_v4 = vld [vmem:[%s9753_s1 + $0x8] sm:$0xff]   ;;  %vm35_vm3 = vcmask 517120   ;;  %v7780_v5 = vld [vmem:[%s9754_s0] sm:$0xff]  }
   0x3   :  { %43 = vst.msk [vmem:[#allocation2 + $0x40] sm:$0xff] %vm33_vm1, %v8089_v2  ;;  %45 = vst.msk [vmem:[#allocation2 + $0x50] sm:$0xff] %vm33_vm1, %v8089_v2  ;;  %7027 = vmatpush3.bf16.msra.mxu0 %v245_v3  ;;  %7034 = vmatprep.mubr.msk.bf16.mxu0 %vm218_vm2, %v7780_v5  ;;  %v7779_v6 = vld [vmem:[%s9753_s1] sm:$0xff]   ;;  %v7781_v7 = vld [vmem:[%s9754_s0 + $0x8] sm:$0xff]   ;;  %vm4608_vm5 = vcmask 130048  }
   0x4   :  { %47 = vst.msk [vmem:[#allocation2 + $0x60] sm:$0xff] %vm33_vm1, %v8089_v2  ;;  %49 = vst.msk [vmem:[#allocation2 + $0x70] sm:$0xff] %vm33_vm1, %v8089_v2  ;;  %7028 = vmatprep.subr.bf16.mxu0 %v8146_v1  ;;  %v7782_v8 = vld [vmem:[%s9754_s0 + $0x10] sm:$0xff]   ;;  %v7783_v9 = vld [vmem:[%s9754_s0 + $0x18] sm:$0xff]  }
   0x5   :  { %51 = vst.msk [vmem:[#allocation2 + $0x80] sm:$0xff] %vm33_vm1, %v8089_v2  ;;  %53 = vst.msk [vmem:[#allocation2 + $0x90] sm:$0xff] %vm33_vm1, %v8089_v2  ;;  %v7784_v10 = vld [vmem:[%s9754_s0 + $0x20] sm:$0xff]   ;;  %v7785_v11 = vld [vmem:[%s9754_s0 + $0x28] sm:$0xff]  }
   0x6   :  { %55 = vst.msk [vmem:[#allocation2 + $0xa0] sm:$0xff] %vm33_vm1, %v8089_v2  ;;  %57 = vst.msk [vmem:[#allocation2 + $0xb0] sm:$0xff] %vm33_vm1, %v8089_v2  ;;  %v7786_v12 = vld [vmem:[%s9754_s0 + $0x30] sm:$0xff]   ;;  %v7787_v13 = vld [vmem:[%s9754_s0 + $0x38] sm:$0xff]  }
   0x7   :  { %59 = vst.msk [vmem:[#allocation2 + $0xc0] sm:$0xff] %vm33_vm1, %v8089_v2  ;;  %61 = vst.msk [vmem:[#allocation2 + $0xd0] sm:$0xff] %vm33_vm1, %v8089_v2  ;;  %7029 = vmatpush3.bf16.msra.mxu0 %v8146_v1  ;;  %v7788_v14 = vld [vmem:[%s9755_s3 + $0x58] sm:$0xff]   ;;  %v7790_v16 = vld [vmem:[%s9755_s3 + $0x50] sm:$0xff]  }
   0x8   :  { %63 = vst.msk [vmem:[#allocation2 + $0xe0] sm:$0xff] %vm33_vm1, %v8089_v2  ;;  %65 = vst.msk [vmem:[#allocation2 + $0xf0] sm:$0xff] %vm33_vm1, %v8089_v2  ;;  %7030 = vmatprep.subr.bf16.mxu0 %v7778_v4  ;;  %v7789_v15 = vld [vmem:[%s9755_s3 + $0x38] sm:$0xff]   ;;  %v7791_v17 = vld [vmem:[%s9755_s3 + $0x30] sm:$0xff]  }
   0x9   :  { %67 = vst.msk [vmem:[#allocation2 + $0x100] sm:$0xff] %vm33_vm1, %v8089_v2  ;;  %69 = vst.msk [vmem:[#allocation2 + $0x110] sm:$0xff] %vm33_vm1, %v8089_v2  ;;  %7050 = vmatprep.subr.bf16.mxu1 %v7789_v15  ;;  %v7792_v18 = vld [vmem:[%s9755_s3 + $0x48] sm:$0xff]   ;;  %v7794_v20 = vld [vmem:[%s9755_s3 + $0x40] sm:$0xff]  }
   0xa   :  { %75 = vst [vmem:[#allocation3] sm:$0xff] %v8089_v2  ;;  %76 = vst [vmem:[#allocation3 + $0x8] sm:$0xf] %v8089_v2  ;;  %7051 = vmatpush3.bf16.msra.mxu1 %v7789_v15  ;;  %v7793_v19 = vld [vmem:[%s9755_s3 + $0x28] sm:$0xff]   ;;  %v7795_v21 = vld [vmem:[%s9755_s3 + $0x20] sm:$0xff]  }
   0xb   :  { %77 = vst [vmem:[#allocation3 + $0x10] sm:$0xff] %v8089_v2  ;;  %78 = vst [vmem:[#allocation3 + $0x18] sm:$0xf] %v8089_v2  ;;  %7031 = vmatpush3.bf16.msra.mxu0 %v7778_v4  ;;  %7052 = vmatprep.subr.bf16.mxu1 %v7791_v17  ;;  %v8363_v22 = vld [vmem:[%s9755_s3 + $0x98] sm:$0xff]   ;;  %v8375_v24 = vld [vmem:[%s9756_s2] ss:$0 sm:$0xff] }
   0xc   :  { %79 = vst [vmem:[#allocation3 + $0x20] sm:$0xff] %v8089_v2  ;;  %80 = vst [vmem:[#allocation3 + $0x28] sm:$0xf] %v8089_v2  ;;  %7032 = vmatprep.subr.bf16.mxu0 %v7779_v6  ;;  %v8369_v23 = vld [vmem:[%s9755_s3 + $0x18] sm:$0xff]   ;;  %v423_v58 = vld [vmem:[#allocation2 + $0x10] sm:$0xff] }
   0xd   :  { %81 = vst [vmem:[#allocation3 + $0x30] sm:$0xff] %v8089_v2  ;;  %82 = vst [vmem:[#allocation3 + $0x38] sm:$0xf] %v8089_v2 }
   0xe   :  { %83 = vst [vmem:[#allocation3 + $0x40] sm:$0xff] %v8089_v2  ;;  %84 = vst [vmem:[#allocation3 + $0x48] sm:$0xf] %v8089_v2  ;;  %7053 = vmatpush3.bf16.msra.mxu1 %v7791_v17 }
   0xf   :  { %85 = vst [vmem:[#allocation3 + $0x50] sm:$0xff] %v8089_v2  ;;  %86 = vst [vmem:[#allocation3 + $0x58] sm:$0xf] %v8089_v2  ;;  %7033 = vmatpush3.bf16.msra.mxu0 %v7779_v6  ;;  %7054 = vmatprep.subr.bf16.mxu1 %v7793_v19 }
  0x10   :  { %87 = vst.msk [vmem:[#allocation4] sm:$0xff] %vm33_vm1, %v8089_v2  ;;  %89 = vst.msk [vmem:[#allocation4 + $0x10] sm:$0xff] %vm33_vm1, %v8089_v2  ;;  %7074 = vmatprep.subr.bf16.mxu0 %v7788_v14 }
  0x11   :  { %91 = vst.msk [vmem:[#allocation4 + $0x20] sm:$0xff] %vm33_vm1, %v8089_v2  ;;  %93 = vst.msk [vmem:[#allocation4 + $0x30] sm:$0xff] %vm33_vm1, %v8089_v2 }
  0x12   :  { %95 = vst.msk [vmem:[#allocation4 + $0x40] sm:$0xff] %vm33_vm1, %v8089_v2  ;;  %97 = vst.msk [vmem:[#allocation4 + $0x50] sm:$0xff] %vm33_vm1, %v8089_v2  ;;  %7035 = vmatmul.mubr.msk.bf16.vlgmr.msra.gmra.mxu0 %vm218_vm2, %v7781_v7  ;;  %7055 = vmatpush3.bf16.msra.mxu1 %v7793_v19 }
  0x13   :  { %99 = vst.msk [vmem:[#allocation4 + $0x60] sm:$0xff] %vm33_vm1, %v8089_v2  ;;  %101 = vst.msk [vmem:[#allocation4 + $0x70] sm:$0xff] %vm33_vm1, %v8089_v2  ;;  %7038 = vmatprep.mubr.msk.bf16.mxu0 %vm218_vm2, %v7782_v8  ;;  %7075 = vmatpush3.bf16.msra.mxu0 %v7788_v14 }
  0x14   :  { %103 = vst.msk [vmem:[#allocation4 + $0x80] sm:$0xff] %vm33_vm1, %v8089_v2  ;;  %105 = vst.msk [vmem:[#allocation4 + $0x90] sm:$0xff] %vm33_vm1, %v8089_v2  ;;  %7076 = vmatprep.subr.bf16.mxu0 %v7790_v16  ;;  %7056 = vmatprep.subr.bf16.mxu1 %v7795_v21 }
  0x15   :  { %107 = vst.msk [vmem:[#allocation4 + $0xa0] sm:$0xff] %vm33_vm1, %v8089_v2  ;;  %109 = vst.msk [vmem:[#allocation4 + $0xb0] sm:$0xff] %vm33_vm1, %v8089_v2 }
  0x16   :  { %111 = vst.msk [vmem:[#allocation4 + $0xc0] sm:$0xff] %vm33_vm1, %v8089_v2  ;;  %113 = vst.msk [vmem:[#allocation4 + $0xd0] sm:$0xff] %vm33_vm1, %v8089_v2  ;;  %7057 = vmatpush3.bf16.msra.mxu1 %v7795_v21 }
  0x17   :  { %115 = vst.msk [vmem:[#allocation4 + $0xe0] sm:$0xff] %vm33_vm1, %v8089_v2  ;;  %117 = vst.msk [vmem:[#allocation4 + $0xf0] sm:$0xff] %vm33_vm1, %v8089_v2  ;;  %7077 = vmatpush3.bf16.msra.mxu0 %v7790_v16  ;;  %7062 = vmatprep.subr.bf16.mxu1 %v8369_v23 }
  0x18   :  { %119 = vst.msk [vmem:[#allocation4 + $0x100] sm:$0xff] %vm33_vm1, %v8089_v2  ;;  %121 = vst.msk [vmem:[#allocation4 + $0x110] sm:$0xff] %vm33_vm1, %v8089_v2  ;;  %7078 = vmatprep.subr.bf16.mxu0 %v7792_v18 }
  0x19   :  { %123 = vst.msk [vmem:[#allocation4 + $0x120] sm:$0xff] %vm33_vm1, %v8089_v2  ;;  %125 = vst.msk [vmem:[#allocation4 + $0x130] sm:$0xff] %vm33_vm1, %v8089_v2 }
  0x1a   :  { %40 = vst.msk [vmem:[#allocation2 + $0x28] sm:$0x3] %vm35_vm3, %v8089_v2  ;;  %36 = vst.msk [vmem:[#allocation2 + $0x8] sm:$0x3] %vm35_vm3, %v8089_v2  ;;  %7039 = vmatmul.mubr.msk.bf16.gmra.mxu0 %vm218_vm2, %v7783_v9 }
  0x1b   :  { %44 = vst.msk [vmem:[#allocation2 + $0x48] sm:$0x3] %vm35_vm3, %v8089_v2  ;;  %48 = vst.msk [vmem:[#allocation2 + $0x68] sm:$0x3] %vm35_vm3, %v8089_v2  ;;  %7042 = vmatprep.mubr.msk.bf16.mxu0 %vm218_vm2, %v7784_v10  ;;  %7079 = vmatpush3.bf16.msra.mxu0 %v7792_v18 }
  0x1c   :  { %52 = vst.msk [vmem:[#allocation2 + $0x88] sm:$0x3] %vm35_vm3, %v8089_v2  ;;  %56 = vst.msk [vmem:[#allocation2 + $0xa8] sm:$0x3] %vm35_vm3, %v8089_v2  ;;  %7080 = vmatprep.subr.bf16.mxu0 %v7794_v20 }
  0x1d   :  { %60 = vst.msk [vmem:[#allocation2 + $0xc8] sm:$0x3] %vm35_vm3, %v8089_v2  ;;  %64 = vst.msk [vmem:[#allocation2 + $0xe8] sm:$0x3] %vm35_vm3, %v8089_v2 }
  0x1e   :  { %68 = vst.msk [vmem:[#allocation2 + $0x108] sm:$0x3] %vm35_vm3, %v8089_v2  ;;  %88 = vst.msk [vmem:[#allocation4 + $0x8] sm:$0x3] %vm35_vm3, %v8089_v2 }
  0x1f   :  { %90 = vst.msk [vmem:[#allocation4 + $0x18] sm:$0x3] %vm35_vm3, %v8089_v2  ;;  %92 = vst.msk [vmem:[#allocation4 + $0x28] sm:$0x3] %vm35_vm3, %v8089_v2  ;;  %7081 = vmatpush3.bf16.msra.mxu0 %v7794_v20 }
  0x20   :  { %94 = vst.msk [vmem:[#allocation4 + $0x38] sm:$0x3] %vm35_vm3, %v8089_v2  ;;  %96 = vst.msk [vmem:[#allocation4 + $0x48] sm:$0x3] %vm35_vm3, %v8089_v2  ;;  %7098 = vmatprep.subr.bf16.mxu0 %v8363_v22 }
  0x21   :  { %98 = vst.msk [vmem:[#allocation4 + $0x58] sm:$0x3] %vm35_vm3, %v8089_v2  ;;  %100 = vst.msk [vmem:[#allocation4 + $0x68] sm:$0x3] %vm35_vm3, %v8089_v2  ;;  %v596_v47 = vld [vmem:[#allocation2 + $0x2] sm:$0xff] }
  0x22   :  { %102 = vst.msk [vmem:[#allocation4 + $0x78] sm:$0x3] %vm35_vm3, %v8089_v2  ;;  %104 = vst.msk [vmem:[#allocation4 + $0x88] sm:$0x3] %vm35_vm3, %v8089_v2  ;;  %7043 = vmatmul.mubr.msk.bf16.gmra.mxu0 %vm218_vm2, %v7785_v11 }
  0x23   :  { %106 = vst.msk [vmem:[#allocation4 + $0x98] sm:$0x3] %vm35_vm3, %v8089_v2  ;;  %108 = vst.msk [vmem:[#allocation4 + $0xa8] sm:$0x3] %vm35_vm3, %v8089_v2  ;;  %7046 = vmatprep.mubr.msk.bf16.mxu0 %vm218_vm2, %v7786_v12 }
  0x24   :  { %110 = vst.msk [vmem:[#allocation4 + $0xb8] sm:$0x3] %vm35_vm3, %v8089_v2  ;;  %112 = vst.msk [vmem:[#allocation4 + $0xc8] sm:$0x3] %vm35_vm3, %v8089_v2 }
  0x25   :  { %114 = vst.msk [vmem:[#allocation4 + $0xd8] sm:$0x3] %vm35_vm3, %v8089_v2  ;;  %116 = vst.msk [vmem:[#allocation4 + $0xe8] sm:$0x3] %vm35_vm3, %v8089_v2 }
  0x26   :  { %118 = vst.msk [vmem:[#allocation4 + $0xf8] sm:$0x3] %vm35_vm3, %v8089_v2  ;;  %120 = vst.msk [vmem:[#allocation4 + $0x108] sm:$0x3] %vm35_vm3, %v8089_v2 }
  0x27   :  { %122 = vst.msk [vmem:[#allocation4 + $0x118] sm:$0x3] %vm35_vm3, %v8089_v2  ;;  %124 = vst.msk [vmem:[#allocation4 + $0x128] sm:$0x3] %vm35_vm3, %v8089_v2 }
  0x28   :  { %126 = vst.msk [vmem:[#allocation4 + $0x138] sm:$0x3] %vm35_vm3, %v8089_v2 }
  0x2a   :  { %7047 = vmatmul.mubr.msk.bf16.gmra.mxu0 %vm218_vm2, %v7787_v13 }
  0xd2   :  { %v7036_v25 = vpop.f32.mrf.mxu0 }
  0xd3   :  { %v290_v26 = vadd.f32 %v7036_v25, %v8375_v24 }
  0xd4   :  { %v281_v27 = vpop.f32.mrf.mxu0 }
  0xd5   :  { %v346_v28 = vmul.f32 0.01, %v290_v26  ;;  %v282_v29 = vadd.f32 %v8375_v24, %v281_v27 }
  0xd6   :  { %v7037_v30 = vpop.f32.mrf.mxu0 }
  0xd7   :  { %v362_v31 = vmax.f32 %v290_v26, %v346_v28  ;;  %v344_v32 = vmul.f32 0.01, %v282_v29  ;;  %v293_v33 = vadd.f32 %v7037_v30, %v8375_v24 }
  0xd8   :  { %v284_v34 = vpop.f32.mrf.mxu0 }
  0xd9   :  { %381 = vst.msk [vmem:[#allocation2 + $0x22] sm:$0xff] %vm33_vm1, %v362_v31  ;;  %v360_v35 = vmax.f32 %v282_v29, %v344_v32  ;;  %v347_v36 = vmul.f32 0.01, %v293_v33  ;;  %v285_v37 = vadd.f32 %v8375_v24, %v284_v34 }
  0xda   :  { %v7040_v38 = vpop.f32.mrf.mxu0 }
  0xdb   :  { %377 = vst.msk [vmem:[#allocation2 + $0xa2] sm:$0xff] %vm33_vm1, %v360_v35  ;;  %v363_v39 = vmax.f32 %v293_v33, %v347_v36  ;;  %v345_v40 = vmul.f32 0.01, %v285_v37  ;;  %v306_v41 = vadd.f32 %v7040_v38, %v8375_v24  ;;  %v7798_v36 = vld [vmem:[%s9755_s3 + $0x90] sm:$0xff]  }
  0xdc   :  { %v297_v42 = vpop.f32.mrf.mxu0 }
  0xdd   :  { %383 = vst.msk [vmem:[#allocation2 + $0x30] sm:$0xff] %vm33_vm1, %v363_v39  ;;  %v361_v43 = vmax.f32 %v285_v37, %v345_v40  ;;  %v350_v44 = vmul.f32 0.01, %v306_v41  ;;  %v298_v45 = vadd.f32 %v8375_v24, %v297_v42  ;;  %v408_v40 = vld [vmem:[#allocation2] sm:$0xff] }
  0xde   :  { %v7041_v46 = vpop.f32.mrf.mxu0 }
  0xdf   :  { %379 = vst.msk [vmem:[#allocation2 + $0xb0] sm:$0xff] %vm33_vm1, %v361_v43  ;;  %v366_v48 = vmax.f32 %v306_v41, %v350_v44  ;;  %v348_v49 = vmul.f32 0.01, %v298_v45  ;;  %v309_v50 = vadd.f32 %v7041_v46, %v8375_v24 }
  0xe0   :  { %v300_v51 = vpop.f32.mrf.mxu0  ;;  %v8388_v52 = vld [vmem:[#allocation2 + $0x22] sm:$0xff] }
  0xe1   :  { %389 = vst.msk [vmem:[#allocation2 + $0x42] sm:$0xff] %vm33_vm1, %v366_v48  ;;  %v364_v53 = vmax.f32 %v298_v45, %v348_v49  ;;  %v351_v54 = vmul.f32 0.01, %v309_v50  ;;  %v301_v55 = vadd.f32 %v8375_v24, %v300_v51  ;;  %v600_v56 = vpack.c.bf16 %v8388_v52, %v596_v47  ;;  %v409_v42 = vld [vmem:[#allocation2 + $0x20] sm:$0xff]  ;;  %v7799_v45 = vld [vmem:[%s9755_s3 + $0x10] sm:$0xff]   ;;  %v7801_v47 = vld [vmem:[%s9755_s3 + $0x8] sm:$0xff]  }
  0xe2   :  { %v7044_v57 = vpop.f32.mrf.mxu0  ;;  %v412_v46 = vpack.c.bf16 %v409_v42, %v408_v40  ;;  %v7802_v48 = vld [vmem:[%s9755_s3 + $0x80] sm:$0xff]   ;;  %v7804_v49 = vld [vmem:[%s9755_s3 + $0xd8] sm:$0xff]  }
  0xe3   :  { %385 = vst.msk [vmem:[#allocation2 + $0xc2] sm:$0xff] %vm33_vm1, %v364_v53  ;;  %v367_v59 = vmax.f32 %v309_v50, %v351_v54  ;;  %v349_v60 = vmul.f32 0.01, %v301_v55  ;;  %v322_v61 = vadd.f32 %v7044_v57, %v8375_v24  ;;  %7082 = vmatprep.mubr.msk.bf16.mxu0 %vm33_vm1, %v600_v56  ;;  %v7806_v57 = vld [vmem:[%s9755_s3 + $0xd0] sm:$0xff]   ;;  %v7830_v40 = vld [vmem:[%s9757_s5 + $0x60] sm:$0xff]  }
  0xe4   :  { %v313_v62 = vpop.f32.mrf.mxu0  ;;  %v8396_v63 = vld [vmem:[#allocation2 + $0x30] sm:$0xff] }
  0xe5   :  { %391 = vst.msk [vmem:[#allocation2 + $0x50] sm:$0xff] %vm33_vm1, %v367_v59  ;;  %v365_v0 = vmax.f32 %v301_v55, %v349_v60  ;;  %v354_v1 = vmul.f32 0.01, %v322_v61  ;;  %v314_v2 = vadd.f32 %v8375_v24, %v313_v62  ;;  %v427_v3 = vpack.c.bf16 %v8396_v63, %v423_v58  ;;  %v7805_v55 = vld [vmem:[%s9755_s3 + $0x78] sm:$0xff]   ;;  %v7807_v62 = vld [vmem:[%s9755_s3 + $0x70] sm:$0xff]  }
  0xe6   :  { %v7045_v4 = vpop.f32.mrf.mxu0  ;;  %v792_v35 = vld [vmem:[#allocation2 + $0xb0] sm:$0xff] }
  0xe7   :  { %387 = vst.msk [vmem:[#allocation2 + $0xd0] sm:$0xff] %vm33_vm1, %v365_v0  ;;  %v370_v5 = vmax.f32 %v322_v61, %v354_v1  ;;  %v352_v6 = vmul.f32 0.01, %v314_v2  ;;  %v325_v7 = vadd.f32 %v7045_v4, %v8375_v24  ;;  %7058 = vmatprep.mubr.msk.bf16.mxu1 %vm33_vm1, %v427_v3  ;;  %v694_v61 = vld [vmem:[#allocation2 + $0xa0] sm:$0xff]  ;;  %v7808_v1 = vld [vmem:[%s9755_s3 + $0xc8] sm:$0xff]  }
  0xe8   :  { %v316_v8 = vpop.f32.mrf.mxu0  ;;  %v8412_v29 = vld [vmem:[#allocation2 + $0x42] sm:$0xff] }
  0xe9   :  { %397 = vst.msk [vmem:[#allocation2 + $0x62] sm:$0xff] %vm33_vm1, %v370_v5  ;;  %v368_v9 = vmax.f32 %v314_v2, %v352_v6  ;;  %v355_v10 = vmul.f32 0.01, %v325_v7  ;;  %v317_v11 = vadd.f32 %v8375_v24, %v316_v8  ;;  %v989_v54 = vld [vmem:[#allocation2 + $0x40] sm:$0xff]  ;;  %v7809_v2 = vld [vmem:[%s9755_s3 + $0x68] sm:$0xff]   ;;  %v7812_v5 = vld [vmem:[%s9755_s3 + $0x118] sm:$0xff]  }
  0xea   :  { %v7048_v12 = vpop.f32.mrf.mxu0  ;;  %v992_v58 = vpack.c.bf16 %v989_v54, %v409_v42  ;;  %v695_v59 = vld [vmem:[#allocation2 + $0xc0] sm:$0xff] }
  0xeb   :  { %393 = vst.msk [vmem:[#allocation2 + $0xe2] sm:$0xff] %vm33_vm1, %v368_v9  ;;  %v371_v13 = vmax.f32 %v325_v7, %v355_v10  ;;  %v353_v14 = vmul.f32 0.01, %v317_v11  ;;  %v338_v15 = vadd.f32 %v7048_v12, %v8375_v24  ;;  %v698_v0 = vpack.c.bf16 %v695_v59, %v694_v61  ;;  %v7810_v3 = vld [vmem:[%s9755_s3 + $0xc0] sm:$0xff]   ;;  %v7813_v9 = vld [vmem:[%s9755_s3 + $0xb8] sm:$0xff]   ;;  %v7814_v10 = vld [vmem:[%s9755_s3 + $0x110] sm:$0xff]  }
  0xec   :  { %v329_v16 = vpop.f32.mrf.mxu0  ;;  %v7811_v4 = vld [vmem:[%s9755_s3 + $0x60] sm:$0xff]  }
  0xed   :  { %399 = vst.msk [vmem:[#allocation2 + $0x70] sm:$0xff] %vm33_vm1, %v371_v13  ;;  %v369_v17 = vmax.f32 %v317_v11, %v353_v14  ;;  %v358_v18 = vmul.f32 0.01, %v338_v15  ;;  %v330_v19 = vadd.f32 %v8375_v24, %v329_v16  ;;  %v1188_v11 = vpack.c.bf16 %v8412_v29, %v8388_v52  ;;  %v891_v12 = vld [vmem:[#allocation2 + $0xc2] sm:$0xff]  ;;  %v7815_v16 = vld [vmem:[%s9755_s3 + $0xb0] sm:$0xff]  }
  0xee   :  { %v7049_v20 = vpop.f32.mrf.mxu0  ;;  %v793_v27 = vld [vmem:[#allocation2 + $0xd0] sm:$0xff]  ;;  %v7816_v52 = vld [vmem:[%s9755_s3 + $0x108] sm:$0xff]   ;;  %v7831_v42 = vld [vmem:[%s9757_s5 + $0x20] sm:$0xff]  }
  0xef   :  { %395 = vst.msk [vmem:[#allocation2 + $0xf0] sm:$0xff] %vm33_vm1, %v369_v17  ;;  %v374_v21 = vmax.f32 %v338_v15, %v358_v18  ;;  %v356_v25 = vmul.f32 0.01, %v330_v19  ;;  %v341_v26 = vadd.f32 %v7049_v20, %v8375_v24  ;;  %v796_v37 = vpack.c.bf16 %v793_v27, %v792_v35  ;;  %v890_v15 = vld [vmem:[#allocation2 + $0xa2] sm:$0xff]  ;;  %v7824_v35 = vld [vmem:[%s9757_s5 + $0x78] sm:$0xff]  }
  0xf0   :  { %v332_v28 = vpop.f32.mrf.mxu0  ;;  %v8414_v30 = vld [vmem:[#allocation2 + $0x62] sm:$0xff]  ;;  %v894_v17 = vpack.c.bf16 %v891_v12, %v890_v15 }
  0xf1   :  { %405 = vst.msk [vmem:[#allocation2 + $0x82] sm:$0xff] %vm33_vm1, %v374_v21  ;;  %v372_v31 = vmax.f32 %v330_v19, %v356_v25  ;;  %v359_v32 = vmul.f32 0.01, %v341_v26  ;;  %v333_v33 = vadd.f32 %v8375_v24, %v332_v28  ;;  %v601_v34 = vpack.c.bf16 %v8414_v30, %v8412_v29  ;;  %v8427_v24 = vld [vmem:[#allocation2 + $0x50] sm:$0xff]  ;;  %v411_v56 = vld [vmem:[#allocation2 + $0x60] sm:$0xff]  ;;  %v7817_v18 = vld [vmem:[%s9755_s3 + $0xa8] sm:$0xff]  }
  0xf2   :  { %v413_v60 = vpack.c.bf16 %v411_v56, %v989_v54  ;;  %v696_v13 = vld [vmem:[#allocation2 + $0xe0] sm:$0xff]  ;;  %v7820_v25 = vld [vmem:[%s9755_s3 + $0xf8] sm:$0xff]  }
  0xf3   :  { %401 = vst.msk [vmem:[#allocation2 + $0x102] sm:$0xff] %vm33_vm1, %v372_v31  ;;  %v375_v38 = vmax.f32 %v341_v26, %v359_v32  ;;  %v357_v39 = vmul.f32 0.01, %v333_v33  ;;  %7083 = vmatmul.mubr.msk.bf16.vlgmr.msra.gmra.mxu0 %vm33_vm1, %v601_v34  ;;  %v7818_v19 = vld [vmem:[%s9755_s3 + $0x100] sm:$0xff]   ;;  %v7821_v31 = vld [vmem:[%s9755_s3 + $0xf0] sm:$0xff]   ;;  %v1090_v32 = vpack.c.bf16 %v8427_v24, %v8396_v63 }
  0xf4   :  { %7099 = vmatpush3.bf16.msra.mxu0 %v8363_v22  ;;  %7106 = vmatprep.mubr.msk.bf16.mxu0 %vm33_vm1, %v796_v37  ;;  %v8429_v41 = vld [vmem:[#allocation2 + $0x70] sm:$0xff]  ;;  %v7800_v22 = vld [vmem:[%s9755_s3 + $0x88] sm:$0xff]   ;;  %v7819_v20 = vld [vmem:[%s9755_s3 + $0xa0] sm:$0xff]  }
  0xf5   :  { %407 = vst.msk [vmem:[#allocation2 + $0x90] sm:$0xff] %vm33_vm1, %v375_v38  ;;  %v373_v43 = vmax.f32 %v333_v33, %v357_v39  ;;  %7100 = vmatprep.subr.bf16.mxu0 %v7798_v36  ;;  %v428_v44 = vpack.c.bf16 %v8429_v41, %v8427_v24  ;;  %v892_v28 = vld [vmem:[#allocation2 + $0xe2] sm:$0xff]  ;;  %v7825_v37 = vld [vmem:[%s9757_s5 + $0x38] sm:$0xff]   ;;  %v7827_v38 = vld [vmem:[%s9757_s5 + $0x30] sm:$0xff]  }
  0xf6   :  { %v794_v50 = vld [vmem:[#allocation2 + $0xf0] sm:$0xff]  ;;  %v7823_v33 = vld [vmem:[%s9755_s3 + $0xe0] sm:$0xff]   ;;  %v7828_v39 = vld [vmem:[%s9757_s5 + $0x68] sm:$0xff]  }
  0xf7   :  { %403 = vst.msk [vmem:[#allocation2 + $0x110] sm:$0xff] %vm33_vm1, %v373_v43  ;;  %7059 = vmatmul.mubr.msk.bf16.vlgmr.msra.gmra.mxu1 %vm33_vm1, %v428_v44  ;;  %v7829_v24 = vld [vmem:[%s9757_s5 + $0x28] sm:$0xff]   ;;  %v7834_v43 = vld [vmem:[%s9757_s5 + $0x50] sm:$0xff]   ;;  %v7833_v44 = vld [vmem:[%s9757_s5 + $0x18] sm:$0xff]  }
  0xf8   :  { %7063 = vmatpush3.bf16.msra.mxu1 %v8369_v23  ;;  %7101 = vmatpush3.bf16.msra.mxu0 %v7798_v36  ;;  %v7803_v23 = vld [vmem:[%s9755_s3] sm:$0xff]   ;;  %v7826_v36 = vld [vmem:[%s9757_s5 + $0x70] sm:$0xff]  }
  0xf9   :  { %7070 = vmatprep.mubr.msk.bf16.mxu1 %vm33_vm1, %v412_v46  ;;  %7064 = vmatprep.subr.bf16.mxu1 %v7799_v45  ;;  %v991_v6 = vld [vmem:[#allocation2 + $0x80] sm:$0xff] }
  0xfa   :  { %7102 = vmatprep.subr.bf16.mxu0 %v7800_v22  ;;  %v993_v7 = vpack.c.bf16 %v991_v6, %v411_v56  ;;  %v697_v8 = vld [vmem:[#allocation2 + $0x100] sm:$0xff] }
  0xfb   :  { %v699_v14 = vpack.c.bf16 %v697_v8, %v696_v13  ;;  %v1187_v21 = vld [vmem:[#allocation2 + $0x82] sm:$0xff] }
  0xfc   :  { %7065 = vmatpush3.bf16.msra.mxu1 %v7799_v45  ;;  %7103 = vmatpush3.bf16.msra.mxu0 %v7800_v22  ;;  %v1189_v26 = vpack.c.bf16 %v1187_v21, %v8414_v30  ;;  %v893_v27 = vld [vmem:[#allocation2 + $0x102] sm:$0xff]  ;;  %v1089_v34 = vld [vmem:[#allocation2 + $0x90] sm:$0xff] }
  0xfd   :  { %7066 = vmatprep.subr.bf16.mxu1 %v7801_v47  ;;  %7104 = vmatprep.subr.bf16.mxu0 %v7802_v48  ;;  %v895_v29 = vpack.c.bf16 %v893_v27, %v892_v28  ;;  %v7822_v30 = vld [vmem:[%s9755_s3 + $0xe8] sm:$0xff]   ;;  %v1091_v63 = vpack.c.bf16 %v1089_v34, %v8429_v41  ;;  %v7832_v41 = vld [vmem:[%s9757_s5 + $0x58] sm:$0xff]   ;;  %v7835_v22 = vld [vmem:[%s9757_s5 + $0x10] sm:$0xff]  }
  0xfe   :  { %v795_v51 = vld [vmem:[#allocation2 + $0x110] sm:$0xff]  ;;  %v7836_v45 = vld [vmem:[%s9757_s5 + $0x48] sm:$0xff]   ;;  %v7838_v46 = vld [vmem:[%s9757_s5 + $0x40] sm:$0xff]  }
  0xff   :  { %v797_v53 = vpack.c.bf16 %v795_v51, %v794_v50 }
 0x100   :  { %7067 = vmatpush3.bf16.msra.mxu1 %v7801_v47  ;;  %7105 = vmatpush3.bf16.msra.mxu0 %v7802_v48  ;;  %v7837_v47 = vld [vmem:[%s9757_s5 + $0x8] sm:$0xff]   ;;  %v7839_v48 = vld [vmem:[%s9757_s5] sm:$0xff]  }
 0x101   :  { %7068 = vmatprep.subr.bf16.mxu1 %v7803_v23  ;;  %7122 = vmatprep.subr.bf16.mxu0 %v7804_v49 }
 0x103   :  { %7107 = vmatmul.mubr.msk.bf16.vlgmr.msra.gmra.mxu0 %vm33_vm1, %v797_v53 }
 0x104   :  { %7069 = vmatpush3.bf16.msra.mxu1 %v7803_v23  ;;  %7123 = vmatpush3.bf16.msra.mxu0 %v7804_v49  ;;  %v8582_v23 = vld [vmem:[%s9757_s5 + $0xb8] sm:$0xff]  }
 0x105   :  { %7130 = vmatprep.mubr.msk.bf16.mxu0 %vm33_vm1, %v992_v58  ;;  %7086 = vmatprep.subr.bf16.mxu1 %v7805_v55  ;;  %v8588_v49 = vld [vmem:[%s9757_s5 + $0xf8] sm:$0xff]  }
 0x106   :  { %7124 = vmatprep.subr.bf16.mxu0 %v7806_v57 }
 0x107   :  { %7071 = vmatmul.mubr.msk.bf16.vlgmr.msra.gmra.mxu1 %vm33_vm1, %v413_v60 }
 0x108   :  { %7087 = vmatpush3.bf16.msra.mxu1 %v7805_v55  ;;  %7094 = vmatprep.mubr.msk.bf16.mxu1 %vm33_vm1, %v698_v0 }
 0x109   :  { %7125 = vmatpush3.bf16.msra.mxu0 %v7806_v57  ;;  %7088 = vmatprep.subr.bf16.mxu1 %v7807_v62 }
 0x10a   :  { %7126 = vmatprep.subr.bf16.mxu0 %v7808_v1 }
 0x10c   :  { %7089 = vmatpush3.bf16.msra.mxu1 %v7807_v62 }
 0x10d   :  { %7127 = vmatpush3.bf16.msra.mxu0 %v7808_v1  ;;  %7090 = vmatprep.subr.bf16.mxu1 %v7809_v2 }
 0x10e   :  { %7128 = vmatprep.subr.bf16.mxu0 %v7810_v3 }
 0x110   :  { %7091 = vmatpush3.bf16.msra.mxu1 %v7809_v2 }
 0x111   :  { %7129 = vmatpush3.bf16.msra.mxu0 %v7810_v3  ;;  %7092 = vmatprep.subr.bf16.mxu1 %v7811_v4 }
 0x112   :  { %7146 = vmatprep.subr.bf16.mxu0 %v7812_v5 }
 0x114   :  { %7131 = vmatmul.mubr.msk.bf16.vlgmr.msra.gmra.mxu0 %vm33_vm1, %v993_v7  ;;  %7093 = vmatpush3.bf16.msra.mxu1 %v7811_v4 }
 0x115   :  { %7147 = vmatpush3.bf16.msra.mxu0 %v7812_v5  ;;  %7154 = vmatprep.mubr.msk.bf16.mxu0 %vm33_vm1, %v1188_v11 }
 0x116   :  { %7110 = vmatprep.subr.bf16.mxu1 %v7813_v9  ;;  %7148 = vmatprep.subr.bf16.mxu0 %v7814_v10 }
 0x117   :  { %7095 = vmatmul.mubr.msk.bf16.vlgmr.msra.gmra.mxu1 %vm33_vm1, %v699_v14 }
 0x118   :  { %7111 = vmatpush3.bf16.msra.mxu1 %v7813_v9  ;;  %7118 = vmatprep.mubr.msk.bf16.mxu1 %vm33_vm1, %v894_v17 }
 0x119   :  { %7149 = vmatpush3.bf16.msra.mxu0 %v7814_v10  ;;  %7112 = vmatprep.subr.bf16.mxu1 %v7815_v16 }
 0x11a   :  { %7150 = vmatprep.subr.bf16.mxu0 %v7816_v52 }
 0x11c   :  { %7113 = vmatpush3.bf16.msra.mxu1 %v7815_v16 }
 0x11d   :  { %7151 = vmatpush3.bf16.msra.mxu0 %v7816_v52  ;;  %7114 = vmatprep.subr.bf16.mxu1 %v7817_v18 }
 0x11e   :  { %7152 = vmatprep.subr.bf16.mxu0 %v7818_v19 }
 0x120   :  { %7115 = vmatpush3.bf16.msra.mxu1 %v7817_v18 }
 0x121   :  { %7153 = vmatpush3.bf16.msra.mxu0 %v7818_v19  ;;  %7116 = vmatprep.subr.bf16.mxu1 %v7819_v20 }
 0x122   :  { %7178 = vmatprep.subr.bf16.mxu0 %v7825_v37 }
 0x124   :  { %7155 = vmatmul.mubr.msk.bf16.vlgmr.msra.gmra.mxu0 %vm33_vm1, %v1189_v26  ;;  %7117 = vmatpush3.bf16.msra.mxu1 %v7819_v20 }
 0x125   :  { %7134 = vmatprep.subr.bf16.mxu1 %v7820_v25  ;;  %7179 = vmatpush3.bf16.msra.mxu0 %v7825_v37 }
 0x126   :  { %7180 = vmatprep.subr.bf16.mxu0 %v7827_v38 }
 0x127   :  { %7119 = vmatmul.mubr.msk.bf16.vlgmr.msra.gmra.mxu1 %vm33_vm1, %v895_v29 }
 0x128   :  { %7135 = vmatpush3.bf16.msra.mxu1 %v7820_v25  ;;  %7142 = vmatprep.mubr.msk.bf16.mxu1 %vm33_vm1, %v1090_v32 }
 0x129   :  { %7136 = vmatprep.subr.bf16.mxu1 %v7821_v31  ;;  %7181 = vmatpush3.bf16.msra.mxu0 %v7827_v38 }
 0x12a   :  { %7182 = vmatprep.subr.bf16.mxu0 %v7829_v24 }
 0x12c   :  { %7137 = vmatpush3.bf16.msra.mxu1 %v7821_v31 }
 0x12d   :  { %7138 = vmatprep.subr.bf16.mxu1 %v7822_v30  ;;  %7183 = vmatpush3.bf16.msra.mxu0 %v7829_v24 }
 0x12e   :  { %7184 = vmatprep.subr.bf16.mxu0 %v7831_v42 }
 0x130   :  { %7139 = vmatpush3.bf16.msra.mxu1 %v7822_v30 }
 0x131   :  { %7140 = vmatprep.subr.bf16.mxu1 %v7823_v33  ;;  %7185 = vmatpush3.bf16.msra.mxu0 %v7831_v42  ;;  %v5985_v42 = vld [vmem:[%s9758_s4] ss:$0 sm:$0xff] }
 0x132   :  { %7186 = vmatprep.subr.bf16.mxu0 %v7833_v44 }
 0x134   :  { %7141 = vmatpush3.bf16.msra.mxu1 %v7823_v33 }
 0x135   :  { %7158 = vmatprep.subr.bf16.mxu1 %v7824_v35  ;;  %7187 = vmatpush3.bf16.msra.mxu0 %v7833_v44 }
 0x136   :  { %7188 = vmatprep.subr.bf16.mxu0 %v7835_v22 }
 0x137   :  { %7143 = vmatmul.mubr.msk.bf16.vlgmr.msra.gmra.mxu1 %vm33_vm1, %v1091_v63 }
 0x138   :  { %7159 = vmatpush3.bf16.msra.mxu1 %v7824_v35 }
 0x139   :  { %7160 = vmatprep.subr.bf16.mxu1 %v7826_v36  ;;  %7189 = vmatpush3.bf16.msra.mxu0 %v7835_v22 }
 0x13a   :  { %7190 = vmatprep.subr.bf16.mxu0 %v7837_v47 }
 0x13c   :  { %7161 = vmatpush3.bf16.msra.mxu1 %v7826_v36 }
 0x13d   :  { %7162 = vmatprep.subr.bf16.mxu1 %v7828_v39  ;;  %7191 = vmatpush3.bf16.msra.mxu0 %v7837_v47 }
 0x13e   :  { %7192 = vmatprep.subr.bf16.mxu0 %v7839_v48 }
 0x140   :  { %7163 = vmatpush3.bf16.msra.mxu1 %v7828_v39 }
 0x141   :  { %7164 = vmatprep.subr.bf16.mxu1 %v7830_v40  ;;  %7193 = vmatpush3.bf16.msra.mxu0 %v7839_v48 }
 0x142   :  { %7218 = vmatprep.subr.bf16.mxu0 %v8588_v49 }
 0x144   :  { %7165 = vmatpush3.bf16.msra.mxu1 %v7830_v40 }
 0x145   :  { %7166 = vmatprep.subr.bf16.mxu1 %v7832_v41 }
 0x148   :  { %7167 = vmatpush3.bf16.msra.mxu1 %v7832_v41 }
 0x149   :  { %7168 = vmatprep.subr.bf16.mxu1 %v7834_v43 }
 0x14c   :  { %7169 = vmatpush3.bf16.msra.mxu1 %v7834_v43 }
 0x14d   :  { %7170 = vmatprep.subr.bf16.mxu1 %v7836_v45 }
 0x150   :  { %7171 = vmatpush3.bf16.msra.mxu1 %v7836_v45 }
 0x151   :  { %7172 = vmatprep.subr.bf16.mxu1 %v7838_v46 }
 0x154   :  { %7173 = vmatpush3.bf16.msra.mxu1 %v7838_v46 }
 0x155   :  { %7198 = vmatprep.subr.bf16.mxu1 %v8582_v23 }
 0x1b3   :  { %v7084_v54 = vpop.f32.mrf.mxu0 }
 0x1b5   :  { %v675_v56 = vpop.f32.mrf.mxu0 }
 0x1b7   :  { %v7060_v50 = vpop.f32.mrf.mxu1  ;;  %v7085_v58 = vpop.f32.mrf.mxu0 }
 0x1b9   :  { %v502_v51 = vpop.f32.mrf.mxu1  ;;  %v678_v60 = vpop.f32.mrf.mxu0 }
 0x1bb   :  { %v7061_v53 = vpop.f32.mrf.mxu1 }
 0x1bd   :  { %v505_v55 = vpop.f32.mrf.mxu1 }
 0x1c3   :  { %v7108_v62 = vpop.f32.mrf.mxu0 }
 0x1c5   :  { %v871_v1 = vpop.f32.mrf.mxu0 }
 0x1c7   :  { %v7072_v57 = vpop.f32.mrf.mxu1  ;;  %v7109_v3 = vpop.f32.mrf.mxu0 }
 0x1c8   :  { %v590_v8 = vadd.f32 %v7072_v57, %v7060_v50 }
 0x1c9   :  { %v581_v59 = vpop.f32.mrf.mxu1  ;;  %v874_v5 = vpop.f32.mrf.mxu0 }
 0x1ca   :  { %v582_v10 = vadd.f32 %v581_v59, %v502_v51  ;;  %v692_v14 = vadd.f32 %v7084_v54, %v590_v8 }
 0x1cb   :  { %v7073_v61 = vpop.f32.mrf.mxu1 }
 0x1cc   :  { %v593_v13 = vadd.f32 %v7073_v61, %v7061_v53  ;;  %v690_v17 = vadd.f32 %v675_v56, %v582_v10  ;;  %v7842_v10 = vld [vmem:[%s9757_s5 + $0xb0] sm:$0xff]  }
 0x1cd   :  { %v584_v0 = vpop.f32.mrf.mxu1 }
 0x1ce   :  { %v585_v15 = vadd.f32 %v584_v0, %v505_v55  ;;  %v693_v20 = vadd.f32 %v7085_v58, %v593_v13 }
 0x1d0   :  { %v691_v25 = vadd.f32 %v678_v60, %v585_v15 }
 0x1d4   :  { %v7132_v7 = vpop.f32.mrf.mxu0 }
 0x1d6   :  { %v1067_v11 = vpop.f32.mrf.mxu0 }
 0x1d7   :  { %v7096_v2 = vpop.f32.mrf.mxu1 }
 0x1d8   :  { %v790_v16 = vadd.f32 %v7096_v2, %v692_v14  ;;  %v7133_v52 = vpop.f32.mrf.mxu0  ;;  %v7844_v14 = vld [vmem:[%s9757_s5 + $0xa8] sm:$0xff]  }
 0x1d9   :  { %v773_v4 = vpop.f32.mrf.mxu1 }
 0x1da   :  { %v788_v19 = vadd.f32 %v773_v4, %v690_v17  ;;  %v888_v26 = vadd.f32 %v7108_v62, %v790_v16  ;;  %v1070_v27 = vpop.f32.mrf.mxu0 }
 0x1db   :  { %v7097_v6 = vpop.f32.mrf.mxu1 }
 0x1dc   :  { %v791_v21 = vadd.f32 %v7097_v6, %v693_v20  ;;  %v886_v32 = vadd.f32 %v871_v1, %v788_v19  ;;  %v1331_v1 = vld [vmem:[#allocation3 + $0x2] sm:$0xff] }
 0x1dd   :  { %v776_v9 = vpop.f32.mrf.mxu1  ;;  %v7846_v19 = vld [vmem:[%s9757_s5 + $0xa0] sm:$0xff]   ;;  %v7845_v20 = vld [vmem:[%s9757_s5 + $0xe8] sm:$0xff]  }
 0x1de   :  { %v789_v29 = vadd.f32 %v776_v9, %v691_v25  ;;  %v889_v34 = vadd.f32 %v7109_v3, %v791_v21  ;;  %v7848_v21 = vld [vmem:[%s9757_s5 + $0x98] sm:$0xff]   ;;  %v7847_v25 = vld [vmem:[%s9757_s5 + $0xe0] sm:$0xff]  }
 0x1e0   :  { %v887_v36 = vadd.f32 %v874_v5, %v789_v29  ;;  %v7854_v29 = vld [vmem:[%s9757_s5 + $0x80] sm:$0xff]  }
 0x1e4   :  { %v7156_v30 = vpop.f32.mrf.mxu0 }
 0x1e6   :  { %v1263_v38 = vpop.f32.mrf.mxu0 }
 0x1e7   :  { %v7120_v12 = vpop.f32.mrf.mxu1 }
 0x1e8   :  { %v986_v31 = vadd.f32 %v7120_v12, %v888_v26  ;;  %v7157_v46 = vpop.f32.mrf.mxu0  ;;  %v8611_v12 = vld [vmem:[#allocation3] sm:$0xff]  ;;  %v7849_v26 = vld [vmem:[%s9757_s5 + $0xd8] sm:$0xff]  }
 0x1e9   :  { %v969_v18 = vpop.f32.mrf.mxu1 }
 0x1ea   :  { %v984_v33 = vadd.f32 %v969_v18, %v886_v32  ;;  %v1084_v37 = vadd.f32 %v7132_v7, %v986_v31  ;;  %v1266_v59 = vpop.f32.mrf.mxu0  ;;  %v7853_v31 = vld [vmem:[%s9757_s5 + $0xc8] sm:$0xff]   ;;  %v7856_v32 = vld [vmem:[%s9757_s5 + $0x178] sm:$0xff]  }
 0x1eb   :  { %v7121_v28 = vpop.f32.mrf.mxu1 }
 0x1ec   :  { %v987_v35 = vadd.f32 %v7121_v28, %v889_v34  ;;  %v1082_v41 = vadd.f32 %v1067_v11, %v984_v33  ;;  %v7851_v28 = vld [vmem:[%s9757_s5 + $0xd0] sm:$0xff]   ;;  %v7855_v33 = vld [vmem:[%s9757_s5 + $0xc0] sm:$0xff]  }
 0x1ed   :  { %v972_v63 = vpop.f32.mrf.mxu1  ;;  %v1846_v34 = vld [vmem:[#allocation3 + $0x4] sm:$0xff] }
 0x1ee   :  { %v985_v40 = vadd.f32 %v972_v63, %v887_v36  ;;  %v1085_v22 = vadd.f32 %v7133_v52, %v987_v35  ;;  %v7858_v36 = vld [vmem:[%s9757_s5 + $0x170] sm:$0xff]  }
 0x1f0   :  { %v1083_v53 = vadd.f32 %v1070_v27, %v985_v40  ;;  %v7852_v27 = vld [vmem:[%s9757_s5 + $0x88] sm:$0xff]  }
 0x1f7   :  { %v7144_v39 = vpop.f32.mrf.mxu1 }
 0x1f8   :  { %v1182_v24 = vadd.f32 %v7144_v39, %v1084_v37  ;;  %v7860_v39 = vld [vmem:[%s9757_s5 + $0x168] sm:$0xff]  }
 0x1f9   :  { %v1165_v43 = vpop.f32.mrf.mxu1 }
 0x1fa   :  { %v1280_v44 = vadd.f32 %v7156_v30, %v1182_v24  ;;  %v1180_v45 = vadd.f32 %v1165_v43, %v1082_v41  ;;  %v7859_v24 = vld [vmem:[%s9757_s5 + $0x130] sm:$0xff]   ;;  %v7862_v41 = vld [vmem:[%s9757_s5 + $0x160] sm:$0xff]   ;;  %v7864_v43 = vld [vmem:[%s9757_s5 + $0x158] sm:$0xff]  }
 0x1fb   :  { %v7145_v47 = vpop.f32.mrf.mxu1 }
 0x1fc   :  { %v1291_v48 = vadd.f32 %v5985_v42, %v1280_v44  ;;  %v1278_v50 = vadd.f32 %v1263_v38, %v1180_v45  ;;  %v1183_v51 = vadd.f32 %v7145_v47, %v1085_v22  ;;  %v7857_v38 = vld [vmem:[%s9757_s5 + $0x138] sm:$0xff]   ;;  %v7863_v44 = vld [vmem:[%s9757_s5 + $0x120] sm:$0xff]   ;;  %v7866_v45 = vld [vmem:[%s9757_s5 + $0x150] sm:$0xff]  }
 0x1fd   :  { %v1168_v54 = vpop.f32.mrf.mxu1  ;;  %v7865_v22 = vld [vmem:[%s9757_s5 + $0x118] sm:$0xff]   ;;  %v7867_v47 = vld [vmem:[%s9757_s5 + $0x110] sm:$0xff]  }
 0x1fe   :  { %v1295_v55 = vmul.f32 0.01, %v1291_v48  ;;  %v1289_v56 = vadd.f32 %v5985_v42, %v1278_v50  ;;  %v1281_v57 = vadd.f32 %v7157_v46, %v1183_v51  ;;  %v1181_v58 = vadd.f32 %v1168_v54, %v1083_v53  ;;  %v7868_v46 = vld [vmem:[%s9757_s5 + $0x148] sm:$0xff]   ;;  %v7872_v51 = vld [vmem:[%s9757_s5 + $0x1b8] sm:$0xff]   ;;  %v7871_v54 = vld [vmem:[%s9757_s5 + $0x100] sm:$0xff]  }
 0x1ff   :  { %v7869_v50 = vld [vmem:[%s9757_s5 + $0x108] sm:$0xff]  }
 0x200   :  { %v8594_v60 = vmax.f32 %v1291_v48, %v1295_v55  ;;  %v1293_v61 = vmul.f32 0.01, %v1289_v56  ;;  %v1292_v62 = vadd.f32 %v5985_v42, %v1281_v57  ;;  %v1279_v0 = vadd.f32 %v1266_v59, %v1181_v58  ;;  %v7870_v48 = vld [vmem:[%s9757_s5 + $0x140] sm:$0xff]   ;;  %v7874_v57 = vld [vmem:[%s9757_s5 + $0x1b0] sm:$0xff]   ;;  %v7873_v58 = vld [vmem:[%s9757_s5 + $0x1f8] sm:$0xff]  }
 0x201   :  { %v7876_v59 = vld [vmem:[%s9757_s5 + $0x1a8] sm:$0xff]  }
 0x202   :  { %1306 = vst [vmem:[#allocation3 + $0x32] sm:$0xff] %v8594_v60  ;;  %v1297_v2 = vmax.f32 %v1289_v56, %v1293_v61  ;;  %v1296_v3 = vmul.f32 0.01, %v1292_v62  ;;  %v1290_v4 = vadd.f32 %v5985_v42, %v1279_v0  ;;  %v7861_v42 = vld [vmem:[%s9757_s5 + $0x128] sm:$0xff]  }
 0x203   :  { %v7877_v0 = vld [vmem:[%s9757_s5 + $0x1e8] sm:$0xff]  }
 0x204   :  { %1302 = vst [vmem:[#allocation3 + $0x12] sm:$0xff] %v1297_v2  ;;  %v8597_v5 = vmax.f32 %v1292_v62, %v1296_v3  ;;  %v1294_v6 = vmul.f32 0.01, %v1290_v4  ;;  %v8599_v7 = vpack.c.bf16 %v1297_v2, %v1331_v1  ;;  %v7878_v62 = vld [vmem:[%s9757_s5 + $0x1a0] sm:$0xff]   ;;  %v7880_v1 = vld [vmem:[%s9757_s5 + $0x198] sm:$0xff]   ;;  %v7882_v3 = vld [vmem:[%s9757_s5 + $0x190] sm:$0xff]  }
 0x206   :  { %1308 = vst [vmem:[#allocation3 + $0x42] sm:$0xff] %v8597_v5  ;;  %v1298_v8 = vmax.f32 %v1290_v4, %v1294_v6  ;;  %7174 = vmatprep.mubr.bf16.mxu1 %v8599_v7  ;;  %v8686_v40 = vpack.c.bf16 %v8597_v5, %v8594_v60  ;;  %v7881_v4 = vld [vmem:[%s9757_s5 + $0x1d8] sm:$0xff]   ;;  %v7884_v5 = vld [vmem:[%s9757_s5 + $0x188] sm:$0xff]   ;;  %v7883_v6 = vld [vmem:[%s9757_s5 + $0x1d0] sm:$0xff]  }
 0x208   :  { %1304 = vst [vmem:[#allocation3 + $0x22] sm:$0xff] %v1298_v8  ;;  %v8604_v9 = vpack.c.bf16 %v8594_v60, %v1298_v8  ;;  %v8624_v18 = vpack.c.bf16 %v1298_v8, %v1297_v2  ;;  %v7875_v60 = vld [vmem:[%s9757_s5 + $0x1f0] sm:$0xff]   ;;  %v7879_v2 = vld [vmem:[%s9757_s5 + $0x1e0] sm:$0xff]   ;;  %v7885_v8 = vld [vmem:[%s9757_s5 + $0x1c8] sm:$0xff]  }
 0x209   :  { %v1312_v16 = vld [vmem:[#allocation3 + $0x30] sm:$0xff] }
 0x20a   :  { %7175 = vmatmul.mubr.bf16.vlgmr.msra.gmra.mxu1 %v8604_v9  ;;  %v8729_v55 = vld [vmem:[#allocation3 + $0x34] sm:$0xff] }
 0x20b   :  { %v1310_v11 = vld [vmem:[#allocation3 + $0x10] sm:$0xff]  ;;  %7199 = vmatpush3.bf16.msra.mxu1 %v8582_v23 }
 0x20c   :  { %v1313_v13 = vpack.c.bf16 %v1310_v11, %v8611_v12  ;;  %7200 = vmatprep.subr.bf16.mxu1 %v7842_v10  ;;  %v7843_v23 = vld [vmem:[%s9757_s5 + $0xf0] sm:$0xff]  }
 0x20d   :  { %v8663_v30 = vld [vmem:[#allocation3 + $0x40] sm:$0xff]  ;;  %v8668_v63 = vld [vmem:[#allocation3 + $0x14] sm:$0xff] }
 0x20e   :  { %7194 = vmatprep.mubr.bf16.mxu0 %v1313_v13  ;;  %v8671_v35 = vpack.c.bf16 %v8663_v30, %v1312_v16  ;;  %v1850_v37 = vpack.c.bf16 %v8668_v63, %v1846_v34  ;;  %v7890_v13 = vld [vmem:[%s9757_s5 + $0x270] sm:$0xff]   ;;  %v7905_v34 = vld [vmem:[%s9757_s5 + $0x2f8] sm:$0xff]  }
 0x20f   :  { %v1311_v15 = vld [vmem:[#allocation3 + $0x20] sm:$0xff]  ;;  %7201 = vmatpush3.bf16.msra.mxu1 %v7842_v10  ;;  %v7888_v10 = vld [vmem:[%s9757_s5 + $0x278] sm:$0xff]  }
 0x210   :  { %v8617_v17 = vpack.c.bf16 %v1312_v16, %v1311_v15  ;;  %v8619_v52 = vpack.c.bf16 %v1311_v15, %v1310_v11  ;;  %7202 = vmatprep.subr.bf16.mxu1 %v7844_v14  ;;  %v1848_v53 = vld [vmem:[#allocation3 + $0x24] sm:$0xff] }
 0x211   :  { %v8732_v56 = vpack.c.bf16 %v8729_v55, %v1848_v53  ;;  %v8749_v61 = vpack.c.bf16 %v1848_v53, %v8668_v63  ;;  %v7887_v11 = vld [vmem:[%s9757_s5 + $0x1c0] sm:$0xff]   ;;  %v7892_v16 = vld [vmem:[%s9757_s5 + $0x268] sm:$0xff]   ;;  %v7923_v53 = vld [vmem:[%s9757_s5 + $0x330] sm:$0xff]  }
 0x212   :  { %7195 = vmatmul.mubr.bf16.vlgmr.msra.gmra.mxu0 %v8617_v17  ;;  %7214 = vmatprep.mubr.bf16.mxu1 %v8619_v52  ;;  %v8796_v15 = vld [vmem:[#allocation3 + $0x44] sm:$0xff] }
 0x213   :  { %7219 = vmatpush3.bf16.msra.mxu0 %v8588_v49  ;;  %7234 = vmatprep.mubr.bf16.mxu0 %v8624_v18  ;;  %v7850_v49 = vld [vmem:[%s9757_s5 + $0x90] sm:$0xff]   ;;  %v7908_v63 = vld [vmem:[%s9757_s5 + $0x2a8] sm:$0xff]  }
 0x214   :  { %7220 = vmatprep.subr.bf16.mxu0 %v7843_v23  ;;  %7203 = vmatpush3.bf16.msra.mxu1 %v7844_v14  ;;  %v7889_v14 = vld [vmem:[%s9757_s5 + $0x238] sm:$0xff]  }
 0x215   :  { %7204 = vmatprep.subr.bf16.mxu1 %v7846_v19 }
 0x217   :  { %7221 = vmatpush3.bf16.msra.mxu0 %v7843_v23  ;;  %v8804_v23 = vpack.c.bf16 %v8796_v15, %v8729_v55  ;;  %v7926_v55 = vld [vmem:[%s9757_s5 + $0x360] sm:$0xff]  }
 0x218   :  { %7222 = vmatprep.subr.bf16.mxu0 %v7845_v20  ;;  %7205 = vmatpush3.bf16.msra.mxu1 %v7846_v19  ;;  %v7891_v19 = vld [vmem:[%s9757_s5 + $0x230] sm:$0xff]  }
 0x219   :  { %7206 = vmatprep.subr.bf16.mxu1 %v7848_v21 }
 0x21b   :  { %7223 = vmatpush3.bf16.msra.mxu0 %v7845_v20  ;;  %v7893_v20 = vld [vmem:[%s9757_s5 + $0x228] sm:$0xff]  }
 0x21c   :  { %7224 = vmatprep.subr.bf16.mxu0 %v7847_v25  ;;  %7207 = vmatpush3.bf16.msra.mxu1 %v7848_v21  ;;  %v7896_v21 = vld [vmem:[%s9757_s5 + $0x258] sm:$0xff]  }
 0x21d   :  { %7208 = vmatprep.subr.bf16.mxu1 %v7850_v49 }
 0x21f   :  { %7225 = vmatpush3.bf16.msra.mxu0 %v7847_v25  ;;  %v7895_v25 = vld [vmem:[%s9757_s5 + $0x220] sm:$0xff]  }
 0x220   :  { %7226 = vmatprep.subr.bf16.mxu0 %v7849_v26  ;;  %7209 = vmatpush3.bf16.msra.mxu1 %v7850_v49  ;;  %v7897_v49 = vld [vmem:[%s9757_s5 + $0x218] sm:$0xff]  }
 0x221   :  { %7210 = vmatprep.subr.bf16.mxu1 %v7852_v27 }
 0x223   :  { %7227 = vmatpush3.bf16.msra.mxu0 %v7849_v26  ;;  %v7900_v26 = vld [vmem:[%s9757_s5 + $0x248] sm:$0xff]  }
 0x224   :  { %7228 = vmatprep.subr.bf16.mxu0 %v7851_v28  ;;  %7211 = vmatpush3.bf16.msra.mxu1 %v7852_v27  ;;  %v7899_v27 = vld [vmem:[%s9757_s5 + $0x210] sm:$0xff]  }
 0x225   :  { %7212 = vmatprep.subr.bf16.mxu1 %v7854_v29 }
 0x227   :  { %7229 = vmatpush3.bf16.msra.mxu0 %v7851_v28  ;;  %v7902_v28 = vld [vmem:[%s9757_s5 + $0x240] sm:$0xff]  }
 0x228   :  { %7230 = vmatprep.subr.bf16.mxu0 %v7853_v31  ;;  %7213 = vmatpush3.bf16.msra.mxu1 %v7854_v29  ;;  %v7901_v29 = vld [vmem:[%s9757_s5 + $0x208] sm:$0xff]  }
 0x229   :  { %7238 = vmatprep.subr.bf16.mxu1 %v7856_v32 }
 0x22b   :  { %7231 = vmatpush3.bf16.msra.mxu0 %v7853_v31  ;;  %7215 = vmatmul.mubr.bf16.vlgmr.msra.gmra.mxu1 %v8671_v35  ;;  %v7904_v31 = vld [vmem:[%s9757_s5 + $0x2b8] sm:$0xff]  }
 0x22c   :  { %7232 = vmatprep.subr.bf16.mxu0 %v7855_v33  ;;  %7239 = vmatpush3.bf16.msra.mxu1 %v7856_v32  ;;  %v7903_v32 = vld [vmem:[%s9757_s5 + $0x200] sm:$0xff]  }
 0x22d   :  { %7254 = vmatprep.mubr.bf16.mxu1 %v1850_v37  ;;  %7240 = vmatprep.subr.bf16.mxu1 %v7858_v36  ;;  %v7910_v37 = vld [vmem:[%s9757_s5 + $0x2a0] sm:$0xff]  }
 0x22f   :  { %7233 = vmatpush3.bf16.msra.mxu0 %v7855_v33  ;;  %v7906_v33 = vld [vmem:[%s9757_s5 + $0x2b0] sm:$0xff]  }
 0x230   :  { %7258 = vmatprep.subr.bf16.mxu0 %v7857_v38  ;;  %7241 = vmatpush3.bf16.msra.mxu1 %v7858_v36  ;;  %v7907_v36 = vld [vmem:[%s9757_s5 + $0x2f0] sm:$0xff]  }
 0x231   :  { %7242 = vmatprep.subr.bf16.mxu1 %v7860_v39 }
 0x232   :  { %7235 = vmatmul.mubr.bf16.vlgmr.msra.gmra.mxu0 %v8686_v40 }
 0x233   :  { %7259 = vmatpush3.bf16.msra.mxu0 %v7857_v38  ;;  %7274 = vmatprep.mubr.bf16.mxu0 %v8599_v7  ;;  %v7886_v7 = vld [vmem:[%s9757_s5 + $0x180] sm:$0xff]   ;;  %v7912_v38 = vld [vmem:[%s9757_s5 + $0x298] sm:$0xff]  }
 0x234   :  { %7260 = vmatprep.subr.bf16.mxu0 %v7859_v24  ;;  %7243 = vmatpush3.bf16.msra.mxu1 %v7860_v39  ;;  %v7913_v39 = vld [vmem:[%s9757_s5 + $0x2d8] sm:$0xff]  }
 0x235   :  { %7244 = vmatprep.subr.bf16.mxu1 %v7862_v41 }
 0x237   :  { %7261 = vmatpush3.bf16.msra.mxu0 %v7859_v24  ;;  %v7915_v24 = vld [vmem:[%s9757_s5 + $0x2d0] sm:$0xff]  }
 0x238   :  { %7262 = vmatprep.subr.bf16.mxu0 %v7861_v42  ;;  %7245 = vmatpush3.bf16.msra.mxu1 %v7862_v41  ;;  %v7918_v41 = vld [vmem:[%s9757_s5 + $0x280] sm:$0xff]  }
 0x239   :  { %7246 = vmatprep.subr.bf16.mxu1 %v7864_v43 }
 0x23b   :  { %7263 = vmatpush3.bf16.msra.mxu0 %v7861_v42  ;;  %v7917_v42 = vld [vmem:[%s9757_s5 + $0x2c8] sm:$0xff]  }
 0x23c   :  { %7264 = vmatprep.subr.bf16.mxu0 %v7863_v44  ;;  %7247 = vmatpush3.bf16.msra.mxu1 %v7864_v43  ;;  %v7920_v43 = vld [vmem:[%s9757_s5 + $0x378] sm:$0xff]  }
 0x23d   :  { %7248 = vmatprep.subr.bf16.mxu1 %v7866_v45 }
 0x23f   :  { %7265 = vmatpush3.bf16.msra.mxu0 %v7863_v44  ;;  %v7919_v44 = vld [vmem:[%s9757_s5 + $0x2c0] sm:$0xff]  }
 0x240   :  { %7266 = vmatprep.subr.bf16.mxu0 %v7865_v22  ;;  %7249 = vmatpush3.bf16.msra.mxu1 %v7866_v45  ;;  %v2583_v45 = vpack.c.bf16 %v8611_v12, %v8663_v30  ;;  %v7924_v12 = vld [vmem:[%s9757_s5 + $0x368] sm:$0xff]  }
 0x241   :  { %7250 = vmatprep.subr.bf16.mxu1 %v7868_v46  ;;  %v2854_v30 = vld [vmem:[#allocation3 + $0x22] sm:$0xff] }
 0x243   :  { %7267 = vmatpush3.bf16.msra.mxu0 %v7865_v22  ;;  %v7922_v22 = vld [vmem:[%s9757_s5 + $0x370] sm:$0xff]  }
 0x244   :  { %7268 = vmatprep.subr.bf16.mxu0 %v7867_v47  ;;  %7251 = vmatpush3.bf16.msra.mxu1 %v7868_v46  ;;  %v7921_v46 = vld [vmem:[%s9757_s5 + $0x338] sm:$0xff]  }
 0x245   :  { %7252 = vmatprep.subr.bf16.mxu1 %v7870_v48 }
 0x247   :  { %7269 = vmatpush3.bf16.msra.mxu0 %v7867_v47  ;;  %v8907_v47 = vld [vmem:[#allocation3 + $0x42] sm:$0xff] }
 0x248   :  { %7270 = vmatprep.subr.bf16.mxu0 %v7869_v50  ;;  %7253 = vmatpush3.bf16.msra.mxu1 %v7870_v48  ;;  %v2705_v48 = vld [vmem:[#allocation3 + $0x52] sm:$0xff] }
 0x249   :  { %7278 = vmatprep.subr.bf16.mxu1 %v7872_v51 }
 0x24b   :  { %7271 = vmatpush3.bf16.msra.mxu0 %v7869_v50  ;;  %7255 = vmatmul.mubr.bf16.vlgmr.msra.gmra.mxu1 %v8732_v56  ;;  %v8914_v50 = vpack.c.bf16 %v2705_v48, %v8907_v47 }
 0x24c   :  { %7272 = vmatprep.subr.bf16.mxu0 %v7871_v54  ;;  %7279 = vmatpush3.bf16.msra.mxu1 %v7872_v51  ;;  %v2853_v51 = vld [vmem:[#allocation3 + $0x12] sm:$0xff] }
 0x24d   :  { %7294 = vmatprep.mubr.bf16.mxu1 %v8624_v18  ;;  %7280 = vmatprep.subr.bf16.mxu1 %v7874_v57 }
 0x24f   :  { %7273 = vmatpush3.bf16.msra.mxu0 %v7871_v54  ;;  %v2857_v54 = vpack.c.bf16 %v2854_v30, %v2853_v51 }
 0x250   :  { %7298 = vmatprep.subr.bf16.mxu0 %v7873_v58  ;;  %7281 = vmatpush3.bf16.msra.mxu1 %v7874_v57  ;;  %v7925_v57 = vld [vmem:[%s9757_s5 + $0x328] sm:$0xff]  }
 0x251   :  { %7282 = vmatprep.subr.bf16.mxu1 %v7876_v59 }
 0x252   :  { %7275 = vmatmul.mubr.bf16.vlgmr.msra.gmra.mxu0 %v8604_v9 }
 0x253   :  { %7299 = vmatpush3.bf16.msra.mxu0 %v7873_v58  ;;  %7314 = vmatprep.mubr.bf16.mxu0 %v8749_v61  ;;  %v7928_v58 = vld [vmem:[%s9757_s5 + $0x358] sm:$0xff]  }
 0x254   :  { %7300 = vmatprep.subr.bf16.mxu0 %v7875_v60  ;;  %7283 = vmatpush3.bf16.msra.mxu1 %v7876_v59  ;;  %v7927_v59 = vld [vmem:[%s9757_s5 + $0x320] sm:$0xff]  }
 0x255   :  { %7284 = vmatprep.subr.bf16.mxu1 %v7878_v62 }
 0x257   :  { %7301 = vmatpush3.bf16.msra.mxu0 %v7875_v60  ;;  %v7930_v60 = vld [vmem:[%s9757_s5 + $0x350] sm:$0xff]  }
 0x258   :  { %7302 = vmatprep.subr.bf16.mxu0 %v7877_v0  ;;  %7285 = vmatpush3.bf16.msra.mxu1 %v7878_v62  ;;  %v7932_v62 = vld [vmem:[%s9757_s5 + $0x348] sm:$0xff]  }
 0x259   :  { %7286 = vmatprep.subr.bf16.mxu1 %v7880_v1 }
 0x25b   :  { %7303 = vmatpush3.bf16.msra.mxu0 %v7877_v0  ;;  %v7931_v0 = vld [vmem:[%s9757_s5 + $0x310] sm:$0xff]  }
 0x25c   :  { %7304 = vmatprep.subr.bf16.mxu0 %v7879_v2  ;;  %7287 = vmatpush3.bf16.msra.mxu1 %v7880_v1  ;;  %v7934_v1 = vld [vmem:[%s9757_s5 + $0x340] sm:$0xff]  }
 0x25d   :  { %7288 = vmatprep.subr.bf16.mxu1 %v7882_v3 }
 0x25f   :  { %7305 = vmatpush3.bf16.msra.mxu0 %v7879_v2  ;;  %v7933_v2 = vld [vmem:[%s9757_s5 + $0x308] sm:$0xff]  }
 0x260   :  { %7306 = vmatprep.subr.bf16.mxu0 %v7881_v4  ;;  %7289 = vmatpush3.bf16.msra.mxu1 %v7882_v3  ;;  %v7936_v3 = vld [vmem:[%s9757_s5 + $0x3b8] sm:$0xff]  }
 0x261   :  { %7290 = vmatprep.subr.bf16.mxu1 %v7884_v5 }
 0x263   :  { %7307 = vmatpush3.bf16.msra.mxu0 %v7881_v4  ;;  %v7935_v4 = vld [vmem:[%s9757_s5 + $0x300] sm:$0xff]  }
 0x264   :  { %7308 = vmatprep.subr.bf16.mxu0 %v7883_v6  ;;  %7291 = vmatpush3.bf16.msra.mxu1 %v7884_v5  ;;  %v7938_v5 = vld [vmem:[%s9757_s5 + $0x3b0] sm:$0xff]  }
 0x265   :  { %7292 = vmatprep.subr.bf16.mxu1 %v7886_v7 }
 0x267   :  { %7309 = vmatpush3.bf16.msra.mxu0 %v7883_v6  ;;  %v2855_v6 = vld [vmem:[#allocation3 + $0x32] sm:$0xff] }
 0x268   :  { %7310 = vmatprep.subr.bf16.mxu0 %v7885_v8  ;;  %7293 = vmatpush3.bf16.msra.mxu1 %v7886_v7  ;;  %v3097_v7 = vpack.c.bf16 %v2855_v6, %v2854_v30 }
 0x269   :  { %7318 = vmatprep.subr.bf16.mxu1 %v7888_v10 }
 0x26b   :  { %7311 = vmatpush3.bf16.msra.mxu0 %v7885_v8  ;;  %7295 = vmatmul.mubr.bf16.vlgmr.msra.gmra.mxu1 %v8686_v40  ;;  %v7937_v8 = vld [vmem:[%s9757_s5 + $0x3f8] sm:$0xff]  }
 0x26c   :  { %7312 = vmatprep.subr.bf16.mxu0 %v7887_v11  ;;  %7319 = vmatpush3.bf16.msra.mxu1 %v7888_v10  ;;  %v7940_v10 = vld [vmem:[%s9757_s5 + $0x3a8] sm:$0xff]  }
 0x26d   :  { %7334 = vmatprep.mubr.bf16.mxu1 %v8624_v18  ;;  %7320 = vmatprep.subr.bf16.mxu1 %v7890_v13  ;;  %v7894_v18 = vld [vmem:[%s9757_s5 + $0x260] sm:$0xff]  }
 0x26f   :  { %7313 = vmatpush3.bf16.msra.mxu0 %v7887_v11  ;;  %v2858_v11 = vpack.c.bf16 %v8907_v47, %v2855_v6  ;;  %v3389_v6 = vld [vmem:[#allocation4 + $0x10] sm:$0xff] }
 0x270   :  { %7338 = vmatprep.subr.bf16.mxu0 %v7889_v14  ;;  %7321 = vmatpush3.bf16.msra.mxu1 %v7890_v13  ;;  %v7939_v13 = vld [vmem:[%s9757_s5 + $0x3f0] sm:$0xff]  }
 0x271   :  { %7322 = vmatprep.subr.bf16.mxu1 %v7892_v16 }
 0x272   :  { %7315 = vmatmul.mubr.bf16.vlgmr.msra.gmra.mxu0 %v8804_v23 }
 0x273   :  { %7339 = vmatpush3.bf16.msra.mxu0 %v7889_v14  ;;  %7354 = vmatprep.mubr.bf16.mxu0 %v8619_v52  ;;  %v7898_v52 = vld [vmem:[%s9757_s5 + $0x250] sm:$0xff]   ;;  %v7942_v14 = vld [vmem:[%s9757_s5 + $0x3a0] sm:$0xff]  }
 0x274   :  { %7340 = vmatprep.subr.bf16.mxu0 %v7891_v19  ;;  %7323 = vmatpush3.bf16.msra.mxu1 %v7892_v16  ;;  %v7941_v16 = vld [vmem:[%s9757_s5 + $0x3e8] sm:$0xff]  }
 0x275   :  { %7324 = vmatprep.subr.bf16.mxu1 %v7894_v18 }
 0x277   :  { %7341 = vmatpush3.bf16.msra.mxu0 %v7891_v19  ;;  %v7943_v19 = vld [vmem:[%s9757_s5 + $0x3e0] sm:$0xff]  }
 0x278   :  { %7342 = vmatprep.subr.bf16.mxu0 %v7893_v20  ;;  %7325 = vmatpush3.bf16.msra.mxu1 %v7894_v18  ;;  %v7945_v18 = vld [vmem:[%s9757_s5 + $0x3d8] sm:$0xff]  }
 0x279   :  { %7326 = vmatprep.subr.bf16.mxu1 %v7896_v21 }
 0x27b   :  { %7343 = vmatpush3.bf16.msra.mxu0 %v7893_v20 }
 0x27c   :  { %7344 = vmatprep.subr.bf16.mxu0 %v7895_v25  ;;  %7327 = vmatpush3.bf16.msra.mxu1 %v7896_v21  ;;  %v7948_v21 = vld [vmem:[%s9757_s5 + $0x388] sm:$0xff]  }
 0x27d   :  { %7328 = vmatprep.subr.bf16.mxu1 %v7898_v52 }
 0x27f   :  { %7345 = vmatpush3.bf16.msra.mxu0 %v7895_v25  ;;  %v7947_v25 = vld [vmem:[%s9757_s5 + $0x3d0] sm:$0xff]  }
 0x280   :  { %7346 = vmatprep.subr.bf16.mxu0 %v7897_v49  ;;  %7329 = vmatpush3.bf16.msra.mxu1 %v7898_v52 }
 0x281   :  { %7330 = vmatprep.subr.bf16.mxu1 %v7900_v26 }
 0x283   :  { %7347 = vmatpush3.bf16.msra.mxu0 %v7897_v49  ;;  %v7950_v49 = vld [vmem:[%s9757_s5 + $0x380] sm:$0xff]  }
 0x284   :  { %7348 = vmatprep.subr.bf16.mxu0 %v7899_v27  ;;  %7331 = vmatpush3.bf16.msra.mxu1 %v7900_v26 }
 0x285   :  { %7332 = vmatprep.subr.bf16.mxu1 %v7902_v28 }
 0x287   :  { %7349 = vmatpush3.bf16.msra.mxu0 %v7899_v27  ;;  %v7949_v27 = vld [vmem:[%s9757_s5 + $0x3c8] sm:$0xff]  }
 0x288   :  { %7350 = vmatprep.subr.bf16.mxu0 %v7901_v29  ;;  %7333 = vmatpush3.bf16.msra.mxu1 %v7902_v28 }
 0x289   :  { %7358 = vmatprep.subr.bf16.mxu1 %v7904_v31 }
 0x28b   :  { %7351 = vmatpush3.bf16.msra.mxu0 %v7901_v29  ;;  %7335 = vmatmul.mubr.bf16.vlgmr.msra.gmra.mxu1 %v8686_v40  ;;  %v7916_v40 = vld [vmem:[%s9757_s5 + $0x288] sm:$0xff]  }
 0x28c   :  { %7352 = vmatprep.subr.bf16.mxu0 %v7903_v32  ;;  %7359 = vmatpush3.bf16.msra.mxu1 %v7904_v31  ;;  %v7951_v31 = vld [vmem:[%s9757_s5 + $0x3c0] sm:$0xff]  }
 0x28d   :  { %7374 = vmatprep.mubr.bf16.mxu1 %v8617_v17  ;;  %7360 = vmatprep.subr.bf16.mxu1 %v7906_v33  ;;  %v7909_v17 = vld [vmem:[%s9757_s5 + $0x2e8] sm:$0xff]  }
 0x28f   :  { %7353 = vmatpush3.bf16.msra.mxu0 %v7903_v32 }
 0x290   :  { %7378 = vmatprep.subr.bf16.mxu0 %v7905_v34  ;;  %7361 = vmatpush3.bf16.msra.mxu1 %v7906_v33 }
 0x291   :  { %7362 = vmatprep.subr.bf16.mxu1 %v7908_v63 }
 0x292   :  { %7355 = vmatmul.mubr.bf16.vlgmr.msra.gmra.mxu0 %v8671_v35  ;;  %v7911_v35 = vld [vmem:[%s9757_s5 + $0x2e0] sm:$0xff]  }
 0x293   :  { %7379 = vmatpush3.bf16.msra.mxu0 %v7905_v34  ;;  %7394 = vmatprep.mubr.bf16.mxu0 %v8604_v9  ;;  %v7914_v9 = vld [vmem:[%s9757_s5 + $0x290] sm:$0xff]  }
 0x294   :  { %7380 = vmatprep.subr.bf16.mxu0 %v7907_v36  ;;  %7363 = vmatpush3.bf16.msra.mxu1 %v7908_v63  ;;  %v3220_v63 = vld [vmem:[#allocation3 + $0x54] sm:$0xff] }
 0x295   :  { %7364 = vmatprep.subr.bf16.mxu1 %v7910_v37 }
 0x297   :  { %7381 = vmatpush3.bf16.msra.mxu0 %v7907_v36 }
 0x298   :  { %7382 = vmatprep.subr.bf16.mxu0 %v7909_v17  ;;  %7365 = vmatpush3.bf16.msra.mxu1 %v7910_v37 }
 0x299   :  { %7366 = vmatprep.subr.bf16.mxu1 %v7912_v38 }
 0x29b   :  { %7383 = vmatpush3.bf16.msra.mxu0 %v7909_v17 }
 0x29c   :  { %7384 = vmatprep.subr.bf16.mxu0 %v7911_v35  ;;  %7367 = vmatpush3.bf16.msra.mxu1 %v7912_v38  ;;  %v3222_v38 = vpack.c.bf16 %v3220_v63, %v8796_v15 }
 0x29d   :  { %7368 = vmatprep.subr.bf16.mxu1 %v7914_v9 }
 0x29f   :  { %7385 = vmatpush3.bf16.msra.mxu0 %v7911_v35 }
 0x2a0   :  { %7386 = vmatprep.subr.bf16.mxu0 %v7913_v39  ;;  %7369 = vmatpush3.bf16.msra.mxu1 %v7914_v9 }
 0x2a1   :  { %7370 = vmatprep.subr.bf16.mxu1 %v7916_v40 }
 0x2a3   :  { %7387 = vmatpush3.bf16.msra.mxu0 %v7913_v39 }
 0x2a4   :  { %7388 = vmatprep.subr.bf16.mxu0 %v7915_v24  ;;  %7371 = vmatpush3.bf16.msra.mxu1 %v7916_v40 }
 0x2a5   :  { %7372 = vmatprep.subr.bf16.mxu1 %v7918_v41 }
 0x2a7   :  { %7389 = vmatpush3.bf16.msra.mxu0 %v7915_v24  ;;  %v9009_v24 = vld [vmem:[%s9759_s6] ss:$0 sm:$0xff] }
 0x2a8   :  { %7390 = vmatprep.subr.bf16.mxu0 %v7917_v42  ;;  %7373 = vmatpush3.bf16.msra.mxu1 %v7918_v41 }
 0x2a9   :  { %7398 = vmatprep.subr.bf16.mxu1 %v7920_v43 }
 0x2ab   :  { %7391 = vmatpush3.bf16.msra.mxu0 %v7917_v42  ;;  %7375 = vmatmul.mubr.bf16.vlgmr.msra.gmra.mxu1 %v2583_v45 }
 0x2ac   :  { %7392 = vmatprep.subr.bf16.mxu0 %v7919_v44  ;;  %7399 = vmatpush3.bf16.msra.mxu1 %v7920_v43 }
 0x2ad   :  { %7414 = vmatprep.mubr.bf16.mxu1 %v8749_v61  ;;  %7400 = vmatprep.subr.bf16.mxu1 %v7922_v22  ;;  %v7929_v61 = vld [vmem:[%s9757_s5 + $0x318] sm:$0xff]  }
 0x2af   :  { %7393 = vmatpush3.bf16.msra.mxu0 %v7919_v44 }
 0x2b0   :  { %7418 = vmatprep.subr.bf16.mxu0 %v7921_v46  ;;  %7401 = vmatpush3.bf16.msra.mxu1 %v7922_v22 }
 0x2b1   :  { %7402 = vmatprep.subr.bf16.mxu1 %v7924_v12 }
 0x2b2   :  { %7395 = vmatmul.mubr.bf16.vlgmr.msra.gmra.mxu0 %v8914_v50 }
 0x2b3   :  { %7419 = vmatpush3.bf16.msra.mxu0 %v7921_v46  ;;  %7434 = vmatprep.mubr.bf16.mxu0 %v2857_v54  ;;  %v7952_v54 = vld [vmem:[%s9760_s7 + $0x38] sm:$0xff]  }
 0x2b4   :  { %7420 = vmatprep.subr.bf16.mxu0 %v7923_v53  ;;  %7403 = vmatpush3.bf16.msra.mxu1 %v7924_v12 }
 0x2b5   :  { %7404 = vmatprep.subr.bf16.mxu1 %v7926_v55 }
 0x2b7   :  { %7421 = vmatpush3.bf16.msra.mxu0 %v7923_v53 }
 0x2b8   :  { %7422 = vmatprep.subr.bf16.mxu0 %v7925_v57  ;;  %7405 = vmatpush3.bf16.msra.mxu1 %v7926_v55 }
 0x2b9   :  { %7406 = vmatprep.subr.bf16.mxu1 %v7928_v58 }
 0x2bb   :  { %7423 = vmatpush3.bf16.msra.mxu0 %v7925_v57 }
 0x2bc   :  { %7424 = vmatprep.subr.bf16.mxu0 %v7927_v59  ;;  %7407 = vmatpush3.bf16.msra.mxu1 %v7928_v58 }
 0x2bd   :  { %7408 = vmatprep.subr.bf16.mxu1 %v7930_v60 }
 0x2bf   :  { %7425 = vmatpush3.bf16.msra.mxu0 %v7927_v59 }
 0x2c0   :  { %7426 = vmatprep.subr.bf16.mxu0 %v7929_v61  ;;  %7409 = vmatpush3.bf16.msra.mxu1 %v7930_v60 }
 0x2c1   :  { %7410 = vmatprep.subr.bf16.mxu1 %v7932_v62 }
 0x2c3   :  { %7427 = vmatpush3.bf16.msra.mxu0 %v7929_v61 }
 0x2c4   :  { %7428 = vmatprep.subr.bf16.mxu0 %v7931_v0  ;;  %7411 = vmatpush3.bf16.msra.mxu1 %v7932_v62 }
 0x2c5   :  { %7412 = vmatprep.subr.bf16.mxu1 %v7934_v1 }
 0x2c7   :  { %7429 = vmatpush3.bf16.msra.mxu0 %v7931_v0  ;;  %v7953_v0 = vld [vmem:[%s9760_s7 + $0x30] sm:$0xff]  }
 0x2c8   :  { %7430 = vmatprep.subr.bf16.mxu0 %v7933_v2  ;;  %7413 = vmatpush3.bf16.msra.mxu1 %v7934_v1 }
 0x2c9   :  { %7438 = vmatprep.subr.bf16.mxu1 %v7936_v3 }
 0x2ca   :  { %v7176_v20 = vpop.f32.mrf.mxu1 }
 0x2cb   :  { %7431 = vmatpush3.bf16.msra.mxu0 %v7933_v2  ;;  %7415 = vmatmul.mubr.bf16.vlgmr.msra.gmra.mxu1 %v8804_v23  ;;  %v7944_v23 = vld [vmem:[%s9757_s5 + $0x398] sm:$0xff]  }
 0x2cc   :  { %7432 = vmatprep.subr.bf16.mxu0 %v7935_v4  ;;  %7439 = vmatpush3.bf16.msra.mxu1 %v7936_v3  ;;  %v1436_v52 = vpop.f32.mrf.mxu1 }
 0x2cd   :  { %7454 = vmatprep.mubr.bf16.mxu1 %v3097_v7  ;;  %7440 = vmatprep.subr.bf16.mxu1 %v7938_v5 }
 0x2ce   :  { %v7177_v28 = vpop.f32.mrf.mxu1 }
 0x2cf   :  { %7433 = vmatpush3.bf16.msra.mxu0 %v7935_v4  ;;  %v7954_v4 = vld [vmem:[%s9760_s7 + $0x28] sm:$0xff]  }
 0x2d0   :  { %7458 = vmatprep.subr.bf16.mxu0 %v7937_v8  ;;  %7441 = vmatpush3.bf16.msra.mxu1 %v7938_v5  ;;  %v1439_v32 = vpop.f32.mrf.mxu1  ;;  %v7955_v5 = vld [vmem:[%s9760_s7 + $0x20] sm:$0xff]  }
 0x2d1   :  { %7442 = vmatprep.subr.bf16.mxu1 %v7940_v10 }
 0x2d2   :  { %7435 = vmatmul.mubr.bf16.vlgmr.msra.gmra.mxu0 %v2858_v11  ;;  %v7196_v26 = vpop.f32.mrf.mxu0 }
 0x2d3   :  { %7459 = vmatpush3.bf16.msra.mxu0 %v7937_v8  ;;  %7474 = vmatprep.mubr.bf16.mxu0 %v8732_v56  ;;  %v7946_v56 = vld [vmem:[%s9757_s5 + $0x390] sm:$0xff]   ;;  %v1542_v37 = vadd.f32 %v7196_v26, %v7176_v20 }
 0x2d4   :  { %7460 = vmatprep.subr.bf16.mxu0 %v7939_v13  ;;  %7443 = vmatpush3.bf16.msra.mxu1 %v7940_v10  ;;  %v1533_v29 = vpop.f32.mrf.mxu0 }
 0x2d5   :  { %7444 = vmatprep.subr.bf16.mxu1 %v7942_v14  ;;  %v1534_v9 = vadd.f32 %v1533_v29, %v1436_v52 }
 0x2d6   :  { %v7197_v34 = vpop.f32.mrf.mxu0 }
 0x2d7   :  { %7461 = vmatpush3.bf16.msra.mxu0 %v7939_v13  ;;  %v1545_v41 = vadd.f32 %v7197_v34, %v7177_v28 }
 0x2d8   :  { %7462 = vmatprep.subr.bf16.mxu0 %v7941_v16  ;;  %7445 = vmatpush3.bf16.msra.mxu1 %v7942_v14  ;;  %v1536_v17 = vpop.f32.mrf.mxu0 }
 0x2d9   :  { %7446 = vmatprep.subr.bf16.mxu1 %v7944_v23  ;;  %v1537_v22 = vadd.f32 %v1536_v17, %v1439_v32 }
 0x2db   :  { %7463 = vmatpush3.bf16.msra.mxu0 %v7941_v16 }
 0x2dc   :  { %7464 = vmatprep.subr.bf16.mxu0 %v7943_v19  ;;  %7447 = vmatpush3.bf16.msra.mxu1 %v7944_v23 }
 0x2dd   :  { %7448 = vmatprep.subr.bf16.mxu1 %v7946_v56 }
 0x2df   :  { %7465 = vmatpush3.bf16.msra.mxu0 %v7943_v19 }
 0x2e0   :  { %7466 = vmatprep.subr.bf16.mxu0 %v7945_v18  ;;  %7449 = vmatpush3.bf16.msra.mxu1 %v7946_v56 }
 0x2e1   :  { %7450 = vmatprep.subr.bf16.mxu1 %v7948_v21 }
 0x2e3   :  { %7467 = vmatpush3.bf16.msra.mxu0 %v7945_v18 }
 0x2e4   :  { %7468 = vmatprep.subr.bf16.mxu0 %v7947_v25  ;;  %7451 = vmatpush3.bf16.msra.mxu1 %v7948_v21 }
 0x2e5   :  { %7452 = vmatprep.subr.bf16.mxu1 %v7950_v49 }
 0x2e7   :  { %7469 = vmatpush3.bf16.msra.mxu0 %v7947_v25 }
 0x2e8   :  { %7470 = vmatprep.subr.bf16.mxu0 %v7949_v27  ;;  %7453 = vmatpush3.bf16.msra.mxu1 %v7950_v49 }
 0x2e9   :  { %7478 = vmatprep.subr.bf16.mxu1 %v7952_v54 }
 0x2eb   :  { %7471 = vmatpush3.bf16.msra.mxu0 %v7949_v27  ;;  %v7216_v33 = vpop.f32.mrf.mxu1  ;;  %7455 = vmatmul.mubr.bf16.vlgmr.msra.gmra.mxu1 %v8914_v50 }
 0x2ec   :  { %7472 = vmatprep.subr.bf16.mxu0 %v7951_v31  ;;  %v1670_v39 = vadd.f32 %v7216_v33, %v1542_v37  ;;  %7479 = vmatpush3.bf16.msra.mxu1 %v7952_v54  ;;  %v9067_v54 = vld [vmem:[%s9760_s7 + $0x78] sm:$0xff]  }
 0x2ed   :  { %v1653_v36 = vpop.f32.mrf.mxu1  ;;  %7480 = vmatprep.subr.bf16.mxu1 %v7953_v0 }
 0x2ee   :  { %v1668_v43 = vadd.f32 %v1653_v36, %v1534_v9 }
 0x2ef   :  { %7473 = vmatpush3.bf16.msra.mxu0 %v7951_v31  ;;  %v7217_v35 = vpop.f32.mrf.mxu1 }
 0x2f0   :  { %v1671_v15 = vadd.f32 %v7217_v35, %v1545_v41  ;;  %7481 = vmatpush3.bf16.msra.mxu1 %v7953_v0 }
 0x2f1   :  { %v1656_v45 = vpop.f32.mrf.mxu1  ;;  %7482 = vmatprep.subr.bf16.mxu1 %v7954_v4 }
 0x2f2   :  { %v7236_v40 = vpop.f32.mrf.mxu0  ;;  %7475 = vmatmul.mubr.bf16.vlgmr.msra.gmra.mxu0 %v3222_v38  ;;  %v1669_v51 = vadd.f32 %v1656_v45, %v1537_v22 }
 0x2f3   :  { %v1794_v42 = vadd.f32 %v7236_v40, %v1670_v39  ;;  %v7956_v39 = vld [vmem:[%s9760_s7 + $0x18] sm:$0xff]  }
 0x2f4   :  { %v1777_v44 = vpop.f32.mrf.mxu0  ;;  %7483 = vmatpush3.bf16.msra.mxu1 %v7954_v4  ;;  %v9046_v40 = vld [vmem:[%s9760_s7 + $0x58] sm:$0xff]   ;;  %7494 = vmatprep.subr.bf16.mxu0 %v7956_v39 }
 0x2f5   :  { %v1805_v46 = vadd.f32 %v9009_v24, %v1794_v42  ;;  %v1792_v47 = vadd.f32 %v1777_v44, %v1668_v43  ;;  %7484 = vmatprep.subr.bf16.mxu1 %v7955_v5  ;;  %7495 = vmatpush3.bf16.msra.mxu0 %v7956_v39 }
 0x2f6   :  { %v7237_v48 = vpop.f32.mrf.mxu0 }
 0x2f7   :  { %v1809_v12 = vmul.f32 0.01, %v1805_v46  ;;  %v1803_v30 = vadd.f32 %v9009_v24, %v1792_v47  ;;  %v1795_v50 = vadd.f32 %v7237_v48, %v1671_v15  ;;  %v7958_v15 = vld [vmem:[%s9760_s7 + $0x10] sm:$0xff]  }
 0x2f8   :  { %v1780_v53 = vpop.f32.mrf.mxu0  ;;  %7485 = vmatpush3.bf16.msra.mxu1 %v7955_v5  ;;  %7496 = vmatprep.subr.bf16.mxu0 %v7958_v15 }
 0x2f9   :  { %v1813_v55 = vmax.f32 %v1805_v46, %v1809_v12  ;;  %v1807_v57 = vmul.f32 0.01, %v1803_v30  ;;  %v1806_v58 = vadd.f32 %v9009_v24, %v1795_v50  ;;  %v1793_v59 = vadd.f32 %v1780_v53, %v1669_v51  ;;  %7510 = vmatprep.subr.bf16.mxu1 %v9046_v40  ;;  %7497 = vmatpush3.bf16.msra.mxu0 %v7958_v15  ;;  %v7960_v50 = vld [vmem:[%s9760_s7 + $0x8] sm:$0xff]   ;;  %v7962_v51 = vld [vmem:[%s9760_s7] sm:$0xff]  }
 0x2fa   :  { %7498 = vmatprep.subr.bf16.mxu0 %v7960_v50  ;;  %v3368_v53 = vld [vmem:[#allocation4] sm:$0xff] }
 0x2fb   :  { %1820 = vst.msk [vmem:[#allocation4 + $0xb0] sm:$0xff] %vm33_vm1, %v1813_v55  ;;  %v1811_v60 = vmax.f32 %v1803_v30, %v1807_v57  ;;  %v1810_v61 = vmul.f32 0.01, %v1806_v58  ;;  %v1804_v62 = vadd.f32 %v9009_v24, %v1793_v59 }
 0x2fd   :  { %1816 = vst.msk [vmem:[#allocation4 + $0x30] sm:$0xff] %vm33_vm1, %v1811_v60  ;;  %v1814_v1 = vmax.f32 %v1806_v58, %v1810_v61  ;;  %v1808_v2 = vmul.f32 0.01, %v1804_v62  ;;  %7499 = vmatpush3.bf16.msra.mxu0 %v7960_v50  ;;  %v7963_v50 = vld [vmem:[%s9760_s7 + $0x40] sm:$0xff]  }
 0x2fe   :  { %7500 = vmatprep.subr.bf16.mxu0 %v7962_v51 }
 0x2ff   :  { %1822 = vst.msk [vmem:[#allocation4 + $0xf0] sm:$0xff] %vm33_vm1, %v1814_v1  ;;  %v1812_v3 = vmax.f32 %v1804_v62, %v1808_v2 }
 0x301   :  { %1818 = vst.msk [vmem:[#allocation4 + $0x70] sm:$0xff] %vm33_vm1, %v1812_v3  ;;  %7501 = vmatpush3.bf16.msra.mxu0 %v7962_v51 }
 0x302   :  { %7526 = vmatprep.subr.bf16.mxu0 %v9067_v54 }
 0x304   :  { %v9031_v7 = vld [vmem:[#allocation4 + $0x30] sm:$0xff] }
 0x305   :  { %v9034_v8 = vpack.c.bf16 %v9031_v7, %v3389_v6 }
 0x307   :  { %7486 = vmatprep.mubr.msk.bf16.mxu1 %vm33_vm1, %v9034_v8 }
 0x30b   :  { %v7256_v10 = vpop.f32.mrf.mxu1 }
 0x30d   :  { %v1951_v11 = vpop.f32.mrf.mxu1 }
 0x30f   :  { %v7257_v14 = vpop.f32.mrf.mxu1 }
 0x311   :  { %v1954_v23 = vpop.f32.mrf.mxu1 }
 0x312   :  { %v7276_v13 = vpop.f32.mrf.mxu0 }
 0x313   :  { %v2057_v20 = vadd.f32 %v7276_v13, %v7256_v10 }
 0x314   :  { %v2048_v16 = vpop.f32.mrf.mxu0 }
 0x315   :  { %v2049_v52 = vadd.f32 %v2048_v16, %v1951_v11 }
 0x316   :  { %v7277_v56 = vpop.f32.mrf.mxu0 }
 0x317   :  { %v2060_v27 = vadd.f32 %v7277_v56, %v7257_v14 }
 0x318   :  { %v2051_v21 = vpop.f32.mrf.mxu0 }
 0x319   :  { %v2052_v33 = vadd.f32 %v2051_v21, %v1954_v23 }
 0x32b   :  { %v7296_v19 = vpop.f32.mrf.mxu1 }
 0x32c   :  { %v2185_v49 = vadd.f32 %v7296_v19, %v2057_v20 }
 0x32d   :  { %v2168_v18 = vpop.f32.mrf.mxu1 }
 0x32e   :  { %v2183_v29 = vadd.f32 %v2168_v18, %v2049_v52 }
 0x32f   :  { %v7297_v25 = vpop.f32.mrf.mxu1 }
 0x330   :  { %v2186_v36 = vadd.f32 %v7297_v25, %v2060_v27 }
 0x331   :  { %v2171_v32 = vpop.f32.mrf.mxu1 }
 0x332   :  { %v7316_v26 = vpop.f32.mrf.mxu0  ;;  %v2184_v9 = vadd.f32 %v2171_v32, %v2052_v33 }
 0x333   :  { %v2309_v28 = vadd.f32 %v7316_v26, %v2185_v49 }
 0x334   :  { %v2292_v31 = vpop.f32.mrf.mxu0 }
 0x335   :  { %v2320_v34 = vadd.f32 %v9009_v24, %v2309_v28  ;;  %v2307_v63 = vadd.f32 %v2292_v31, %v2183_v29 }
 0x336   :  { %v7317_v37 = vpop.f32.mrf.mxu0 }
 0x337   :  { %v2324_v17 = vmul.f32 0.01, %v2320_v34  ;;  %v2318_v38 = vadd.f32 %v9009_v24, %v2307_v63  ;;  %v2310_v35 = vadd.f32 %v7317_v37, %v2186_v36 }
 0x338   :  { %v2295_v41 = vpop.f32.mrf.mxu0 }
 0x339   :  { %v2328_v42 = vmax.f32 %v2320_v34, %v2324_v17  ;;  %v2322_v43 = vmul.f32 0.01, %v2318_v38  ;;  %v2321_v44 = vadd.f32 %v9009_v24, %v2310_v35  ;;  %v2308_v45 = vadd.f32 %v2295_v41, %v2184_v9  ;;  %v3394_v9 = vld [vmem:[#allocation4 + $0xb0] sm:$0xff] }
 0x33b   :  { %2335 = vst.msk [vmem:[#allocation4 + $0xa2] sm:$0xff] %vm33_vm1, %v2328_v42  ;;  %v2326_v22 = vmax.f32 %v2318_v38, %v2322_v43  ;;  %v2325_v46 = vmul.f32 0.01, %v2321_v44  ;;  %v2319_v47 = vadd.f32 %v9009_v24, %v2308_v45  ;;  %v3392_v43 = vld [vmem:[#allocation4 + $0x70] sm:$0xff] }
 0x33c   :  { %v7959_v45 = vld [vmem:[%s9760_s7 + $0x50] sm:$0xff]  }
 0x33d   :  { %2331 = vst.msk [vmem:[#allocation4 + $0x22] sm:$0xff] %vm33_vm1, %v2326_v22  ;;  %v2329_v48 = vmax.f32 %v2321_v44, %v2325_v46  ;;  %v2323_v12 = vmul.f32 0.01, %v2319_v47 }
 0x33f   :  { %2337 = vst.msk [vmem:[#allocation4 + $0xe2] sm:$0xff] %vm33_vm1, %v2329_v48  ;;  %v2327_v30 = vmax.f32 %v2319_v47, %v2323_v12  ;;  %v7961_v47 = vld [vmem:[%s9760_s7 + $0x48] sm:$0xff]  }
 0x340   :  { %v3612_v48 = vld [vmem:[#allocation4 + $0x2] sm:$0xff] }
 0x341   :  { %2333 = vst.msk [vmem:[#allocation4 + $0x62] sm:$0xff] %vm33_vm1, %v2327_v30  ;;  %v9106_v30 = vld [vmem:[#allocation4 + $0xf0] sm:$0xff] }
 0x344   :  { %v9069_v55 = vld [vmem:[#allocation4 + $0x20] sm:$0xff] }
 0x345   :  { %v3376_v57 = vpack.c.bf16 %v9069_v55, %v3368_v53  ;;  %v9104_v12 = vld [vmem:[#allocation4 + $0x22] sm:$0xff]  ;;  %v7965_v53 = vld [vmem:[%s9760_s7 + $0x98] sm:$0xff]  }
 0x346   :  { %v9115_v51 = vpack.c.bf16 %v9104_v12, %v3612_v48  ;;  %v3373_v48 = vld [vmem:[#allocation4 + $0xa0] sm:$0xff] }
 0x347   :  { %7502 = vmatprep.mubr.msk.bf16.mxu0 %vm33_vm1, %v3376_v57 }
 0x34b   :  { %v7336_v58 = vpop.f32.mrf.mxu1 }
 0x34d   :  { %v2466_v59 = vpop.f32.mrf.mxu1 }
 0x34f   :  { %v7337_v61 = vpop.f32.mrf.mxu1 }
 0x351   :  { %v2469_v0 = vpop.f32.mrf.mxu1 }
 0x352   :  { %v7356_v60 = vpop.f32.mrf.mxu0 }
 0x353   :  { %v2572_v4 = vadd.f32 %v7356_v60, %v7336_v58 }
 0x354   :  { %v2563_v62 = vpop.f32.mrf.mxu0 }
 0x355   :  { %v2564_v10 = vadd.f32 %v2563_v62, %v2466_v59 }
 0x356   :  { %v7357_v2 = vpop.f32.mrf.mxu0 }
 0x357   :  { %v2575_v14 = vadd.f32 %v7357_v2, %v7337_v61 }
 0x358   :  { %v2566_v5 = vpop.f32.mrf.mxu0 }
 0x359   :  { %v2567_v18 = vadd.f32 %v2566_v5, %v2469_v0 }
 0x36b   :  { %v7376_v1 = vpop.f32.mrf.mxu1 }
 0x36c   :  { %v2700_v11 = vadd.f32 %v7376_v1, %v2572_v4 }
 0x36d   :  { %v2683_v3 = vpop.f32.mrf.mxu1 }
 0x36e   :  { %v2698_v23 = vadd.f32 %v2683_v3, %v2564_v10 }
 0x36f   :  { %v7377_v6 = vpop.f32.mrf.mxu1 }
 0x370   :  { %v2701_v25 = vadd.f32 %v7377_v6, %v2575_v14 }
 0x371   :  { %v2686_v56 = vpop.f32.mrf.mxu1 }
 0x372   :  { %v7396_v13 = vpop.f32.mrf.mxu0  ;;  %v2699_v28 = vadd.f32 %v2686_v56, %v2567_v18 }
 0x373   :  { %v2824_v16 = vadd.f32 %v7396_v13, %v2700_v11 }
 0x374   :  { %v2807_v19 = vpop.f32.mrf.mxu0 }
 0x375   :  { %v2835_v20 = vadd.f32 %v9009_v24, %v2824_v16  ;;  %v2822_v21 = vadd.f32 %v2807_v19, %v2698_v23 }
 0x376   :  { %v7397_v52 = vpop.f32.mrf.mxu0 }
 0x377   :  { %v2839_v49 = vmul.f32 0.01, %v2835_v20  ;;  %v2833_v26 = vadd.f32 %v9009_v24, %v2822_v21  ;;  %v2825_v27 = vadd.f32 %v7397_v52, %v2701_v25 }
 0x378   :  { %v2810_v29 = vpop.f32.mrf.mxu0 }
 0x379   :  { %v2843_v31 = vmax.f32 %v2835_v20, %v2839_v49  ;;  %v2837_v32 = vmul.f32 0.01, %v2833_v26  ;;  %v2836_v33 = vadd.f32 %v9009_v24, %v2825_v27  ;;  %v2823_v34 = vadd.f32 %v2810_v29, %v2699_v28 }
 0x37b   :  { %2850 = vst.msk [vmem:[#allocation4 + $0xd0] sm:$0xff] %vm33_vm1, %v2843_v31  ;;  %v2841_v63 = vmax.f32 %v2833_v26, %v2837_v32  ;;  %v2840_v36 = vmul.f32 0.01, %v2836_v33  ;;  %v2834_v37 = vadd.f32 %v9009_v24, %v2823_v34 }
 0x37d   :  { %2846 = vst.msk [vmem:[#allocation4 + $0x50] sm:$0xff] %vm33_vm1, %v2841_v63  ;;  %v2844_v17 = vmax.f32 %v2836_v33, %v2840_v36  ;;  %v2838_v38 = vmul.f32 0.01, %v2834_v37 }
 0x37f   :  { %2852 = vst.msk [vmem:[#allocation4 + $0x110] sm:$0xff] %vm33_vm1, %v2844_v17  ;;  %v2842_v35 = vmax.f32 %v2834_v37, %v2838_v38 }
 0x381   :  { %2848 = vst.msk [vmem:[#allocation4 + $0x90] sm:$0xff] %vm33_vm1, %v2842_v35  ;;  %v3371_v35 = vld [vmem:[#allocation4 + $0x60] sm:$0xff] }
 0x382   :  { %v3395_v39 = vld [vmem:[#allocation4 + $0xd0] sm:$0xff] }
 0x383   :  { %v9082_v41 = vpack.c.bf16 %v3395_v39, %v3394_v9 }
 0x384   :  { %v9084_v42 = vld [vmem:[#allocation4 + $0x50] sm:$0xff] }
 0x385   :  { %v9087_v44 = vpack.c.bf16 %v3392_v43, %v9084_v42 }
 0x387   :  { %7487 = vmatmul.mubr.msk.bf16.vlgmr.msra.gmra.mxu1 %vm33_vm1, %v9087_v44 }
 0x388   :  { %v3393_v22 = vld [vmem:[#allocation4 + $0x90] sm:$0xff]  ;;  %7511 = vmatpush3.bf16.msra.mxu1 %v9046_v40  ;;  %v9109_v40 = vpack.c.bf16 %v9106_v30, %v3395_v39 }
 0x389   :  { %v9095_v46 = vpack.c.bf16 %v3394_v9, %v3393_v22  ;;  %7512 = vmatprep.subr.bf16.mxu1 %v7959_v45  ;;  %v9100_v15 = vpack.c.bf16 %v3393_v22, %v3392_v43  ;;  %v9134_v43 = vld [vmem:[#allocation4 + $0x62] sm:$0xff]  ;;  %v7966_v22 = vld [vmem:[%s9760_s7 + $0x70] sm:$0xff]  }
 0x38b   :  { %7490 = vmatprep.mubr.msk.bf16.mxu1 %vm33_vm1, %v9095_v46  ;;  %v7416_v57 = vpop.f32.mrf.mxu1 }
 0x38c   :  { %7513 = vmatpush3.bf16.msra.mxu1 %v7959_v45 }
 0x38d   :  { %7514 = vmatprep.subr.bf16.mxu1 %v7961_v47  ;;  %v2981_v58 = vpop.f32.mrf.mxu1 }
 0x38f   :  { %7491 = vmatmul.mubr.msk.bf16.gmra.mxu1 %vm33_vm1, %v9109_v40  ;;  %v7417_v60 = vpop.f32.mrf.mxu1 }
 0x390   :  { %7518 = vmatprep.mubr.msk.bf16.mxu1 %vm33_vm1, %v9115_v51  ;;  %7515 = vmatpush3.bf16.msra.mxu1 %v7961_v47  ;;  %v7967_v47 = vld [vmem:[%s9760_s7 + $0x90] sm:$0xff]  }
 0x391   :  { %7516 = vmatprep.subr.bf16.mxu1 %v7963_v50  ;;  %v2984_v62 = vpop.f32.mrf.mxu1 }
 0x392   :  { %v7436_v59 = vpop.f32.mrf.mxu0 }
 0x393   :  { %v3087_v3 = vadd.f32 %v7436_v59, %v7416_v57 }
 0x394   :  { %7517 = vmatpush3.bf16.msra.mxu1 %v7963_v50  ;;  %v3078_v61 = vpop.f32.mrf.mxu0 }
 0x395   :  { %7542 = vmatprep.subr.bf16.mxu1 %v7965_v53  ;;  %v3079_v6 = vadd.f32 %v3078_v61, %v2981_v58  ;;  %v9155_v58 = vld [vmem:[#allocation4 + $0xa2] sm:$0xff] }
 0x396   :  { %v7437_v1 = vpop.f32.mrf.mxu0  ;;  %v7968_v61 = vld [vmem:[%s9760_s7 + $0x68] sm:$0xff]  }
 0x397   :  { %v3090_v13 = vadd.f32 %v7437_v1, %v7417_v60  ;;  %v9175_v1 = vld [vmem:[#allocation4 + $0xe2] sm:$0xff] }
 0x398   :  { %v3081_v4 = vpop.f32.mrf.mxu0 }
 0x399   :  { %v3082_v56 = vadd.f32 %v3081_v4, %v2984_v62  ;;  %v7970_v4 = vld [vmem:[%s9760_s7 + $0x60] sm:$0xff]  }
 0x3ab   :  { %v7456_v0 = vpop.f32.mrf.mxu1 }
 0x3ac   :  { %v3215_v10 = vadd.f32 %v7456_v0, %v3087_v3  ;;  %v3375_v0 = vld [vmem:[#allocation4 + $0xe0] sm:$0xff] }
 0x3ad   :  { %v3198_v2 = vpop.f32.mrf.mxu1 }
 0x3ae   :  { %v3213_v16 = vadd.f32 %v3198_v2, %v3079_v6 }
 0x3af   :  { %v7457_v5 = vpop.f32.mrf.mxu1 }
 0x3b0   :  { %v3216_v21 = vadd.f32 %v7457_v5, %v3090_v13  ;;  %v7971_v5 = vld [vmem:[%s9760_s7 + $0x80] sm:$0xff]   ;;  %v7973_v13 = vld [vmem:[%s9760_s7 + $0xd8] sm:$0xff]  }
 0x3b1   :  { %v3201_v19 = vpop.f32.mrf.mxu1 }
 0x3b2   :  { %v7476_v11 = vpop.f32.mrf.mxu0  ;;  %v3214_v27 = vadd.f32 %v3201_v19, %v3082_v56  ;;  %v7977_v19 = vld [vmem:[%s9760_s7 + $0xc8] sm:$0xff]  }
 0x3b3   :  { %v3339_v14 = vadd.f32 %v7476_v11, %v3215_v10  ;;  %v3880_v10 = vpack.c.bf16 %v9084_v42, %v9031_v7  ;;  %v7972_v11 = vld [vmem:[%s9760_s7 + $0xb8] sm:$0xff]  }
 0x3b4   :  { %v3322_v23 = vpop.f32.mrf.mxu0 }
 0x3b5   :  { %v3350_v18 = vadd.f32 %v9009_v24, %v3339_v14  ;;  %v3337_v20 = vadd.f32 %v3322_v23, %v3213_v16  ;;  %v7975_v14 = vld [vmem:[%s9760_s7 + $0xd0] sm:$0xff]   ;;  %v7976_v23 = vld [vmem:[%s9760_s7 + $0xa8] sm:$0xff]  }
 0x3b6   :  { %v7477_v25 = vpop.f32.mrf.mxu0 }
 0x3b7   :  { %v3354_v52 = vmul.f32 0.01, %v3350_v18  ;;  %v3348_v49 = vadd.f32 %v9009_v24, %v3337_v20  ;;  %v3340_v26 = vadd.f32 %v7477_v25, %v3216_v21  ;;  %v7978_v25 = vld [vmem:[%s9760_s7 + $0xa0] sm:$0xff]  }
 0x3b8   :  { %v3325_v28 = vpop.f32.mrf.mxu0 }
 0x3b9   :  { %v3358_v29 = vmax.f32 %v3350_v18, %v3354_v52  ;;  %v3352_v31 = vmul.f32 0.01, %v3348_v49  ;;  %v3351_v32 = vadd.f32 %v9009_v24, %v3340_v26  ;;  %v3338_v33 = vadd.f32 %v3325_v28, %v3214_v27  ;;  %v9222_v18 = vld [vmem:[#allocation4 + $0x110] sm:$0xff]  ;;  %v7979_v52 = vld [vmem:[%s9760_s7 + $0xc0] sm:$0xff]   ;;  %v7981_v26 = vld [vmem:[%s9760_s7 + $0x118] sm:$0xff]  }
 0x3ba   :  { %v9226_v21 = vpack.c.bf16 %v9222_v18, %v9106_v30  ;;  %v7980_v30 = vld [vmem:[%s9760_s7 + $0xf8] sm:$0xff]   ;;  %v7982_v27 = vld [vmem:[%s9760_s7 + $0xf0] sm:$0xff]  }
 0x3bb   :  { %3365 = vst.msk [vmem:[#allocation4 + $0xc2] sm:$0xff] %vm33_vm1, %v3358_v29  ;;  %v3356_v34 = vmax.f32 %v3348_v49, %v3352_v31  ;;  %v3355_v63 = vmul.f32 0.01, %v3351_v32  ;;  %v3349_v36 = vadd.f32 %v9009_v24, %v3338_v33  ;;  %v7983_v28 = vld [vmem:[%s9760_s7 + $0x110] sm:$0xff]   ;;  %v7984_v31 = vld [vmem:[%s9760_s7 + $0xe8] sm:$0xff]  }
 0x3bd   :  { %3361 = vst.msk [vmem:[#allocation4 + $0x42] sm:$0xff] %vm33_vm1, %v3356_v34  ;;  %v3359_v37 = vmax.f32 %v3351_v32, %v3355_v63  ;;  %v3353_v17 = vmul.f32 0.01, %v3349_v36  ;;  %v7985_v32 = vld [vmem:[%s9760_s7 + $0x108] sm:$0xff]   ;;  %v4139_v34 = vld [vmem:[#allocation4 + $0x120] sm:$0xff] }
 0x3bf   :  { %3367 = vst.msk [vmem:[#allocation4 + $0x102] sm:$0xff] %vm33_vm1, %v3359_v37  ;;  %v3357_v38 = vmax.f32 %v3349_v36, %v3353_v17  ;;  %v7986_v37 = vld [vmem:[%s9760_s7 + $0xe0] sm:$0xff]  }
 0x3c0   :  { %v7987_v17 = vld [vmem:[%s9760_s7 + $0x100] sm:$0xff]  }
 0x3c1   :  { %3363 = vst.msk [vmem:[#allocation4 + $0x82] sm:$0xff] %vm33_vm1, %v3357_v38  ;;  %v7988_v38 = vld [vmem:[%s9760_s7 + $0x38] sm:$0xff]  }
 0x3c2   :  { %v9169_v62 = vld [vmem:[#allocation4 + $0xc2] sm:$0xff] }
 0x3c3   :  { %v9181_v3 = vpack.c.bf16 %v9175_v1, %v9169_v62  ;;  %v9267_v29 = vpack.c.bf16 %v9169_v62, %v9155_v58  ;;  %v4860_v62 = vld [vmem:[#allocation4 + $0x32] sm:$0xff] }
 0x3c4   :  { %v3370_v9 = vld [vmem:[#allocation4 + $0x40] sm:$0xff] }
 0x3c5   :  { %v9132_v39 = vld [vmem:[#allocation4 + $0x42] sm:$0xff]  ;;  %v9136_v45 = vpack.c.bf16 %v3371_v35, %v3370_v9  ;;  %v3750_v6 = vpack.c.bf16 %v3370_v9, %v9069_v55  ;;  %v7974_v55 = vld [vmem:[%s9760_s7 + $0xb0] sm:$0xff]  }
 0x3c6   :  { %v9140_v24 = vpack.c.bf16 %v9134_v43, %v9132_v39  ;;  %v3749_v56 = vld [vmem:[#allocation4 + $0x100] sm:$0xff]  ;;  %v9239_v49 = vpack.c.bf16 %v9132_v39, %v9104_v12  ;;  %v7990_v9 = vld [vmem:[%s9760_s7 + $0x30] sm:$0xff]  }
 0x3c7   :  { %7503 = vmatmul.mubr.msk.bf16.vlgmr.msra.gmra.mxu0 %vm33_vm1, %v9136_v45  ;;  %v3753_v20 = vpack.c.bf16 %v3749_v56, %v3375_v0  ;;  %v4009_v33 = vld [vmem:[#allocation4 + $0x102] sm:$0xff]  ;;  %v4143_v36 = vpack.c.bf16 %v4139_v34, %v3749_v56  ;;  %v7991_v39 = vld [vmem:[%s9760_s7 + $0x10] sm:$0xff]  }
 0x3c8   :  { %7519 = vmatmul.mubr.msk.bf16.vlgmr.msra.gmra.mxu1 %vm33_vm1, %v9140_v24  ;;  %7527 = vmatpush3.bf16.msra.mxu0 %v9067_v54  ;;  %v3372_v50 = vld [vmem:[#allocation4 + $0x80] sm:$0xff]  ;;  %v7969_v54 = vld [vmem:[%s9760_s7 + $0x88] sm:$0xff]   ;;  %v9280_v63 = vpack.c.bf16 %v4009_v33, %v9175_v1 }
 0x3c9   :  { %7543 = vmatpush3.bf16.msra.mxu1 %v7965_v53  ;;  %v9153_v57 = vld [vmem:[#allocation4 + $0x82] sm:$0xff]  ;;  %7528 = vmatprep.subr.bf16.mxu0 %v7966_v22  ;;  %v9157_v59 = vpack.c.bf16 %v3373_v48, %v3372_v50  ;;  %v3751_v7 = vpack.c.bf16 %v3372_v50, %v3371_v35  ;;  %v7989_v35 = vld [vmem:[%s9760_s7 + $0x18] sm:$0xff]  }
 0x3ca   :  { %7544 = vmatprep.subr.bf16.mxu1 %v7967_v47  ;;  %v9161_v60 = vpack.c.bf16 %v9155_v58, %v9153_v57  ;;  %v3374_v53 = vld [vmem:[#allocation4 + $0xc0] sm:$0xff]  ;;  %v9253_v12 = vpack.c.bf16 %v9153_v57, %v9134_v43  ;;  %v7992_v43 = vld [vmem:[%s9760_s7 + $0x28] sm:$0xff]  }
 0x3cb   :  { %7506 = vmatprep.mubr.msk.bf16.mxu0 %vm33_vm1, %v9157_v59  ;;  %v9177_v2 = vpack.c.bf16 %v3375_v0, %v3374_v53  ;;  %v3752_v16 = vpack.c.bf16 %v3374_v53, %v3373_v48  ;;  %v7994_v57 = vld [vmem:[%s9760_s7 + $0x20] sm:$0xff]   ;;  %v8001_v53 = vld [vmem:[%s9760_s7 + $0x68] sm:$0xff]   ;;  %v4988_v0 = vld [vmem:[#allocation4 + $0x30] sm:$0xff] }
 0x3cc   :  { %7522 = vmatprep.mubr.msk.bf16.mxu1 %vm33_vm1, %v9161_v60  ;;  %7529 = vmatpush3.bf16.msra.mxu0 %v7966_v22  ;;  %v4269_v22 = vld [vmem:[#allocation4 + $0x130] sm:$0xff]  ;;  %v7995_v58 = vld [vmem:[%s9760_s7] sm:$0xff]  }
 0x3cd   :  { %7545 = vmatpush3.bf16.msra.mxu1 %v7967_v47  ;;  %7530 = vmatprep.subr.bf16.mxu0 %v7968_v61  ;;  %v4399_v47 = vld [vmem:[#allocation4 + $0x122] sm:$0xff]  ;;  %v9322_v48 = vpack.c.bf16 %v4269_v22, %v9222_v18 }
 0x3ce   :  { %7546 = vmatprep.subr.bf16.mxu1 %v7969_v54  ;;  %v9324_v50 = vpack.c.bf16 %v4399_v47, %v4009_v33  ;;  %v8003_v1 = vld [vmem:[%s9760_s7 + $0x60] sm:$0xff]  }
 0x3cf   :  { %7507 = vmatmul.mubr.msk.bf16.gmra.mxu0 %vm33_vm1, %v9177_v2  ;;  %v8011_v18 = vld [vmem:[%s9760_s7 + $0xa0] sm:$0xff]  }
 0x3d0   :  { %7523 = vmatmul.mubr.msk.bf16.gmra.mxu1 %vm33_vm1, %v9181_v3  ;;  %7531 = vmatpush3.bf16.msra.mxu0 %v7968_v61  ;;  %v7997_v61 = vld [vmem:[%s9760_s7 + $0x78] sm:$0xff]   ;;  %v8018_v33 = vld [vmem:[%s9760_s7 + $0xc0] sm:$0xff]  }
 0x3d1   :  { %7547 = vmatpush3.bf16.msra.mxu1 %v7969_v54  ;;  %7534 = vmatprep.mubr.msk.bf16.mxu0 %vm33_vm1, %v3750_v6  ;;  %v8000_v54 = vld [vmem:[%s9760_s7 + $0x48] sm:$0xff]   ;;  %v8005_v6 = vld [vmem:[%s9760_s7 + $0xb8] sm:$0xff]   ;;  %v8019_v34 = vld [vmem:[%s9760_s7 + $0xe0] sm:$0xff]  }
 0x3d2   :  { %7550 = vmatprep.mubr.msk.bf16.mxu1 %vm33_vm1, %v3880_v10  ;;  %7532 = vmatprep.subr.bf16.mxu0 %v7970_v4  ;;  %v4863_v10 = vld [vmem:[#allocation4 + $0x92] sm:$0xff] }
 0x3d3   :  { %7548 = vmatprep.subr.bf16.mxu1 %v7971_v5 }
 0x3d4   :  { %7533 = vmatpush3.bf16.msra.mxu0 %v7970_v4  ;;  %v4996_v4 = vpack.c.bf16 %v9084_v42, %v4988_v0  ;;  %v4862_v42 = vld [vmem:[#allocation4 + $0x72] sm:$0xff] }
 0x3d5   :  { %7549 = vmatpush3.bf16.msra.mxu1 %v7971_v5  ;;  %7558 = vmatprep.subr.bf16.mxu0 %v7972_v11  ;;  %v8004_v5 = vld [vmem:[%s9760_s7 + $0x98] sm:$0xff]  }
 0x3d6   :  { %7574 = vmatprep.subr.bf16.mxu1 %v7973_v13 }
 0x3d7   :  { %7535 = vmatmul.mubr.msk.bf16.vlgmr.msra.gmra.mxu0 %vm33_vm1, %v3751_v7  ;;  %v8006_v7 = vld [vmem:[%s9760_s7 + $0x90] sm:$0xff]  }
 0x3d8   :  { %7551 = vmatmul.mubr.msk.bf16.vlgmr.msra.gmra.mxu1 %vm33_vm1, %v9100_v15  ;;  %7559 = vmatpush3.bf16.msra.mxu0 %v7972_v11 }
 0x3d9   :  { %7575 = vmatpush3.bf16.msra.mxu1 %v7973_v13  ;;  %7538 = vmatprep.mubr.msk.bf16.mxu0 %vm33_vm1, %v3752_v16  ;;  %v4864_v13 = vld [vmem:[#allocation4 + $0xb2] sm:$0xff]  ;;  %v8008_v16 = vld [vmem:[%s9760_s7 + $0x88] sm:$0xff]  }
 0x3da   :  { %7554 = vmatprep.mubr.msk.bf16.mxu1 %vm33_vm1, %v9082_v41  ;;  %7560 = vmatprep.subr.bf16.mxu0 %v7974_v55 }
 0x3db   :  { %7576 = vmatprep.subr.bf16.mxu1 %v7975_v14 }
 0x3dc   :  { %7561 = vmatpush3.bf16.msra.mxu0 %v7974_v55  ;;  %v8007_v55 = vld [vmem:[%s9760_s7 + $0xb0] sm:$0xff]  }
 0x3dd   :  { %7577 = vmatpush3.bf16.msra.mxu1 %v7975_v14  ;;  %7562 = vmatprep.subr.bf16.mxu0 %v7976_v23  ;;  %v9397_v14 = vpack.c.bf16 %v4864_v13, %v4863_v10 }
 0x3de   :  { %7578 = vmatprep.subr.bf16.mxu1 %v7977_v19 }
 0x3df   :  { %7539 = vmatmul.mubr.msk.bf16.gmra.mxu0 %vm33_vm1, %v3753_v20 }
 0x3e0   :  { %7555 = vmatmul.mubr.msk.bf16.gmra.mxu1 %vm33_vm1, %v9226_v21  ;;  %7563 = vmatpush3.bf16.msra.mxu0 %v7976_v23  ;;  %v8009_v23 = vld [vmem:[%s9760_s7 + $0xa8] sm:$0xff]  }
 0x3e1   :  { %7579 = vmatpush3.bf16.msra.mxu1 %v7977_v19  ;;  %7566 = vmatprep.mubr.msk.bf16.mxu0 %vm33_vm1, %v9239_v49  ;;  %v4866_v19 = vld [vmem:[#allocation4 + $0xf2] sm:$0xff] }
 0x3e2   :  { %7582 = vmatprep.mubr.msk.bf16.mxu1 %vm33_vm1, %v9136_v45  ;;  %7564 = vmatprep.subr.bf16.mxu0 %v7978_v25  ;;  %v7993_v45 = vld [vmem:[%s9760_s7 + $0x8] sm:$0xff]  }
 0x3e3   :  { %7580 = vmatprep.subr.bf16.mxu1 %v7979_v52 }
 0x3e4   :  { %7565 = vmatpush3.bf16.msra.mxu0 %v7978_v25  ;;  %v8012_v25 = vld [vmem:[%s9760_s7 + $0xd8] sm:$0xff]  }
 0x3e5   :  { %7581 = vmatpush3.bf16.msra.mxu1 %v7979_v52  ;;  %7590 = vmatprep.subr.bf16.mxu0 %v7980_v30  ;;  %v8013_v52 = vld [vmem:[%s9760_s7 + $0xf8] sm:$0xff]  }
 0x3e6   :  { %7606 = vmatprep.subr.bf16.mxu1 %v7981_v26 }
 0x3e7   :  { %7567 = vmatmul.mubr.msk.bf16.vlgmr.msra.gmra.mxu0 %vm33_vm1, %v9253_v12 }
 0x3e8   :  { %7583 = vmatmul.mubr.msk.bf16.vlgmr.msra.gmra.mxu1 %vm33_vm1, %v9157_v59  ;;  %7591 = vmatpush3.bf16.msra.mxu0 %v7980_v30  ;;  %v7996_v59 = vld [vmem:[%s9760_s7 + $0x58] sm:$0xff]   ;;  %v8015_v30 = vld [vmem:[%s9760_s7 + $0xf0] sm:$0xff]  }
 0x3e9   :  { %7607 = vmatpush3.bf16.msra.mxu1 %v7981_v26  ;;  %7570 = vmatprep.mubr.msk.bf16.mxu0 %vm33_vm1, %v9267_v29 }
 0x3ea   :  { %7586 = vmatprep.mubr.msk.bf16.mxu1 %vm33_vm1, %v9177_v2  ;;  %7592 = vmatprep.subr.bf16.mxu0 %v7982_v27 }
 0x3eb   :  { %7608 = vmatprep.subr.bf16.mxu1 %v7983_v28 }
 0x3ec   :  { %7593 = vmatpush3.bf16.msra.mxu0 %v7982_v27  ;;  %v8016_v27 = vld [vmem:[%s9760_s7 + $0xc8] sm:$0xff]  }
 0x3ed   :  { %7609 = vmatpush3.bf16.msra.mxu1 %v7983_v28  ;;  %7594 = vmatprep.subr.bf16.mxu0 %v7984_v31  ;;  %v8017_v28 = vld [vmem:[%s9760_s7 + $0xe8] sm:$0xff]  }
 0x3ee   :  { %7610 = vmatprep.subr.bf16.mxu1 %v7985_v32 }
 0x3ef   :  { %7571 = vmatmul.mubr.msk.bf16.gmra.mxu0 %vm33_vm1, %v9280_v63 }
 0x3f0   :  { %7587 = vmatmul.mubr.msk.bf16.gmra.mxu1 %vm33_vm1, %v4143_v36  ;;  %7595 = vmatpush3.bf16.msra.mxu0 %v7984_v31  ;;  %v5375_v31 = vld [vmem:[#allocation4 + $0x50] sm:$0xff] }
 0x3f1   :  { %7611 = vmatpush3.bf16.msra.mxu1 %v7985_v32  ;;  %7598 = vmatprep.mubr.msk.bf16.mxu0 %vm33_vm1, %v9087_v44 }
 0x3f2   :  { %7614 = vmatprep.mubr.msk.bf16.mxu1 %vm33_vm1, %v9140_v24  ;;  %7596 = vmatprep.subr.bf16.mxu0 %v7986_v37 }
 0x3f3   :  { %7612 = vmatprep.subr.bf16.mxu1 %v7987_v17 }
 0x3f4   :  { %7597 = vmatpush3.bf16.msra.mxu0 %v7986_v37  ;;  %v8020_v37 = vld [vmem:[%s9760_s7 + $0x118] sm:$0xff]  }
 0x3f5   :  { %7613 = vmatpush3.bf16.msra.mxu1 %v7987_v17  ;;  %7622 = vmatprep.subr.bf16.mxu0 %v7988_v38  ;;  %v5377_v17 = vld [vmem:[#allocation4 + $0x90] sm:$0xff] }
 0x3f6   :  { %7638 = vmatprep.subr.bf16.mxu1 %v7989_v35 }
 0x3f7   :  { %7599 = vmatmul.mubr.msk.bf16.vlgmr.msra.gmra.mxu0 %vm33_vm1, %v9095_v46 }
 0x3f8   :  { %7615 = vmatmul.mubr.msk.bf16.vlgmr.msra.gmra.mxu1 %vm33_vm1, %v9161_v60  ;;  %7623 = vmatpush3.bf16.msra.mxu0 %v7988_v38  ;;  %v5379_v38 = vld [vmem:[#allocation4 + $0xd0] sm:$0xff] }
 0x3f9   :  { %7639 = vmatpush3.bf16.msra.mxu1 %v7989_v35  ;;  %7602 = vmatprep.mubr.msk.bf16.mxu0 %vm33_vm1, %v9109_v40 }
 0x3fa   :  { %7618 = vmatprep.mubr.msk.bf16.mxu1 %vm33_vm1, %v9181_v3  ;;  %7624 = vmatprep.subr.bf16.mxu0 %v7990_v9 }
 0x3fb   :  { %7640 = vmatprep.subr.bf16.mxu1 %v7991_v39 }
 0x3fc   :  { %7625 = vmatpush3.bf16.msra.mxu0 %v7990_v9  ;;  %v5380_v9 = vld [vmem:[#allocation4 + $0xf0] sm:$0xff] }
 0x3fd   :  { %7641 = vmatpush3.bf16.msra.mxu1 %v7991_v39  ;;  %7626 = vmatprep.subr.bf16.mxu0 %v7992_v43  ;;  %v8021_v39 = vld [vmem:[%s9760_s7 + $0x110] sm:$0xff]  }
 0x3fe   :  { %7642 = vmatprep.subr.bf16.mxu1 %v7993_v45 }
 0x3ff   :  { %7603 = vmatmul.mubr.msk.bf16.gmra.mxu0 %vm33_vm1, %v9322_v48 }
 0x400   :  { %7619 = vmatmul.mubr.msk.bf16.gmra.mxu1 %vm33_vm1, %v9324_v50  ;;  %7627 = vmatpush3.bf16.msra.mxu0 %v7992_v43  ;;  %v8022_v43 = vld [vmem:[%s9760_s7 + $0x108] sm:$0xff]  }
 0x401   :  { %7643 = vmatpush3.bf16.msra.mxu1 %v7993_v45  ;;  %7630 = vmatprep.mubr.msk.bf16.mxu0 %vm33_vm1, %v9115_v51  ;;  %v7998_v51 = vld [vmem:[%s9760_s7 + $0x50] sm:$0xff]  }
 0x402   :  { %7646 = vmatprep.mubr.msk.bf16.mxu1 %vm33_vm1, %v9034_v8  ;;  %7628 = vmatprep.subr.bf16.mxu0 %v7994_v57  ;;  %v7999_v8 = vld [vmem:[%s9760_s7 + $0x70] sm:$0xff]  }
 0x403   :  { %7644 = vmatprep.subr.bf16.mxu1 %v7995_v58 }
 0x404   :  { %7629 = vmatpush3.bf16.msra.mxu0 %v7994_v57 }
 0x405   :  { %7645 = vmatpush3.bf16.msra.mxu1 %v7995_v58  ;;  %7654 = vmatprep.subr.bf16.mxu0 %v7996_v59 }
 0x406   :  { %7670 = vmatprep.subr.bf16.mxu1 %v7997_v61 }
 0x407   :  { %7631 = vmatmul.mubr.msk.bf16.vlgmr.msra.gmra.mxu0 %vm33_vm1, %v9140_v24 }
 0x408   :  { %7647 = vmatmul.mubr.msk.bf16.vlgmr.msra.gmra.mxu1 %vm33_vm1, %v9087_v44  ;;  %7655 = vmatpush3.bf16.msra.mxu0 %v7996_v59  ;;  %v4859_v44 = vld [vmem:[#allocation4 + $0x12] sm:$0xff] }
 0x409   :  { %7671 = vmatpush3.bf16.msra.mxu1 %v7997_v61  ;;  %7634 = vmatprep.mubr.msk.bf16.mxu0 %vm33_vm1, %v9161_v60  ;;  %v4867_v2 = vpack.c.bf16 %v4860_v62, %v4859_v44 }
 0x40a   :  { %7650 = vmatprep.mubr.msk.bf16.mxu1 %vm33_vm1, %v9095_v46  ;;  %7656 = vmatprep.subr.bf16.mxu0 %v7998_v51  ;;  %v8002_v46 = vld [vmem:[%s9760_s7 + $0x40] sm:$0xff]  }
 0x40b   :  { %7672 = vmatprep.subr.bf16.mxu1 %v7999_v8 }
 0x40c   :  { %7657 = vmatpush3.bf16.msra.mxu0 %v7998_v51 }
 0x40d   :  { %7673 = vmatpush3.bf16.msra.mxu1 %v7999_v8  ;;  %7658 = vmatprep.subr.bf16.mxu0 %v8000_v54 }
 0x40e   :  { %7674 = vmatprep.subr.bf16.mxu1 %v8001_v53 }
 0x40f   :  { %7635 = vmatmul.mubr.msk.bf16.gmra.mxu0 %vm33_vm1, %v9181_v3 }
 0x410   :  { %7651 = vmatmul.mubr.msk.bf16.gmra.mxu1 %vm33_vm1, %v9109_v40  ;;  %7659 = vmatpush3.bf16.msra.mxu0 %v8000_v54  ;;  %v4861_v40 = vld [vmem:[#allocation4 + $0x52] sm:$0xff] }
 0x411   :  { %7675 = vmatpush3.bf16.msra.mxu1 %v8001_v53  ;;  %7662 = vmatprep.mubr.msk.bf16.mxu0 %vm33_vm1, %v4867_v2  ;;  %v9385_v11 = vpack.c.bf16 %v4862_v42, %v4861_v40  ;;  %v5254_v20 = vpack.c.bf16 %v4861_v40, %v4860_v62 }
 0x412   :  { %7678 = vmatprep.mubr.msk.bf16.mxu1 %vm33_vm1, %v4996_v4  ;;  %7660 = vmatprep.subr.bf16.mxu0 %v8002_v46 }
 0x413   :  { %7676 = vmatprep.subr.bf16.mxu1 %v8003_v1 }
 0x414   :  { %7661 = vmatpush3.bf16.msra.mxu0 %v8002_v46 }
 0x415   :  { %7677 = vmatpush3.bf16.msra.mxu1 %v8003_v1  ;;  %7686 = vmatprep.subr.bf16.mxu0 %v8004_v5 }
 0x416   :  { %7702 = vmatprep.subr.bf16.mxu1 %v8005_v6 }
 0x417   :  { %7663 = vmatmul.mubr.msk.bf16.vlgmr.msra.gmra.mxu0 %vm33_vm1, %v9385_v11 }
 0x418   :  { %7679 = vmatmul.mubr.msk.bf16.vlgmr.msra.gmra.mxu1 %vm33_vm1, %v9100_v15  ;;  %7687 = vmatpush3.bf16.msra.mxu0 %v8004_v5  ;;  %v4865_v15 = vld [vmem:[#allocation4 + $0xd2] sm:$0xff] }
 0x419   :  { %7703 = vmatpush3.bf16.msra.mxu1 %v8005_v6  ;;  %7666 = vmatprep.mubr.msk.bf16.mxu0 %vm33_vm1, %v9397_v14  ;;  %v9409_v56 = vpack.c.bf16 %v4866_v19, %v4865_v15  ;;  %v5256_v26 = vpack.c.bf16 %v4865_v15, %v4864_v13 }
 0x41a   :  { %7682 = vmatprep.mubr.msk.bf16.mxu1 %vm33_vm1, %v9082_v41  ;;  %7688 = vmatprep.subr.bf16.mxu0 %v8006_v7  ;;  %v8010_v41 = vld [vmem:[%s9760_s7 + $0x80] sm:$0xff]  }
 0x41b   :  { %7704 = vmatprep.subr.bf16.mxu1 %v8007_v55 }
 0x41c   :  { %7689 = vmatpush3.bf16.msra.mxu0 %v8006_v7 }
 0x41d   :  { %7705 = vmatpush3.bf16.msra.mxu1 %v8007_v55  ;;  %7690 = vmatprep.subr.bf16.mxu0 %v8008_v16 }
 0x41e   :  { %7706 = vmatprep.subr.bf16.mxu1 %v8009_v23 }
 0x41f   :  { %7667 = vmatmul.mubr.msk.bf16.gmra.mxu0 %vm33_vm1, %v9409_v56 }
 0x420   :  { %7683 = vmatmul.mubr.msk.bf16.gmra.mxu1 %vm33_vm1, %v9226_v21  ;;  %7691 = vmatpush3.bf16.msra.mxu0 %v8008_v16  ;;  %v5255_v21 = vpack.c.bf16 %v4863_v10, %v4862_v42 }
 0x421   :  { %7707 = vmatpush3.bf16.msra.mxu1 %v8009_v23  ;;  %7694 = vmatprep.mubr.msk.bf16.mxu0 %vm33_vm1, %v9239_v49  ;;  %v8014_v49 = vld [vmem:[%s9760_s7 + $0xd0] sm:$0xff]  }
 0x422   :  { %7710 = vmatprep.mubr.msk.bf16.mxu1 %vm33_vm1, %v5254_v20  ;;  %7692 = vmatprep.subr.bf16.mxu0 %v8010_v41 }
 0x423   :  { %7708 = vmatprep.subr.bf16.mxu1 %v8011_v18 }
 0x424   :  { %7693 = vmatpush3.bf16.msra.mxu0 %v8010_v41 }
 0x425   :  { %7709 = vmatpush3.bf16.msra.mxu1 %v8011_v18  ;;  %7718 = vmatprep.subr.bf16.mxu0 %v8012_v25 }
 0x426   :  { %7734 = vmatprep.subr.bf16.mxu1 %v8013_v52 }
 0x427   :  { %7695 = vmatmul.mubr.msk.bf16.vlgmr.msra.gmra.mxu0 %vm33_vm1, %v9253_v12  ;;  %v5253_v12 = vld [vmem:[#allocation4 + $0x112] sm:$0xff] }
 0x428   :  { %7711 = vmatmul.mubr.msk.bf16.vlgmr.msra.gmra.mxu1 %vm33_vm1, %v5255_v21  ;;  %7719 = vmatpush3.bf16.msra.mxu0 %v8012_v25  ;;  %v5257_v32 = vpack.c.bf16 %v5253_v12, %v4866_v19 }
 0x429   :  { %7735 = vmatpush3.bf16.msra.mxu1 %v8013_v52  ;;  %7698 = vmatprep.mubr.msk.bf16.mxu0 %vm33_vm1, %v9267_v29  ;;  %v5376_v29 = vld [vmem:[#allocation4 + $0x70] sm:$0xff] }
 0x42a   :  { %7714 = vmatprep.mubr.msk.bf16.mxu1 %vm33_vm1, %v5256_v26  ;;  %7720 = vmatprep.subr.bf16.mxu0 %v8014_v49  ;;  %v5383_v36 = vpack.c.bf16 %v5376_v29, %v5375_v31 }
 0x42b   :  { %7736 = vmatprep.subr.bf16.mxu1 %v8015_v30 }
 0x42c   :  { %7721 = vmatpush3.bf16.msra.mxu0 %v8014_v49 }
 0x42d   :  { %7737 = vmatpush3.bf16.msra.mxu1 %v8015_v30  ;;  %7722 = vmatprep.subr.bf16.mxu0 %v8016_v27 }
 0x42e   :  { %7738 = vmatprep.subr.bf16.mxu1 %v8017_v28 }
 0x42f   :  { %7699 = vmatmul.mubr.msk.bf16.gmra.mxu0 %vm33_vm1, %v9280_v63  ;;  %v5378_v63 = vld [vmem:[#allocation4 + $0xb0] sm:$0xff] }
 0x430   :  { %7715 = vmatmul.mubr.msk.bf16.gmra.mxu1 %vm33_vm1, %v5257_v32  ;;  %7723 = vmatpush3.bf16.msra.mxu0 %v8016_v27  ;;  %v5384_v35 = vpack.c.bf16 %v5378_v63, %v5377_v17 }
 0x431   :  { %7739 = vmatpush3.bf16.msra.mxu1 %v8017_v28  ;;  %7726 = vmatprep.mubr.msk.bf16.mxu0 %vm33_vm1, %v5383_v36 }
 0x432   :  { %7742 = vmatprep.mubr.msk.bf16.mxu1 %vm33_vm1, %v9140_v24  ;;  %7724 = vmatprep.subr.bf16.mxu0 %v8018_v33  ;;  %v5385_v24 = vpack.c.bf16 %v5380_v9, %v5379_v38 }
 0x433   :  { %7740 = vmatprep.subr.bf16.mxu1 %v8019_v34 }
 0x434   :  { %7725 = vmatpush3.bf16.msra.mxu0 %v8018_v33 }
 0x435   :  { %7741 = vmatpush3.bf16.msra.mxu1 %v8019_v34  ;;  %7750 = vmatprep.subr.bf16.mxu0 %v8020_v37 }
 0x436   :  { %7766 = vmatprep.subr.bf16.mxu1 %v8020_v37 }
 0x437   :  { %7727 = vmatmul.mubr.msk.bf16.vlgmr.msra.gmra.mxu0 %vm33_vm1, %v5384_v35 }
 0x438   :  { %7743 = vmatmul.mubr.msk.bf16.vlgmr.msra.gmra.mxu1 %vm33_vm1, %v9161_v60  ;;  %7751 = vmatpush3.bf16.msra.mxu0 %v8020_v37  ;;  %v8023_v60 = vld [vmem:[%s9760_s7 + $0x100] sm:$0xff]  }
 0x439   :  { %7770 = vmatpush3.bf16.msra.mxu1 %v8020_v37  ;;  %7730 = vmatprep.mubr.msk.bf16.mxu0 %vm33_vm1, %v5385_v24 }
 0x43a   :  { %7746 = vmatprep.mubr.msk.bf16.mxu1 %vm33_vm1, %v9181_v3  ;;  %7752 = vmatprep.subr.bf16.mxu0 %v8021_v39  ;;  %v5640_v3 = vld [vmem:[#allocation4 + $0x132] sm:$0xff] }
 0x43b   :  { %7767 = vmatprep.subr.bf16.mxu1 %v8021_v39  ;;  %v5644_v45 = vpack.c.bf16 %v5640_v3, %v5253_v12 }
 0x43c   :  { %7753 = vmatpush3.bf16.msra.mxu0 %v8021_v39 }
 0x43d   :  { %7771 = vmatpush3.bf16.msra.mxu1 %v8021_v39  ;;  %7754 = vmatprep.subr.bf16.mxu0 %v8022_v43 }
 0x43e   :  { %7768 = vmatprep.subr.bf16.mxu1 %v8022_v43 }
 0x43f   :  { %7731 = vmatmul.mubr.msk.bf16.gmra.mxu0 %vm33_vm1, %v9322_v48 }
 0x440   :  { %7747 = vmatmul.mubr.msk.bf16.gmra.mxu1 %vm33_vm1, %v9324_v50  ;;  %7755 = vmatpush3.bf16.msra.mxu0 %v8022_v43 }
 0x441   :  { %7772 = vmatpush3.bf16.msra.mxu1 %v8022_v43  ;;  %7758 = vmatprep.mubr.msk.bf16.mxu0 %vm33_vm1, %v9385_v11 }
 0x442   :  { %7762 = vmatprep.mubr.msk.bf16.mxu1 %vm33_vm1, %v9409_v56  ;;  %7756 = vmatprep.subr.bf16.mxu0 %v8023_v60 }
 0x443   :  { %7769 = vmatprep.subr.bf16.mxu1 %v8023_v60 }
 0x444   :  { %7757 = vmatpush3.bf16.msra.mxu0 %v8023_v60 }
 0x445   :  { %7773 = vmatpush3.bf16.msra.mxu1 %v8023_v60 }
 0x447   :  { %7759 = vmatmul.mubr.msk.bf16.vlgmr.msra.gmra.mxu0 %vm33_vm1, %v9397_v14  ;;  %v7488_v22 = vpop.f32.mrf.mxu1 }
 0x448   :  { %7763 = vmatmul.mubr.msk.bf16.vlgmr.msra.gmra.mxu1 %vm33_vm1, %v5644_v45 }
 0x449   :  { %v3480_v47 = vpop.f32.mrf.mxu1 }
 0x44b   :  { %v7489_v48 = vpop.f32.mrf.mxu1 }
 0x44d   :  { %v3483_v50 = vpop.f32.mrf.mxu1 }
 0x44f   :  { %v7492_v57 = vpop.f32.mrf.mxu1 }
 0x451   :  { %v3496_v58 = vpop.f32.mrf.mxu1 }
 0x453   :  { %v7493_v59 = vpop.f32.mrf.mxu1 }
 0x455   :  { %v9489_v61 = vpop.f32.mrf.mxu1 }
 0x487   :  { %v7504_v51 = vpop.f32.mrf.mxu0 }
 0x488   :  { %v7520_v8 = vpop.f32.mrf.mxu1  ;;  %v3590_v49 = vadd.f32 %v7504_v51, %v7488_v22 }
 0x489   :  { %v3581_v54 = vpop.f32.mrf.mxu0 }
 0x48a   :  { %v3703_v53 = vpop.f32.mrf.mxu1  ;;  %v3582_v27 = vadd.f32 %v3581_v54, %v3480_v47  ;;  %v3736_v31 = vadd.f32 %v7520_v8, %v3590_v49 }
 0x48b   :  { %v7505_v44 = vpop.f32.mrf.mxu0 }
 0x48c   :  { %v7521_v62 = vpop.f32.mrf.mxu1  ;;  %v3593_v32 = vadd.f32 %v7505_v44, %v7489_v48  ;;  %v3734_v34 = vadd.f32 %v3703_v53, %v3582_v27 }
 0x48d   :  { %v3584_v0 = vpop.f32.mrf.mxu0 }
 0x48e   :  { %v3706_v46 = vpop.f32.mrf.mxu1  ;;  %v3585_v36 = vadd.f32 %v3584_v0, %v3483_v50  ;;  %v3737_v38 = vadd.f32 %v7521_v62, %v3593_v32 }
 0x48f   :  { %v7508_v1 = vpop.f32.mrf.mxu0 }
 0x490   :  { %v7524_v2 = vpop.f32.mrf.mxu1  ;;  %v3606_v9 = vadd.f32 %v7508_v1, %v7492_v57  ;;  %v3735_v60 = vadd.f32 %v3706_v46, %v3585_v36 }
 0x491   :  { %v3597_v4 = vpop.f32.mrf.mxu0 }
 0x492   :  { %v3719_v5 = vpop.f32.mrf.mxu1  ;;  %v3598_v39 = vadd.f32 %v3597_v4, %v3496_v58  ;;  %v3740_v53 = vadd.f32 %v7524_v2, %v3606_v9 }
 0x493   :  { %v7509_v6 = vpop.f32.mrf.mxu0 }
 0x494   :  { %v7525_v40 = vpop.f32.mrf.mxu1  ;;  %v3609_v22 = vadd.f32 %v7509_v6, %v7493_v59  ;;  %v3738_v50 = vadd.f32 %v3719_v5, %v3598_v39 }
 0x495   :  { %v3600_v42 = vpop.f32.mrf.mxu0 }
 0x496   :  { %v9491_v10 = vpop.f32.mrf.mxu1  ;;  %v3601_v44 = vadd.f32 %v3600_v42, %v9489_v61  ;;  %v3741_v58 = vadd.f32 %v7525_v40, %v3609_v22  ;;  %v9502_v40 = vld [vmem:[%s9761_s8] ss:$0 sm:$0xff] }
 0x497   :  { %v7536_v11 = vpop.f32.mrf.mxu0 }
 0x498   :  { %v7552_v13 = vpop.f32.mrf.mxu1  ;;  %v3866_v37 = vadd.f32 %v7536_v11, %v3736_v31 }
 0x499   :  { %v3833_v7 = vpop.f32.mrf.mxu0 }
 0x49a   :  { %v3963_v55 = vpop.f32.mrf.mxu1  ;;  %v3864_v35 = vadd.f32 %v3833_v7, %v3734_v34  ;;  %v3996_v3 = vadd.f32 %v7552_v13, %v3866_v37 }
 0x49b   :  { %v7537_v14 = vpop.f32.mrf.mxu0 }
 0x49c   :  { %v7553_v16 = vpop.f32.mrf.mxu1  ;;  %v3867_v45 = vadd.f32 %v7537_v14, %v3737_v38  ;;  %v3994_v48 = vadd.f32 %v3963_v55, %v3864_v35  ;;  %v3739_v55 = vadd.f32 %v9491_v10, %v3601_v44 }
 0x49d   :  { %v3836_v23 = vpop.f32.mrf.mxu0 }
 0x49e   :  { %v3966_v15 = vpop.f32.mrf.mxu1  ;;  %v3865_v8 = vadd.f32 %v3836_v23, %v3735_v60  ;;  %v3997_v11 = vadd.f32 %v7553_v16, %v3867_v45 }
 0x49f   :  { %v7540_v19 = vpop.f32.mrf.mxu0 }
 0x4a0   :  { %v7556_v56 = vpop.f32.mrf.mxu1  ;;  %v3870_v1 = vadd.f32 %v7540_v19, %v3740_v53  ;;  %v3995_v7 = vadd.f32 %v3966_v15, %v3865_v8 }
 0x4a1   :  { %v3849_v41 = vpop.f32.mrf.mxu0 }
 0x4a2   :  { %v3979_v18 = vpop.f32.mrf.mxu1  ;;  %v3868_v4 = vadd.f32 %v3849_v41, %v3738_v50  ;;  %v4000_v42 = vadd.f32 %v7556_v56, %v3870_v1 }
 0x4a3   :  { %v7541_v20 = vpop.f32.mrf.mxu0 }
 0x4a4   :  { %v9493_v25 = vpop.f32.mrf.mxu1  ;;  %v3871_v14 = vadd.f32 %v7541_v20, %v3741_v58 }
 0x4a5   :  { %v3852_v52 = vpop.f32.mrf.mxu0 }
 0x4a6   :  { %v9495_v21 = vpop.f32.mrf.mxu1  ;;  %v3869_v16 = vadd.f32 %v3852_v52, %v3739_v55  ;;  %v4001_v10 = vadd.f32 %v9493_v25, %v3871_v14 }
 0x4a7   :  { %v7568_v30 = vpop.f32.mrf.mxu0 }
 0x4a8   :  { %v7584_v26 = vpop.f32.mrf.mxu1  ;;  %v4126_v54 = vadd.f32 %v7568_v30, %v3996_v3  ;;  %v3998_v30 = vadd.f32 %v3979_v18, %v3868_v4 }
 0x4a9   :  { %v4093_v28 = vpop.f32.mrf.mxu0 }
 0x4aa   :  { %v4223_v12 = vpop.f32.mrf.mxu1  ;;  %v4124_v57 = vadd.f32 %v4093_v28, %v3994_v48  ;;  %v4256_v59 = vadd.f32 %v7584_v26, %v4126_v54 }
 0x4ab   :  { %v7569_v29 = vpop.f32.mrf.mxu0 }
 0x4ac   :  { %v7585_v33 = vpop.f32.mrf.mxu1  ;;  %v4127_v6 = vadd.f32 %v7569_v29, %v3997_v11  ;;  %v4254_v5 = vadd.f32 %v4223_v12, %v4124_v57  ;;  %v3999_v29 = vadd.f32 %v9495_v21, %v3869_v16 }
 0x4ad   :  { %v4096_v17 = vpop.f32.mrf.mxu0 }
 0x4ae   :  { %v4226_v63 = vpop.f32.mrf.mxu1  ;;  %v4125_v49 = vadd.f32 %v4096_v17, %v3995_v7  ;;  %v4257_v41 = vadd.f32 %v7585_v33, %v4127_v6 }
 0x4af   :  { %v7572_v24 = vpop.f32.mrf.mxu0 }
 0x4b0   :  { %v7588_v43 = vpop.f32.mrf.mxu1  ;;  %v4130_v20 = vadd.f32 %v7572_v24, %v4000_v42  ;;  %v4255_v32 = vadd.f32 %v4226_v63, %v4125_v49 }
 0x4b1   :  { %v4109_v47 = vpop.f32.mrf.mxu0 }
 0x4b2   :  { %v4239_v51 = vpop.f32.mrf.mxu1  ;;  %v4128_v28 = vadd.f32 %v4109_v47, %v3998_v30  ;;  %v4260_v35 = vadd.f32 %v7588_v43, %v4130_v20 }
 0x4b3   :  { %v7573_v0 = vpop.f32.mrf.mxu0 }
 0x4b4   :  { %v7589_v62 = vpop.f32.mrf.mxu1  ;;  %v4131_v34 = vadd.f32 %v7573_v0, %v4001_v10  ;;  %v4258_v9 = vadd.f32 %v4239_v51, %v4128_v28  ;;  %v4537_v10 = vlaneseq }
 0x4b5   :  { %v4112_v46 = vpop.f32.mrf.mxu0 }
 0x4b6   :  { %v4242_v13 = vpop.f32.mrf.mxu1  ;;  %v4129_v63 = vadd.f32 %v4112_v46, %v3999_v29  ;;  %v4261_v45 = vadd.f32 %v7589_v62, %v4131_v34  ;;  %v4538_v34 = vand.u32 127, %v4537_v10 }
 0x4b7   :  { %v7600_v23 = vpop.f32.mrf.mxu0 }
 0x4b8   :  { %v7616_v2 = vpop.f32.mrf.mxu1  ;;  %v4386_v61 = vadd.f32 %v7600_v23, %v4256_v59  ;;  %v4259_v54 = vadd.f32 %v4242_v13, %v4129_v63  ;;  %v4543_v63 = vand.u32 3, %v4538_v34 }
 0x4b9   :  { %v4353_v19 = vpop.f32.mrf.mxu0 }
 0x4ba   :  { %v4483_v15 = vpop.f32.mrf.mxu1  ;;  %v4516_v26 = vadd.f32 %v7616_v2, %v4386_v61  ;;  %v4384_v27 = vadd.f32 %v4353_v19, %v4254_v5  ;;  %vm9578_vm4 = vcmp.eq.s32.totalorder %v4543_v63, 0 }
 0x4bb   :  { %v7601_v12 = vpop.f32.mrf.mxu0 }
 0x4bc   :  { %v7617_v31 = vpop.f32.mrf.mxu1  ;;  %v9506_v56 = vadd.f32 %v9502_v40, %v4516_v26  ;;  %v4514_v18 = vadd.f32 %v4483_v15, %v4384_v27  ;;  %v4387_v52 = vadd.f32 %v7601_v12, %v4257_v41 }
 0x4bd   :  { %v4356_v36 = vpop.f32.mrf.mxu0 }
 0x4be   :  { %v4486_v37 = vpop.f32.mrf.mxu1  ;;  %v6497_v33 = vmul.f32 -1.442695, %v9506_v56  ;;  %v9511_v17 = vadd.f32 %v9502_v40, %v4514_v18  ;;  %v4517_v25 = vadd.f32 %v7617_v31, %v4387_v52  ;;  %v4385_v38 = vadd.f32 %v4356_v36, %v4255_v32 }
 0x4bf   :  { %v7604_v39 = vpop.f32.mrf.mxu0 }
 0x4c0   :  { %v7620_v24 = vpop.f32.mrf.mxu1  ;;  %8024 = vpow2.f32 %v6497_v33  ;;  %v6495_v60 = vmul.f32 -1.442695, %v9511_v17  ;;  %v9515_v21 = vadd.f32 %v9502_v40, %v4517_v25  ;;  %v4515_v3 = vadd.f32 %v4486_v37, %v4385_v38 }
 0x4c1   :  { %v4390_v22 = vadd.f32 %v7604_v39, %v4260_v35  ;;  %v4369_v47 = vpop.f32.mrf.mxu0 }
 0x4c2   :  { %v4499_v48 = vpop.f32.mrf.mxu1  ;;  %8026 = vpow2.f32 %v6495_v60  ;;  %v6498_v8 = vmul.f32 -1.442695, %v9515_v21  ;;  %v9519_v43 = vadd.f32 %v9502_v40, %v4515_v3  ;;  %v4388_v51 = vadd.f32 %v4369_v47, %v4258_v9 }
 0x4c3   :  { %v4520_v53 = vadd.f32 %v7620_v24, %v4390_v22  ;;  %v7605_v50 = vpop.f32.mrf.mxu0 }
 0x4c4   :  { %v7621_v44 = vpop.f32.mrf.mxu1  ;;  %8028 = vpow2.f32 %v6498_v8  ;;  %v6496_v0 = vmul.f32 -1.442695, %v9519_v43  ;;  %v4518_v11 = vadd.f32 %v4499_v48, %v4388_v51  ;;  %v4391_v57 = vadd.f32 %v7605_v50, %v4261_v45 }
 0x4c5   :  { %v9523_v62 = vadd.f32 %v9502_v40, %v4520_v53  ;;  %v4372_v58 = vpop.f32.mrf.mxu0 }
 0x4c6   :  { %v4502_v1 = vpop.f32.mrf.mxu1  ;;  %8030 = vpow2.f32 %v6496_v0  ;;  %v9526_v4 = vadd.f32 %v9502_v40, %v4518_v11  ;;  %v4521_v46 = vadd.f32 %v7621_v44, %v4391_v57  ;;  %v4389_v7 = vadd.f32 %v4372_v58, %v4259_v54 }
 0x4c7   :  { %v6501_v13 = vmul.f32 -1.442695, %v9523_v62  ;;  %v9529_v59 = vpop.f32.mrf.mxu0 }
 0x4c8   :  { %v9531_v6 = vpop.f32.mrf.mxu1  ;;  %v6499_v55 = vmul.f32 -1.442695, %v9526_v4  ;;  %v9535_v14 = vadd.f32 %v9502_v40, %v4521_v46  ;;  %v4519_v23 = vadd.f32 %v4502_v1, %v4389_v7 }
 0x4c9   :  { %8032 = vpow2.f32 %v6501_v13  ;;  %v9537_v2 = vpop.f32.mrf.mxu0 }
 0x4ca   :  { %v9539_v5 = vpop.f32.mrf.mxu1  ;;  %8034 = vpow2.f32 %v6499_v55  ;;  %v6502_v49 = vmul.f32 -1.442695, %v9535_v14  ;;  %v9543_v61 = vadd.f32 %v9502_v40, %v4519_v23 }
 0x4cb   :  { %v9545_v42 = vpop.f32.mrf.mxu0 }
 0x4cc   :  { %v9547_v30 = vpop.f32.mrf.mxu1  ;;  %8036 = vpow2.f32 %v6502_v49  ;;  %v6500_v16 = vmul.f32 -1.442695, %v9543_v61 }
 0x4cd   :  { %v8025_v19 = vpop.eup %8024  ;;  %v9550_v15 = vpop.f32.mrf.mxu0 }
 0x4ce   :  { %v9552_v41 = vpop.f32.mrf.mxu1  ;;  %v4578_v26 = vadd.f32 1.0, %v8025_v19  ;;  %8038 = vpow2.f32 %v6500_v16 }
 0x4cf   :  { %v8027_v27 = vpop.eup %8026  ;;  %v9554_v20 = vpop.f32.mrf.mxu0 }
 0x4d0   :  { %v9556_v28 = vpop.f32.mrf.mxu1  ;;  %8040 = vrcp.f32 %v4578_v26  ;;  %v4576_v12 = vadd.f32 1.0, %v8027_v27 }
 0x4d1   :  { %v8029_v31 = vpop.eup %8028  ;;  %v9558_v32 = vpop.f32.mrf.mxu0 }
 0x4d2   :  { %v9560_v18 = vpop.f32.mrf.mxu1  ;;  %8042 = vrcp.f32 %v4576_v12  ;;  %v4579_v52 = vadd.f32 1.0, %v8029_v31 }
 0x4d3   :  { %v8031_v29 = vpop.eup %8030  ;;  %v9562_v36 = vpop.f32.mrf.mxu0 }
 0x4d4   :  { %v9564_v37 = vpop.f32.mrf.mxu1  ;;  %8044 = vrcp.f32 %v4579_v52  ;;  %v4577_v33 = vadd.f32 1.0, %v8031_v29 }
 0x4d5   :  { %v9566_v25 = vpop.f32.mrf.mxu0 }
 0x4d6   :  { %v9568_v38 = vpop.f32.mrf.mxu1  ;;  %v8033_v35 = vpop.eup %8032  ;;  %8046 = vrcp.f32 %v4577_v33 }
 0x4d7   :  { %v8035_v9 = vpop.eup %8034  ;;  %v4582_v39 = vadd.f32 1.0, %v8033_v35  ;;  %v9570_v24 = vpop.f32.mrf.mxu0 }
 0x4d8   :  { %v9572_v60 = vpop.f32.mrf.mxu1  ;;  %v4580_v3 = vadd.f32 1.0, %v8035_v9 }
 0x4d9   :  { %v8037_v45 = vpop.eup %8036  ;;  %8048 = vrcp.f32 %v4582_v39  ;;  %v9574_v22 = vpop.f32.mrf.mxu0 }
 0x4da   :  { %v9576_v47 = vpop.f32.mrf.mxu1  ;;  %8050 = vrcp.f32 %v4580_v3  ;;  %v4583_v48 = vadd.f32 1.0, %v8037_v45 }
 0x4db   :  { %v8039_v8 = vpop.eup %8038  ;;  %v9582_v54 = vpop.f32.mrf.mxu0 }
 0x4dc   :  { %v9584_v53 = vpop.f32.mrf.mxu1  ;;  %8052 = vrcp.f32 %v4583_v48  ;;  %v4581_v50 = vadd.f32 1.0, %v8039_v8 }
 0x4dd   :  { %v8041_v44 = vpop.eup %8040  ;;  %v9586_v0 = vpop.f32.mrf.mxu0 }
 0x4de   :  { %v9588_v11 = vpop.f32.mrf.mxu1  ;;  %v4602_v57 = vsel %vm9578_vm4, %v8041_v44, %v9506_v56  ;;  %8054 = vrcp.f32 %v4581_v50 }
 0x4df   :  { %v8043_v58 = vpop.eup %8042  ;;  %4611 = vst.msk [vmem:[%s9762_s9 + $0x10] sm:$0xff] %vm4608_vm5, %v4602_v57  ;;  %v7668_v1 = vpop.f32.mrf.mxu0  ;;  %v4837_v57 = vadd.f32 %v9531_v6, %v9529_v59  ;;  %v4840_v59 = vadd.f32 %v9547_v30, %v9545_v42  ;;  %v4832_v6 = vadd.f32 %v9552_v41, %v9550_v15 }
 0x4e0   :  { %v7684_v46 = vpop.f32.mrf.mxu1  ;;  %v4600_v7 = vsel %vm9578_vm4, %v8043_v58, %v9511_v17 }
 0x4e1   :  { %v8045_v13 = vpop.eup %8044  ;;  %4609 = vst.msk [vmem:[%s9762_s9] sm:$0xff] %vm4608_vm5, %v4600_v7  ;;  %v4965_v56 = vpop.f32.mrf.mxu0 }
 0x4e2   :  { %v5094_v55 = vpop.f32.mrf.mxu1  ;;  %v4603_v23 = vsel %vm9578_vm4, %v8045_v13, %v9515_v21  ;;  %v4829_v13 = vadd.f32 %v9539_v5, %v9537_v2  ;;  %v4856_v2 = vadd.f32 %v9564_v37, %v9562_v36 }
 0x4e3   :  { %v8047_v49 = vpop.eup %8046  ;;  %4612 = vst.msk [vmem:[%s9762_s9 + $0x18] sm:$0xff] %vm4608_vm5, %v4603_v23  ;;  %v7669_v16 = vpop.f32.mrf.mxu0  ;;  %v4845_v23 = vadd.f32 %v9560_v18, %v9558_v32  ;;  %v4848_v18 = vadd.f32 %v9568_v38, %v9566_v25 }
 0x4e4   :  { %v9611_v17 = vpop.f32.mrf.mxu1  ;;  %v4601_v19 = vsel %vm9578_vm4, %v8047_v49, %v9519_v43  ;;  %v4982_v49 = vadd.f32 %v9570_v24, %v4837_v57  ;;  %v4983_v24 = vadd.f32 %v9582_v54, %v4840_v59 }
 0x4e5   :  { %4610 = vst.msk [vmem:[%s9762_s9 + $0x8] sm:$0xff] %vm4608_vm5, %v4601_v19  ;;  %v4968_v26 = vpop.f32.mrf.mxu0 }
 0x4e6   :  { %v9620_v21 = vpop.f32.mrf.mxu1  ;;  %v8049_v27 = vpop.eup %8048  ;;  %v4985_v37 = vadd.f32 %v4968_v26, %v4848_v18 }
 0x4e7   :  { %v8051_v10 = vpop.eup %8050  ;;  %v4606_v12 = vsel %vm9578_vm4, %v8049_v27, %v9523_v62  ;;  %v7696_v31 = vpop.f32.mrf.mxu0 }
 0x4e8   :  { %v7712_v52 = vpop.f32.mrf.mxu1  ;;  %4615 = vst.msk [vmem:[%s9762_s9 + $0x30] sm:$0xff] %vm4608_vm5, %v4606_v12  ;;  %v4604_v43 = vsel %vm9578_vm4, %v8051_v10, %v9526_v4  ;;  %v4980_v12 = vadd.f32 %v9574_v22, %v4829_v13  ;;  %v4981_v22 = vadd.f32 %v9586_v0, %v4832_v6 }
 0x4e9   :  { %v8053_v29 = vpop.eup %8052  ;;  %4613 = vst.msk [vmem:[%s9762_s9 + $0x20] sm:$0xff] %vm4608_vm5, %v4604_v43  ;;  %v5207_v34 = vpop.f32.mrf.mxu0  ;;  %v4984_v43 = vadd.f32 %v4965_v56, %v4845_v23 }
 0x4ea   :  { %v9636_v33 = vpop.f32.mrf.mxu1  ;;  %v4607_v62 = vsel %vm9578_vm4, %v8053_v29, %v9535_v14  ;;  %v5109_v15 = vadd.f32 %v9576_v47, %v4980_v12  ;;  %v5110_v25 = vadd.f32 %v9588_v11, %v4981_v22  ;;  %v5114_v47 = vadd.f32 %v9620_v21, %v4985_v37 }
 0x4eb   :  { %v8055_v35 = vpop.eup %8054  ;;  %4616 = vst.msk [vmem:[%s9762_s9 + $0x38] sm:$0xff] %vm4608_vm5, %v4607_v62  ;;  %v7697_v4 = vpop.f32.mrf.mxu0  ;;  %v5113_v41 = vadd.f32 %v5094_v55, %v4984_v43 }
 0x4ec   :  { %v9645_v9 = vpop.f32.mrf.mxu1  ;;  %v4605_v63 = vsel %vm9578_vm4, %v8055_v35, %v9543_v61  ;;  %v4853_v61 = vadd.f32 %v9556_v28, %v9554_v20  ;;  %v5111_v28 = vadd.f32 %v9572_v60, %v4982_v49  ;;  %v5238_v60 = vadd.f32 %v5207_v34, %v5109_v15 }
 0x4ed   :  { %4614 = vst.msk [vmem:[%s9762_s9 + $0x28] sm:$0xff] %vm4608_vm5, %v4605_v63  ;;  %v5210_v39 = vpop.f32.mrf.mxu0  ;;  %v5112_v35 = vadd.f32 %v9584_v53, %v4983_v24 }
 0x4ee   :  { %v9654_v14 = vpop.f32.mrf.mxu1  ;;  %v4986_v19 = vadd.f32 %v7668_v1, %v4853_v61  ;;  %v4987_v1 = vadd.f32 %v7669_v16, %v4856_v2  ;;  %v5240_v56 = vadd.f32 %v7696_v31, %v5111_v28  ;;  %v5239_v31 = vadd.f32 %v5210_v39, %v5110_v25 }
 0x4ef   :  { %v7700_v3 = vpop.f32.mrf.mxu0  ;;  %v5241_v55 = vadd.f32 %v7697_v4, %v5112_v35  ;;  %v5367_v34 = vadd.f32 %v9636_v33, %v5238_v60 }
 0x4f0   :  { %v7716_v45 = vpop.f32.mrf.mxu1  ;;  %v5115_v32 = vadd.f32 %v7684_v46, %v4986_v19  ;;  %v5116_v38 = vadd.f32 %v9611_v17, %v4987_v1  ;;  %v5369_v16 = vadd.f32 %v7712_v52, %v5240_v56 }
 0x4f1   :  { %v5223_v48 = vpop.f32.mrf.mxu0  ;;  %v5370_v52 = vadd.f32 %v9645_v9, %v5241_v55 }
 0x4f2   :  { %v5352_v8 = vpop.f32.mrf.mxu1  ;;  %v5244_v36 = vadd.f32 %v7700_v3, %v5115_v32  ;;  %v5242_v46 = vadd.f32 %v5223_v48, %v5113_v41 }
 0x4f3   :  { %v7701_v50 = vpop.f32.mrf.mxu0 }
 0x4f4   :  { %v7717_v44 = vpop.f32.mrf.mxu1  ;;  %v5373_v63 = vadd.f32 %v7716_v45, %v5244_v36  ;;  %v5245_v3 = vadd.f32 %v7701_v50, %v5116_v38  ;;  %v5371_v48 = vadd.f32 %v5352_v8, %v5242_v46  ;;  %v5368_v45 = vadd.f32 %v9654_v14, %v5239_v31 }
 0x4f5   :  { %v5226_v58 = vpop.f32.mrf.mxu0 }
 0x4f6   :  { %v5355_v7 = vpop.f32.mrf.mxu1  ;;  %v5243_v13 = vadd.f32 %v5226_v58, %v5114_v47  ;;  %v5374_v21 = vadd.f32 %v7717_v44, %v5245_v3 }
 0x4f7   :  { %v7728_v27 = vpop.f32.mrf.mxu0 }
 0x4f8   :  { %v7744_v10 = vpop.f32.mrf.mxu1  ;;  %v5498_v61 = vadd.f32 %v7728_v27, %v5369_v16  ;;  %v5372_v12 = vadd.f32 %v5355_v7, %v5243_v13 }
 0x4f9   :  { %v5465_v5 = vpop.f32.mrf.mxu0 }
 0x4fa   :  { %v5594_v20 = vpop.f32.mrf.mxu1  ;;  %v5496_v17 = vadd.f32 %v5465_v5, %v5367_v34  ;;  %v5627_v50 = vadd.f32 %v7744_v10, %v5498_v61 }
 0x4fb   :  { %v7729_v42 = vpop.f32.mrf.mxu0 }
 0x4fc   :  { %v7745_v30 = vpop.f32.mrf.mxu1  ;;  %v5499_v43 = vadd.f32 %v7729_v42, %v5370_v52  ;;  %v5625_v58 = vadd.f32 %v5594_v20, %v5496_v17 }
 0x4fd   :  { %v5468_v29 = vpop.f32.mrf.mxu0 }
 0x4fe   :  { %v5597_v62 = vpop.f32.mrf.mxu1  ;;  %v5497_v33 = vadd.f32 %v5468_v29, %v5368_v45  ;;  %v5628_v18 = vadd.f32 %v7745_v30, %v5499_v43 }
 0x4ff   :  { %v7732_v54 = vpop.f32.mrf.mxu0 }
 0x500   :  { %v7748_v0 = vpop.f32.mrf.mxu1  ;;  %v5502_v53 = vadd.f32 %v7732_v54, %v5373_v63  ;;  %v5626_v24 = vadd.f32 %v5597_v62, %v5497_v33 }
 0x501   :  { %v5481_v26 = vpop.f32.mrf.mxu0 }
 0x502   :  { %v5610_v57 = vpop.f32.mrf.mxu1  ;;  %v5500_v49 = vadd.f32 %v5481_v26, %v5371_v48  ;;  %v5631_v19 = vadd.f32 %v7748_v0, %v5502_v53 }
 0x503   :  { %v7733_v11 = vpop.f32.mrf.mxu0 }
 0x504   :  { %v7749_v23 = vpop.f32.mrf.mxu1  ;;  %v5503_v8 = vadd.f32 %v7733_v11, %v5374_v21  ;;  %v5629_v6 = vadd.f32 %v5610_v57, %v5500_v49 }
 0x505   :  { %v5484_v4 = vpop.f32.mrf.mxu0 }
 0x506   :  { %v5613_v39 = vpop.f32.mrf.mxu1  ;;  %v5501_v28 = vadd.f32 %v5484_v4, %v5372_v12  ;;  %v5632_v22 = vadd.f32 %v7749_v23, %v5503_v8 }
 0x507   :  { %v7760_v27 = vpop.f32.mrf.mxu0 }
 0x508   :  { %v7764_v59 = vpop.f32.mrf.mxu1  ;;  %v5756_v2 = vadd.f32 %v7760_v27, %v5627_v50  ;;  %v5630_v36 = vadd.f32 %v5613_v39, %v5501_v28 }
 0x509   :  { %v5760_v5 = vadd.f32 %v7764_v59, %v5631_v19  ;;  %v5723_v32 = vpop.f32.mrf.mxu0 }
 0x50a   :  { %v5739_v9 = vpop.f32.mrf.mxu1  ;;  %v9686_v14 = vadd.f32 %v9502_v40, %v5756_v2  ;;  %v5754_v10 = vadd.f32 %v5723_v32, %v5625_v58 }
 0x50b   :  { %v9689_v44 = vadd.f32 %v9502_v40, %v5760_v5  ;;  %v5758_v7 = vadd.f32 %v5739_v9, %v5629_v6  ;;  %v7761_v1 = vpop.f32.mrf.mxu0 }
 0x50c   :  { %v7765_v42 = vpop.f32.mrf.mxu1  ;;  %v6642_v20 = vmul.f32 -1.442695, %v9686_v14  ;;  %v5769_v41 = vadd.f32 %v9502_v40, %v5754_v10  ;;  %v5757_v37 = vadd.f32 %v7761_v1, %v5628_v18 }
 0x50d   :  { %v6646_v15 = vmul.f32 -1.442695, %v9689_v44  ;;  %v9695_v56 = vadd.f32 %v9502_v40, %v5758_v7  ;;  %v5761_v29 = vadd.f32 %v7765_v42, %v5632_v22  ;;  %v5726_v60 = vpop.f32.mrf.mxu0 }
 0x50e   :  { %v5742_v46 = vpop.f32.mrf.mxu1  ;;  %8056 = vpow2.f32 %v6642_v20  ;;  %v6640_v30 = vmul.f32 -1.442695, %v5769_v41  ;;  %v5755_v35 = vadd.f32 %v5726_v60, %v5626_v24  ;;  %v5772_v25 = vadd.f32 %v9502_v40, %v5757_v37 }
 0x50f   :  { %v6644_v62 = vmul.f32 -1.442695, %v9695_v56  ;;  %8058 = vpow2.f32 %v6646_v15  ;;  %v5776_v38 = vadd.f32 %v9502_v40, %v5761_v29  ;;  %v5759_v54 = vadd.f32 %v5742_v46, %v5630_v36 }
 0x510   :  { %8060 = vpow2.f32 %v6640_v30  ;;  %v5770_v0 = vadd.f32 %v9502_v40, %v5755_v35  ;;  %v6643_v16 = vmul.f32 -1.442695, %v5772_v25 }
 0x511   :  { %8062 = vpow2.f32 %v6644_v62  ;;  %v6647_v63 = vmul.f32 -1.442695, %v5776_v38  ;;  %v5774_v47 = vadd.f32 %v9502_v40, %v5759_v54 }
 0x512   :  { %v6641_v55 = vmul.f32 -1.442695, %v5770_v0  ;;  %8064 = vpow2.f32 %v6643_v16 }
 0x513   :  { %v6645_v31 = vmul.f32 -1.442695, %v5774_v47  ;;  %8066 = vpow2.f32 %v6647_v63 }
 0x514   :  { %8068 = vpow2.f32 %v6641_v55 }
 0x515   :  { %8070 = vpow2.f32 %v6645_v31 }
 0x51b   :  { %v8057_v3 = vpop.eup %8056 }
 0x51c   :  { %v8059_v26 = vpop.eup %8058  ;;  %v5803_v57 = vadd.f32 1.0, %v8057_v3 }
 0x51d   :  { %v8061_v34 = vpop.eup %8060  ;;  %v5807_v48 = vadd.f32 1.0, %v8059_v26 }
 0x51e   :  { %v8063_v61 = vpop.eup %8062  ;;  %8072 = vrcp.f32 %v5803_v57  ;;  %v5801_v53 = vadd.f32 1.0, %v8061_v34 }
 0x51f   :  { %8074 = vrcp.f32 %v5807_v48  ;;  %v5805_v13 = vadd.f32 1.0, %v8063_v61  ;;  %v8065_v11 = vpop.eup %8064 }
 0x520   :  { %8076 = vrcp.f32 %v5801_v53  ;;  %v8067_v23 = vpop.eup %8066  ;;  %v5804_v40 = vadd.f32 1.0, %v8065_v11 }
 0x521   :  { %8078 = vrcp.f32 %v5805_v13  ;;  %v8069_v17 = vpop.eup %8068  ;;  %v5808_v49 = vadd.f32 1.0, %v8067_v23 }
 0x522   :  { %v8071_v52 = vpop.eup %8070  ;;  %8080 = vrcp.f32 %v5804_v40  ;;  %v5802_v45 = vadd.f32 1.0, %v8069_v17 }
 0x523   :  { %8082 = vrcp.f32 %v5808_v49  ;;  %v5806_v21 = vadd.f32 1.0, %v8071_v52 }
 0x524   :  { %8084 = vrcp.f32 %v5802_v45 }
 0x525   :  { %8086 = vrcp.f32 %v5806_v21 }
 0x52b   :  { %v8073_v4 = vpop.eup %8072 }
 0x52c   :  { %v8075_v39 = vpop.eup %8074  ;;  %v5827_v50 = vsel %vm9578_vm4, %v8073_v4, %v9686_v14 }
 0x52d   :  { %v8077_v19 = vpop.eup %8076  ;;  %6650 = vst.msk [vmem:[%s9762_s9 + $0x50] sm:$0xff] %vm4608_vm5, %v5827_v50  ;;  %v5831_v12 = vsel %vm9578_vm4, %v8075_v39, %v9689_v44 }
 0x52e   :  { %v8079_v43 = vpop.eup %8078  ;;  %6654 = vst.msk [vmem:[%s9762_s9 + $0x70] sm:$0xff] %vm4608_vm5, %v5831_v12  ;;  %v5825_v33 = vsel %vm9578_vm4, %v8077_v19, %v5769_v41 }
 0x52f   :  { %6648 = vst.msk [vmem:[%s9762_s9 + $0x40] sm:$0xff] %vm4608_vm5, %v5825_v33  ;;  %v5829_v8 = vsel %vm9578_vm4, %v8079_v43, %v9695_v56  ;;  %v8081_v27 = vpop.eup %8080 }
 0x530   :  { %6652 = vst.msk [vmem:[%s9762_s9 + $0x60] sm:$0xff] %vm4608_vm5, %v5829_v8  ;;  %v8083_v59 = vpop.eup %8082  ;;  %v5828_v58 = vsel %vm9578_vm4, %v8081_v27, %v5772_v25 }
 0x531   :  { %v8085_v6 = vpop.eup %8084  ;;  %6651 = vst.msk [vmem:[%s9762_s9 + $0x58] sm:$0xff] %vm4608_vm5, %v5828_v58  ;;  %v5832_v2 = vsel %vm9578_vm4, %v8083_v59, %v5776_v38 }
 0x532   :  { %v8087_v5 = vpop.eup %8086  ;;  %6655 = vst.msk [vmem:[%s9762_s9 + $0x78] sm:$0xff] %vm4608_vm5, %v5832_v2  ;;  %v5826_v28 = vsel %vm9578_vm4, %v8085_v6, %v5770_v0 }
 0x533   :  { %6649 = vst.msk [vmem:[%s9762_s9 + $0x48] sm:$0xff] %vm4608_vm5, %v5826_v28  ;;  %v5830_v32 = vsel %vm9578_vm4, %v8087_v5, %v5774_v47 }
 0x534   :  { %6653 = vst.msk [vmem:[%s9762_s9 + $0x68] sm:$0xff] %vm4608_vm5, %v5830_v32 }

</bundles_post_ra>
